<compile_context>
chip_gen: v5e
topology: v5e:2x2
jax: 0.10.0
libtpu: 0.0.40
codegen_flags: <defaults>
</compile_context>

<pallas_src>
import functools

import jax
import jax.numpy as jnp
from jax.experimental import pallas as pl
from jax.experimental.pallas import tpu as pltpu


# ----------------------------------------------------------------------------- kernel

def _apply_activation(h, name, sigmoid_via_tanh):
    """Activations matching Network.activation_mappings semantics (f32, lane-dense)."""
    if name == "Sigmoid":
        if sigmoid_via_tanh:
            # sigmoid(x) = 0.5 * tanh(0.5 * x) + 0.5  -> single EUP transcendental.
            return 0.5 * jnp.tanh(0.5 * h) + 0.5
        return pl.reciprocal(1.0 + jnp.exp(-h), approx=True)
    if name == "ReLU":
        return jnp.maximum(h, 0.0)
    if name == "LeakyReLU":
        return jnp.where(h >= 0.0, h, 0.01 * h)  # PyTorch default negative_slope
    if name == "Tanh":
        return jnp.tanh(h)
    raise ValueError(f"Invalid activation type selected: {name}")


def _ffn_kernel(x_ref, *refs, activations, sigmoid_via_tanh):
    """Fused feed-forward net.

    refs = (w_0 .. w_{L-1}, b_0 .. b_{L-1}, out_ref)
      x_ref : (tb, in_0)   natural PyTorch layout block
      w_i   : (out_i, in_i)  PyTorch nn.Linear layout, pre-cast to matmul dtype
      b_i   : (out_i, 1)     f32
      out   : (tb, out_{L-1})

    Compute happens in transposed (feature, batch) form so the batch maps onto
    the 128-lane axis; the two transposes run on the otherwise-idle XLU.
    """
    n = len(activations)
    w_refs = refs[:n]
    b_refs = refs[n:2 * n]
    o_ref = refs[2 * n]

    h = jnp.transpose(x_ref[...])                           # (in_0, tb), f32, XLU
    for w_ref, b_ref, act in zip(w_refs, b_refs, activations):
        w = w_ref[...]                                      # already in matmul dtype
        # MXU: (out, in) @ (in, tb) -> (out, tb), f32 accumulate.
        z = jnp.dot(w, h.astype(w.dtype), preferred_element_type=jnp.float32)
        z = z + b_ref[...]                                  # (out, 1) broadcast over lanes (VPU)
        h = _apply_activation(z, act, sigmoid_via_tanh)     # f32, EUP
    o_ref[...] = jnp.transpose(h).astype(o_ref.dtype)       # back to (tb, out), XLU


# ----------------------------------------------------------------------------- wrapper helpers

def _round_up(x, m):
    return ((x + m - 1) // m) * m


def _round_down(x, m):
    return max(m, (x // m) * m)


def _block_spec(shape, index_map, *, buffers=None):
    """BlockSpec with optional explicit buffer count; falls back if unsupported."""
    if buffers is not None:
        try:
            return pl.BlockSpec(shape, index_map, pipeline_mode=pl.Buffered(buffers))
        except Exception:  # pragma: no cover - API variations
            pass
    return pl.BlockSpec(shape, index_map)


def _tpu_info():
    """Best-effort (vmem_bytes, tensorcores_per_device); conservative fallbacks."""
    vmem = 64 << 20          # safe floor: v7x physical VMEM
    cores = 1
    try:
        info = pltpu.get_tpu_info()
        v = getattr(info, "vmem_capacity_bytes", None)
        if isinstance(v, int) and v > 0:
            vmem = v
        for attr in ("num_cores", "tensorcores_per_chip", "num_tensorcores",
                     "cores_per_chip"):
            c = getattr(info, attr, None)
            if isinstance(c, int) and c > 0:
                cores = c
                break
    except Exception:  # pragma: no cover - not on TPU / API variations
        pass
    return vmem, cores


def _pick_tile_batch(n, requested, layer_sizes, weight_bytes, vmem_budget, num_cores):
    """Multiple of 128, VMEM-aware (widest hidden layer + bf16 copies counted),
    and >= 2 grid steps per TensorCore when the batch permits it."""
    in_dim, out_dim = layer_sizes[0], layer_sizes[-1]
    widest = max(layer_sizes)
    # Per batch-column bytes: double-buffered x/out f32 blocks + f32 and bf16
    # copies of the transposed input / widest live intermediates in the body.
    per_col = (in_dim + out_dim) * 4 * 2 + (in_dim + 2 * widest + out_dim) * (4 + 2)
    avail = max(vmem_budget - weight_bytes, 1 << 20)
    cap = _round_down(avail // max(per_col, 1), 128)
    tb = _round_down(min(requested, cap), 128)
    tb = min(tb, max(128, _round_up(n, 128)))               # no point exceeding the batch
    min_steps = 2 * max(int(num_cores), 1)                  # >=2 steps per TC
    if n >= min_steps * 128:
        tb = min(tb, _round_down(n // min_steps, 128))
    return max(tb, 128)


def _call_pallas(x, weights, biases_2d, activations, tb, *, sigmoid_via_tanh,
                 vmem_limit_bytes, cost_estimate, single_buffer_params):
    N, in_dim = x.shape
    out_dim = weights[-1].shape[0]
    grid = (pl.cdiv(N, tb),)

    param_buffers = 1 if single_buffer_params else None
    in_specs = [pl.BlockSpec((tb, in_dim), lambda i: (i, 0))]
    for w in weights:                                       # constant index maps:
        in_specs.append(_block_spec(w.shape, lambda i: (0, 0), buffers=param_buffers))
    for b in biases_2d:                                     # weights/biases stay resident
        in_specs.append(_block_spec(b.shape, lambda i: (0, 0), buffers=param_buffers))
    out_specs = pl.BlockSpec((tb, out_dim), lambda i: (i, 0))

    kernel = functools.partial(
        _ffn_kernel,
        activations=tuple(activations),
        sigmoid_via_tanh=sigmoid_via_tanh,
    )

    return pl.pallas_call(
        kernel,
        out_shape=jax.ShapeDtypeStruct((N, out_dim), x.dtype),
        grid_spec=pltpu.PrefetchScalarGridSpec(
            num_scalar_prefetch=0,
            grid=grid,
            in_specs=in_specs,
            out_specs=out_specs,
        ),
        compiler_params=pltpu.CompilerParams(
            dimension_semantics=("parallel",),              # shard batch tiles across TCs
            vmem_limit_bytes=int(vmem_limit_bytes),
        ),
        cost_estimate=cost_estimate,
    )(x, *weights, *biases_2d)


# ----------------------------------------------------------------------------- public entry point

def feed_forward_net(x, weights, biases, activations, *,
                     tile_batch=1024,
                     matmul_dtype=jnp.bfloat16,
                     sigmoid_via_tanh=True,
                     single_buffer_params=True):
    """MALA FeedForwardNet forward pass as one fused Pallas TPU kernel.

    x : (N, layer_sizes[0]) float32                          -- PyTorch layout
    weights : list of (layer_sizes[i+1], layer_sizes[i])     -- PyTorch nn.Linear layout
    biases  : list of (layer_sizes[i+1],)
    activations : list of activation names (one per layer)
    matmul_dtype : MXU operand dtype (None => full f32 parity path)
    Returns (N, layer_sizes[-1]) in x.dtype.
    """
    n_layers = len(weights)
    assert len(biases) == n_layers and len(activations) == n_layers
    N, in_dim = x.shape
    assert weights[0].shape[1] == in_dim
    layer_sizes = [in_dim] + [w.shape[0] for w in weights]
    out_dim = layer_sizes[-1]

    # Pre-cast grid-invariant weights once (halves weight DMA/VMEM, no per-step casts).
    if matmul_dtype is not None:
        weights = [w.astype(matmul_dtype) for w in weights]
    else:
        weights = [w.astype(jnp.float32) for w in weights]
    biases_2d = [b.reshape(-1, 1).astype(jnp.float32) for b in biases]

    vmem_bytes, num_cores = _tpu_info()
    vmem_budget = max(16 << 20, min((vmem_bytes * 5) // 8, 100 << 20))
    weight_bytes = (sum(w.size * w.dtype.itemsize for w in weights)
                    + sum(b.size * 4 for b in biases_2d))
    tb = _pick_tile_batch(N, tile_batch, layer_sizes, weight_bytes,
                          vmem_budget, num_cores)

    flops = 2 * N * sum(layer_sizes[i] * layer_sizes[i + 1] for i in range(n_layers))
    transcendentals = N * sum(layer_sizes[i + 1] for i in range(n_layers)
                              if activations[i] in ("Sigmoid", "Tanh"))
    bytes_accessed = (x.size * x.dtype.itemsize
                      + N * out_dim * x.dtype.itemsize
                      + weight_bytes)
    cost = pl.CostEstimate(flops=flops, transcendentals=transcendentals,
                           bytes_accessed=bytes_accessed)

    call = functools.partial(
        _call_pallas, x, weights, biases_2d, activations, tb,
        sigmoid_via_tanh=sigmoid_via_tanh,
        vmem_limit_bytes=vmem_budget,
        cost_estimate=cost,
    )
    if single_buffer_params:
        try:
            return call(single_buffer_params=True)
        except Exception:   # Pallas version without Buffered(1) support: retry plain
            pass
    return call(single_buffer_params=False)


# ----------------------------------------------------------------------------- reference / init

def init_params(key, layer_sizes):
    """PyTorch nn.Linear-style init: U(-1/sqrt(fan_in), 1/sqrt(fan_in)), weight (out, in)."""
    weights, biases = [], []
    for i in range(len(layer_sizes) - 1):
        fan_in, fan_out = layer_sizes[i], layer_sizes[i + 1]
        key, kw, kb = jax.random.split(key, 3)
        bound = 1.0 / jnp.sqrt(jnp.float32(fan_in))
        weights.append(
            jax.random.uniform(kw, (fan_out, fan_in), jnp.float32, -bound, bound)
        )
        biases.append(
            jax.random.uniform(kb, (fan_out,), jnp.float32, -bound, bound)
        )
    return weights, biases


_REF_ACTS = {
    "Sigmoid": jax.nn.sigmoid,
    "ReLU": lambda x: jnp.maximum(x, 0.0),
    "LeakyReLU": lambda x: jnp.where(x >= 0.0, x, 0.01 * x),
    "Tanh": jnp.tanh,
}


def reference_forward(x, weights, biases, activations, matmul_dtype=None):
    """Pure-JAX reference of the PyTorch forward (optionally bf16 MXU operands)."""
    h = x
    for w, b, act in zip(weights, biases, activations):
        if matmul_dtype is not None:
            z = jnp.dot(h.astype(matmul_dtype), w.T.astype(matmul_dtype),
                        preferred_element_type=jnp.float32)
        else:
            z = h @ w.T
        h = _REF_ACTS[act](z + b)
    return h


# ----------------------------------------------------------------------------- demo / self-test

if __name__ == "__main__":
    # MALA FeedForwardNet config (small synthetic sizes):
    #   params.network.layer_sizes       = [32, 64, 64, 16]
    #   params.network.layer_activations = ["Sigmoid"]  (broadcast to all layers)
    layer_sizes = [32, 64, 64, 16]
    number_of_layers = len(layer_sizes) - 1
    layer_activations = ["Sigmoid"]
    # use_only_one_activation_type logic from FeedForwardNet.__init__:
    acts = (layer_activations * number_of_layers
            if len(layer_activations) == 1
            else layer_activations[:number_of_layers])

    key = jax.random.PRNGKey(0)
    key, kx = jax.random.split(key)
    N = 1024                                   # batch of "grid points" through the net
    x = jax.random.normal(kx, (N, layer_sizes[0]), jnp.float32)

    weights, biases = init_params(key, layer_sizes)

    out = feed_forward_net(x, weights, biases, acts)
    out = jax.block_until_ready(out)
    assert out.shape == (N, layer_sizes[-1])

    # Check vs a reference with the same matmul-dtype recipe (bf16 MXU operands, f32 rest),
    # and loosely vs the pure-f32 reference of the original PyTorch math.
    ref_matched = reference_forward(x, weights, biases, acts, matmul_dtype=jnp.bfloat16)
    ref_f32 = reference_forward(x, weights, biases, acts)
    assert jnp.allclose(out, ref_matched, atol=5e-3, rtol=0.0), "mismatch vs matched-dtype reference"
    assert jnp.allclose(out, ref_f32, atol=2e-2, rtol=0.0), "mismatch vs f32 reference"

    print("KERNEL_OK")
</pallas_src>

<mosaic_0001>
module attributes {stable_mosaic.version = 11 : i64} {
  func.func @_ffn_kernel(%arg0: i32, %arg1: memref<512x32xf32, #tpu.memory_space<vmem>>, %arg2: memref<64x32xbf16, #tpu.memory_space<vmem>>, %arg3: memref<64x64xbf16, #tpu.memory_space<vmem>>, %arg4: memref<16x64xbf16, #tpu.memory_space<vmem>>, %arg5: memref<64x1xf32, #tpu.memory_space<vmem>>, %arg6: memref<64x1xf32, #tpu.memory_space<vmem>>, %arg7: memref<16x1xf32, #tpu.memory_space<vmem>>, %arg8: memref<512x16xf32, #tpu.memory_space<vmem>>) attributes {dimension_semantics = [#tpu.dimension_semantics<parallel>], iteration_bounds = array<i64: 2>, scalar_prefetch = 0 : i64, scratch_operands = 0 : i64, tpu.core_type = #tpu.core_type<tc>, window_params = [{transform_indices = @transform_0, window_bounds = array<i64: 512, 32>}, {pipeline_mode = #tpu.pipeline_mode<synchronous>, transform_indices = @transform_1, window_bounds = array<i64: 64, 32>}, {pipeline_mode = #tpu.pipeline_mode<synchronous>, transform_indices = @transform_2, window_bounds = array<i64: 64, 64>}, {pipeline_mode = #tpu.pipeline_mode<synchronous>, transform_indices = @transform_3, window_bounds = array<i64: 16, 64>}, {pipeline_mode = #tpu.pipeline_mode<synchronous>, transform_indices = @transform_4, window_bounds = array<i64: 64, 1>}, {pipeline_mode = #tpu.pipeline_mode<synchronous>, transform_indices = @transform_5, window_bounds = array<i64: 64, 1>}, {pipeline_mode = #tpu.pipeline_mode<synchronous>, transform_indices = @transform_6, window_bounds = array<i64: 16, 1>}, {transform_indices = @transform_7, window_bounds = array<i64: 512, 16>}]} {
    %c0 = arith.constant 0 : index
    %c0_0 = arith.constant 0 : index
    %0 = vector.load %arg1[%c0, %c0_0] : memref<512x32xf32, #tpu.memory_space<vmem>>, vector<512x32xf32>
    %1 = tpu.transpose %0, [1, 0] : vector<512x32xf32> -> vector<32x512xf32>
    %c0_1 = arith.constant 0 : index
    %c0_2 = arith.constant 0 : index
    %2 = vector.load %arg2[%c0_1, %c0_2] : memref<64x32xbf16, #tpu.memory_space<vmem>>, vector<64x32xbf16>
    %3 = arith.truncf %1 : vector<32x512xf32> to vector<32x512xbf16>
    %cst = arith.constant dense<0.000000e+00> : vector<64x512xf32>
    %4 = tpu.matmul %2, %3, %cst {dimension_numbers = #tpu.dot_dimension_numbers<[1], [0], [0], [1], [0, 0, 1, 1], [], []>} : vector<64x32xbf16>, vector<32x512xbf16>, vector<64x512xf32> -> vector<64x512xf32>
    %c0_3 = arith.constant 0 : index
    %c0_4 = arith.constant 0 : index
    %5 = vector.load %arg5[%c0_3, %c0_4] : memref<64x1xf32, #tpu.memory_space<vmem>>, vector<64x1xf32>
    %6 = vector.broadcast %5 : vector<64x1xf32> to vector<64x512xf32>
    %7 = arith.addf %4, %6 : vector<64x512xf32>
    %cst_5 = arith.constant 5.000000e-01 : f32
    %8 = vector.broadcast %cst_5 : f32 to vector<64x512xf32>
    %9 = arith.mulf %8, %7 : vector<64x512xf32>
    %10 = math.tanh %9 : vector<64x512xf32>
    %cst_6 = arith.constant 5.000000e-01 : f32
    %11 = vector.broadcast %cst_6 : f32 to vector<64x512xf32>
    %12 = arith.mulf %11, %10 : vector<64x512xf32>
    %cst_7 = arith.constant 5.000000e-01 : f32
    %13 = vector.broadcast %cst_7 : f32 to vector<64x512xf32>
    %14 = arith.addf %12, %13 : vector<64x512xf32>
    %c0_8 = arith.constant 0 : index
    %c0_9 = arith.constant 0 : index
    %15 = vector.load %arg3[%c0_8, %c0_9] : memref<64x64xbf16, #tpu.memory_space<vmem>>, vector<64x64xbf16>
    %16 = arith.truncf %14 : vector<64x512xf32> to vector<64x512xbf16>
    %cst_10 = arith.constant dense<0.000000e+00> : vector<64x512xf32>
    %17 = tpu.matmul %15, %16, %cst_10 {dimension_numbers = #tpu.dot_dimension_numbers<[1], [0], [0], [1], [0, 0, 1, 1], [], []>} : vector<64x64xbf16>, vector<64x512xbf16>, vector<64x512xf32> -> vector<64x512xf32>
    %c0_11 = arith.constant 0 : index
    %c0_12 = arith.constant 0 : index
    %18 = vector.load %arg6[%c0_11, %c0_12] : memref<64x1xf32, #tpu.memory_space<vmem>>, vector<64x1xf32>
    %19 = vector.broadcast %18 : vector<64x1xf32> to vector<64x512xf32>
    %20 = arith.addf %17, %19 : vector<64x512xf32>
    %cst_13 = arith.constant 5.000000e-01 : f32
    %21 = vector.broadcast %cst_13 : f32 to vector<64x512xf32>
    %22 = arith.mulf %21, %20 : vector<64x512xf32>
    %23 = math.tanh %22 : vector<64x512xf32>
    %cst_14 = arith.constant 5.000000e-01 : f32
    %24 = vector.broadcast %cst_14 : f32 to vector<64x512xf32>
    %25 = arith.mulf %24, %23 : vector<64x512xf32>
    %cst_15 = arith.constant 5.000000e-01 : f32
    %26 = vector.broadcast %cst_15 : f32 to vector<64x512xf32>
    %27 = arith.addf %25, %26 : vector<64x512xf32>
    %c0_16 = arith.constant 0 : index
    %c0_17 = arith.constant 0 : index
    %28 = vector.load %arg4[%c0_16, %c0_17] : memref<16x64xbf16, #tpu.memory_space<vmem>>, vector<16x64xbf16>
    %29 = arith.truncf %27 : vector<64x512xf32> to vector<64x512xbf16>
    %cst_18 = arith.constant dense<0.000000e+00> : vector<16x512xf32>
    %30 = tpu.matmul %28, %29, %cst_18 {dimension_numbers = #tpu.dot_dimension_numbers<[1], [0], [0], [1], [0, 0, 1, 1], [], []>} : vector<16x64xbf16>, vector<64x512xbf16>, vector<16x512xf32> -> vector<16x512xf32>
    %c0_19 = arith.constant 0 : index
    %c0_20 = arith.constant 0 : index
    %31 = vector.load %arg7[%c0_19, %c0_20] : memref<16x1xf32, #tpu.memory_space<vmem>>, vector<16x1xf32>
    %32 = vector.broadcast %31 : vector<16x1xf32> to vector<16x512xf32>
    %33 = arith.addf %30, %32 : vector<16x512xf32>
    %cst_21 = arith.constant 5.000000e-01 : f32
    %34 = vector.broadcast %cst_21 : f32 to vector<16x512xf32>
    %35 = arith.mulf %34, %33 : vector<16x512xf32>
    %36 = math.tanh %35 : vector<16x512xf32>
    %cst_22 = arith.constant 5.000000e-01 : f32
    %37 = vector.broadcast %cst_22 : f32 to vector<16x512xf32>
    %38 = arith.mulf %37, %36 : vector<16x512xf32>
    %cst_23 = arith.constant 5.000000e-01 : f32
    %39 = vector.broadcast %cst_23 : f32 to vector<16x512xf32>
    %40 = arith.addf %38, %39 : vector<16x512xf32>
    %41 = tpu.transpose %40, [1, 0] : vector<16x512xf32> -> vector<512x16xf32>
    %c0_24 = arith.constant 0 : index
    %c0_25 = arith.constant 0 : index
    %42 = vector.load %arg8[%c0_24, %c0_25] : memref<512x16xf32, #tpu.memory_space<vmem>>, vector<512x16xf32>
    tpu.vector_store %arg8[%c0_24, %c0_25], %41 {strides = array<i32>} : memref<512x16xf32, #tpu.memory_space<vmem>>, vector<512x16xf32>,
    return
  }
  func.func @transform_0(%arg0: i32) -> (i32, i32) {
    %c0_i32 = arith.constant 0 : i32
    %c0_i32_0 = arith.constant 0 : i32
    return %arg0, %c0_i32 : i32, i32
  }
  func.func @transform_1(%arg0: i32) -> (i32, i32) {
    %c0_i32 = arith.constant 0 : i32
    %c0_i32_0 = arith.constant 0 : i32
    %c0_i32_1 = arith.constant 0 : i32
    return %c0_i32, %c0_i32_0 : i32, i32
  }
  func.func @transform_2(%arg0: i32) -> (i32, i32) {
    %c0_i32 = arith.constant 0 : i32
    %c0_i32_0 = arith.constant 0 : i32
    %c0_i32_1 = arith.constant 0 : i32
    return %c0_i32, %c0_i32_0 : i32, i32
  }
  func.func @transform_3(%arg0: i32) -> (i32, i32) {
    %c0_i32 = arith.constant 0 : i32
    %c0_i32_0 = arith.constant 0 : i32
    %c0_i32_1 = arith.constant 0 : i32
    return %c0_i32, %c0_i32_0 : i32, i32
  }
  func.func @transform_4(%arg0: i32) -> (i32, i32) {
    %c0_i32 = arith.constant 0 : i32
    %c0_i32_0 = arith.constant 0 : i32
    %c0_i32_1 = arith.constant 0 : i32
    return %c0_i32, %c0_i32_0 : i32, i32
  }
  func.func @transform_5(%arg0: i32) -> (i32, i32) {
    %c0_i32 = arith.constant 0 : i32
    %c0_i32_0 = arith.constant 0 : i32
    %c0_i32_1 = arith.constant 0 : i32
    return %c0_i32, %c0_i32_0 : i32, i32
  }
  func.func @transform_6(%arg0: i32) -> (i32, i32) {
    %c0_i32 = arith.constant 0 : i32
    %c0_i32_0 = arith.constant 0 : i32
    %c0_i32_1 = arith.constant 0 : i32
    return %c0_i32, %c0_i32_0 : i32, i32
  }
  func.func @transform_7(%arg0: i32) -> (i32, i32) {
    %c0_i32 = arith.constant 0 : i32
    %c0_i32_0 = arith.constant 0 : i32
    return %arg0, %c0_i32 : i32, i32
  }
}

module attributes {stable_mosaic.version = 11 : i64} {
  func.func @_ffn_kernel(%arg0: i32, %arg1: memref<512x32xf32, #tpu.memory_space<vmem>>, %arg2: memref<64x32xbf16, #tpu.memory_space<vmem>>, %arg3: memref<64x64xbf16, #tpu.memory_space<vmem>>, %arg4: memref<16x64xbf16, #tpu.memory_space<vmem>>, %arg5: memref<64x1xf32, #tpu.memory_space<vmem>>, %arg6: memref<64x1xf32, #tpu.memory_space<vmem>>, %arg7: memref<16x1xf32, #tpu.memory_space<vmem>>, %arg8: memref<512x16xf32, #tpu.memory_space<vmem>>) attributes {dimension_semantics = [#tpu.dimension_semantics<parallel>], iteration_bounds = array<i64: 2>, scalar_prefetch = 0 : i64, scratch_operands = 0 : i64, tpu.core_type = #tpu.core_type<tc>, window_params = [{transform_indices = @transform_0, window_bounds = array<i64: 512, 32>}, {pipeline_mode = #tpu.pipeline_mode<synchronous>, transform_indices = @transform_1, window_bounds = array<i64: 64, 32>}, {pipeline_mode = #tpu.pipeline_mode<synchronous>, transform_indices = @transform_2, window_bounds = array<i64: 64, 64>}, {pipeline_mode = #tpu.pipeline_mode<synchronous>, transform_indices = @transform_3, window_bounds = array<i64: 16, 64>}, {pipeline_mode = #tpu.pipeline_mode<synchronous>, transform_indices = @transform_4, window_bounds = array<i64: 64, 1>}, {pipeline_mode = #tpu.pipeline_mode<synchronous>, transform_indices = @transform_5, window_bounds = array<i64: 64, 1>}, {pipeline_mode = #tpu.pipeline_mode<synchronous>, transform_indices = @transform_6, window_bounds = array<i64: 16, 1>}, {transform_indices = @transform_7, window_bounds = array<i64: 512, 16>}]} {
    %c0 = arith.constant 0 : index
    %c0_0 = arith.constant 0 : index
    %0 = vector.load %arg1[%c0, %c0_0] : memref<512x32xf32, #tpu.memory_space<vmem>>, vector<512x32xf32>
    %1 = tpu.transpose %0, [1, 0] : vector<512x32xf32> -> vector<32x512xf32>
    %c0_1 = arith.constant 0 : index
    %c0_2 = arith.constant 0 : index
    %2 = vector.load %arg2[%c0_1, %c0_2] : memref<64x32xbf16, #tpu.memory_space<vmem>>, vector<64x32xbf16>
    %3 = arith.truncf %1 : vector<32x512xf32> to vector<32x512xbf16>
    %cst = arith.constant dense<0.000000e+00> : vector<64x512xf32>
    %4 = tpu.matmul %2, %3, %cst {dimension_numbers = #tpu.dot_dimension_numbers<[1], [0], [0], [1], [0, 0, 1, 1], [], []>} : vector<64x32xbf16>, vector<32x512xbf16>, vector<64x512xf32> -> vector<64x512xf32>
    %c0_3 = arith.constant 0 : index
    %c0_4 = arith.constant 0 : index
    %5 = vector.load %arg5[%c0_3, %c0_4] : memref<64x1xf32, #tpu.memory_space<vmem>>, vector<64x1xf32>
    %6 = vector.broadcast %5 : vector<64x1xf32> to vector<64x512xf32>
    %7 = arith.addf %4, %6 : vector<64x512xf32>
    %cst_5 = arith.constant 5.000000e-01 : f32
    %8 = vector.broadcast %cst_5 : f32 to vector<64x512xf32>
    %9 = arith.mulf %8, %7 : vector<64x512xf32>
    %10 = math.tanh %9 : vector<64x512xf32>
    %cst_6 = arith.constant 5.000000e-01 : f32
    %11 = vector.broadcast %cst_6 : f32 to vector<64x512xf32>
    %12 = arith.mulf %11, %10 : vector<64x512xf32>
    %cst_7 = arith.constant 5.000000e-01 : f32
    %13 = vector.broadcast %cst_7 : f32 to vector<64x512xf32>
    %14 = arith.addf %12, %13 : vector<64x512xf32>
    %c0_8 = arith.constant 0 : index
    %c0_9 = arith.constant 0 : index
    %15 = vector.load %arg3[%c0_8, %c0_9] : memref<64x64xbf16, #tpu.memory_space<vmem>>, vector<64x64xbf16>
    %16 = arith.truncf %14 : vector<64x512xf32> to vector<64x512xbf16>
    %cst_10 = arith.constant dense<0.000000e+00> : vector<64x512xf32>
    %17 = tpu.matmul %15, %16, %cst_10 {dimension_numbers = #tpu.dot_dimension_numbers<[1], [0], [0], [1], [0, 0, 1, 1], [], []>} : vector<64x64xbf16>, vector<64x512xbf16>, vector<64x512xf32> -> vector<64x512xf32>
    %c0_11 = arith.constant 0 : index
    %c0_12 = arith.constant 0 : index
    %18 = vector.load %arg6[%c0_11, %c0_12] : memref<64x1xf32, #tpu.memory_space<vmem>>, vector<64x1xf32>
    %19 = vector.broadcast %18 : vector<64x1xf32> to vector<64x512xf32>
    %20 = arith.addf %17, %19 : vector<64x512xf32>
    %cst_13 = arith.constant 5.000000e-01 : f32
    %21 = vector.broadcast %cst_13 : f32 to vector<64x512xf32>
    %22 = arith.mulf %21, %20 : vector<64x512xf32>
    %23 = math.tanh %22 : vector<64x512xf32>
    %cst_14 = arith.constant 5.000000e-01 : f32
    %24 = vector.broadcast %cst_14 : f32 to vector<64x512xf32>
    %25 = arith.mulf %24, %23 : vector<64x512xf32>
    %cst_15 = arith.constant 5.000000e-01 : f32
    %26 = vector.broadcast %cst_15 : f32 to vector<64x512xf32>
    %27 = arith.addf %25, %26 : vector<64x512xf32>
    %c0_16 = arith.constant 0 : index
    %c0_17 = arith.constant 0 : index
    %28 = vector.load %arg4[%c0_16, %c0_17] : memref<16x64xbf16, #tpu.memory_space<vmem>>, vector<16x64xbf16>
    %29 = arith.truncf %27 : vector<64x512xf32> to vector<64x512xbf16>
    %cst_18 = arith.constant dense<0.000000e+00> : vector<16x512xf32>
    %30 = tpu.matmul %28, %29, %cst_18 {dimension_numbers = #tpu.dot_dimension_numbers<[1], [0], [0], [1], [0, 0, 1, 1], [], []>} : vector<16x64xbf16>, vector<64x512xbf16>, vector<16x512xf32> -> vector<16x512xf32>
    %c0_19 = arith.constant 0 : index
    %c0_20 = arith.constant 0 : index
    %31 = vector.load %arg7[%c0_19, %c0_20] : memref<16x1xf32, #tpu.memory_space<vmem>>, vector<16x1xf32>
    %32 = vector.broadcast %31 : vector<16x1xf32> to vector<16x512xf32>
    %33 = arith.addf %30, %32 : vector<16x512xf32>
    %cst_21 = arith.constant 5.000000e-01 : f32
    %34 = vector.broadcast %cst_21 : f32 to vector<16x512xf32>
    %35 = arith.mulf %34, %33 : vector<16x512xf32>
    %36 = math.tanh %35 : vector<16x512xf32>
    %cst_22 = arith.constant 5.000000e-01 : f32
    %37 = vector.broadcast %cst_22 : f32 to vector<16x512xf32>
    %38 = arith.mulf %37, %36 : vector<16x512xf32>
    %cst_23 = arith.constant 5.000000e-01 : f32
    %39 = vector.broadcast %cst_23 : f32 to vector<16x512xf32>
    %40 = arith.addf %38, %39 : vector<16x512xf32>
    %41 = tpu.transpose %40, [1, 0] : vector<16x512xf32> -> vector<512x16xf32>
    %c0_24 = arith.constant 0 : index
    %c0_25 = arith.constant 0 : index
    %42 = vector.load %arg8[%c0_24, %c0_25] : memref<512x16xf32, #tpu.memory_space<vmem>>, vector<512x16xf32>
    tpu.vector_store %arg8[%c0_24, %c0_25], %41 {strides = array<i32>} : memref<512x16xf32, #tpu.memory_space<vmem>>, vector<512x16xf32>,
    return
  }
  func.func @transform_0(%arg0: i32) -> (i32, i32) {
    %c0_i32 = arith.constant 0 : i32
    %c0_i32_0 = arith.constant 0 : i32
    return %arg0, %c0_i32 : i32, i32
  }
  func.func @transform_1(%arg0: i32) -> (i32, i32) {
    %c0_i32 = arith.constant 0 : i32
    %c0_i32_0 = arith.constant 0 : i32
    %c0_i32_1 = arith.constant 0 : i32
    return %c0_i32, %c0_i32_0 : i32, i32
  }
  func.func @transform_2(%arg0: i32) -> (i32, i32) {
    %c0_i32 = arith.constant 0 : i32
    %c0_i32_0 = arith.constant 0 : i32
    %c0_i32_1 = arith.constant 0 : i32
    return %c0_i32, %c0_i32_0 : i32, i32
  }
  func.func @transform_3(%arg0: i32) -> (i32, i32) {
    %c0_i32 = arith.constant 0 : i32
    %c0_i32_0 = arith.constant 0 : i32
    %c0_i32_1 = arith.constant 0 : i32
    return %c0_i32, %c0_i32_0 : i32, i32
  }
  func.func @transform_4(%arg0: i32) -> (i32, i32) {
    %c0_i32 = arith.constant 0 : i32
    %c0_i32_0 = arith.constant 0 : i32
    %c0_i32_1 = arith.constant 0 : i32
    return %c0_i32, %c0_i32_0 : i32, i32
  }
  func.func @transform_5(%arg0: i32) -> (i32, i32) {
    %c0_i32 = arith.constant 0 : i32
    %c0_i32_0 = arith.constant 0 : i32
    %c0_i32_1 = arith.constant 0 : i32
    return %c0_i32, %c0_i32_0 : i32, i32
  }
  func.func @transform_6(%arg0: i32) -> (i32, i32) {
    %c0_i32 = arith.constant 0 : i32
    %c0_i32_0 = arith.constant 0 : i32
    %c0_i32_1 = arith.constant 0 : i32
    return %c0_i32, %c0_i32_0 : i32, i32
  }
  func.func @transform_7(%arg0: i32) -> (i32, i32) {
    %c0_i32 = arith.constant 0 : i32
    %c0_i32_0 = arith.constant 0 : i32
    return %arg0, %c0_i32 : i32, i32
  }
}

</mosaic_0001>

<bundles_post_ra>
// kernel: tpu_custom_call.1
= control target key start
LH: loop header
LB: loop body
LE: loop exit
PB: predicated region body
PF: predicated region fallthrough
CT: control target
= control target key end

     0   :  { %s1942_s24 = smov 0   ;;  %s2462_s0 = inlined_call_operand.vmem [shape: f32[1024,32], index: 0, kind: input, shape index: {}]   ;;  %s2463_s1 = inlined_call_operand.vmem [shape: bf16[64,32], index: 1, kind: input, shape index: {}]   ;;  %s2464_s2 = inlined_call_operand.vmem [shape: bf16[64,64], index: 2, kind: input, shape index: {}]   ;;  %s2465_s3 = inlined_call_operand.vmem [shape: bf16[16,64], index: 3, kind: input, shape index: {}]   ;;  %s2466_s4 = inlined_call_operand.vmem [shape: f32[64,1], index: 4, kind: input, shape index: {}]   ;;  %s2467_s5 = inlined_call_operand.vmem [shape: f32[64,1], index: 5, kind: input, shape index: {}]   ;;  %s2468_s6 = inlined_call_operand.vmem [shape: f32[16,1], index: 6, kind: input, shape index: {}]   ;;  %s2469_s7 = inlined_call_operand.vmem [shape: f32[1024,16], index: 7, kind: output, shape index: {}]  }
   0x1 LB: > { %s1540_s25 = sadd.s32 4294967295, %s1899_s24   ;;  %p1544_p0 = scmp.ge.s32.totalorder %s1899_s24, 1  ;;  %s1899_s24 = sphi %s1942_s24, %s17_s24  }
   0x2   : > { %p238_p1 = scmp.lt.s32.totalorder %s1899_s24, 3 }
   0x4   : > { %p239_p2 = pnand %p1544_p0, %p238_p1 }
   0x5   : > { %s1545_s26 = sshll.u32 (!%p239_p2), %s1540_s25, 6 }
   0x6   : > { %242 = sbr.rel (%p239_p2) target bundleno = 1192 (0x4a8), region = 48  ;;  %p271_p3 = scmp.lt.s32.totalorder (!%p239_p2), %s1545_s26, 127 }
   0xb   : > { %s2471_s26 = smov (!%p271_p3, %s1545_s26), 127  ;;  %vm559_vm0 = vcmask 261120   ;;  %vm908_vm1 = vcmask 523264   ;;  %vm1419_vm2 = vcmask 130048  }
   0xc   : > { %s1546_s27 = sshll.u32 %s2471_s26, 3 }
   0xd   : > { %s1958_s30 = scalar_lea.vmem %s2462_s0, %s1546_s27  ;;  %s2329_s25 = scalar_lea.vmem %s2469_s7, %s1546_s27 }
   0xe   : > { %v315_v0 = vld [vmem:[%s1958_s30 + $0x100] sm:$0xff]  ;;  %v316_v6 = vld [vmem:[%s1958_s30 + $0x108] sm:$0xff]  ;;  %v317_v12 = vld [vmem:[%s1958_s30 + $0x110] sm:$0xff] }
   0xf   : > { %v331_v1 = vld [vmem:[%s1958_s30 + $0x180] sm:$0xff]  ;;  %v332_v7 = vld [vmem:[%s1958_s30 + $0x188] sm:$0xff]  ;;  %v333_v13 = vld [vmem:[%s1958_s30 + $0x190] sm:$0xff] }
  0x10   : > { %v283_v2 = vld [vmem:[%s1958_s30] sm:$0xff]  ;;  %v1642_v3 = vpack.i.bf16 %v331_v1, %v315_v0  ;;  %v284_v8 = vld [vmem:[%s1958_s30 + $0x8] sm:$0xff]  ;;  %v1644_v10 = vpack.i.bf16 %v332_v7, %v316_v6  ;;  %v285_v14 = vld [vmem:[%s1958_s30 + $0x10] sm:$0xff]  ;;  %v1646_v16 = vpack.i.bf16 %v333_v13, %v317_v12  ;;  %v1901_v13 = vmov 0  }
  0x11   : > { %v299_v4 = vld [vmem:[%s1958_s30 + $0x80] sm:$0xff]  ;;  %v300_v9 = vld [vmem:[%s1958_s30 + $0x88] sm:$0xff]  ;;  %v301_v15 = vld [vmem:[%s1958_s30 + $0x90] sm:$0xff]  ;;  %1746 = vset.pattern.permute.xlu2 %v1901_v13 }
  0x12   : > { %v1694_v5 = vpack.i.bf16 %v299_v4, %v283_v2  ;;  %1643 = vxpose.xlu0.b32.start [1/16] (narrow) %v1642_v3, 32  ;;  %v1696_v11 = vpack.i.bf16 %v300_v9, %v284_v8  ;;  %v1698_v17 = vpack.i.bf16 %v301_v15, %v285_v14  ;;  %v318_v18 = vld [vmem:[%s1958_s30 + $0x118] sm:$0xff]  ;;  %v319_v24 = vld [vmem:[%s1958_s30 + $0x120] sm:$0xff]  ;;  %v320_v30 = vld [vmem:[%s1958_s30 + $0x128] sm:$0xff] }
  0x13   : > { %v334_v19 = vld [vmem:[%s1958_s30 + $0x198] sm:$0xff]  ;;  %v335_v25 = vld [vmem:[%s1958_s30 + $0x1a0] sm:$0xff]  ;;  %v336_v31 = vld [vmem:[%s1958_s30 + $0x1a8] sm:$0xff] }
  0x14   : > { %1695 = vxpose.xlu1.b32.start [1/16] (narrow) %v1694_v5, 32  ;;  %v286_v20 = vld [vmem:[%s1958_s30 + $0x18] sm:$0xff]  ;;  %v1648_v22 = vpack.i.bf16 %v334_v19, %v318_v18  ;;  %v287_v26 = vld [vmem:[%s1958_s30 + $0x20] sm:$0xff]  ;;  %v1650_v28 = vpack.i.bf16 %v335_v25, %v319_v24  ;;  %v288_v32 = vld [vmem:[%s1958_s30 + $0x28] sm:$0xff]  ;;  %v1652_v34 = vpack.i.bf16 %v336_v31, %v320_v30 }
  0x15   : > { %v302_v21 = vld [vmem:[%s1958_s30 + $0x98] sm:$0xff]  ;;  %v303_v27 = vld [vmem:[%s1958_s30 + $0xa0] sm:$0xff]  ;;  %v304_v33 = vld [vmem:[%s1958_s30 + $0xa8] sm:$0xff] }
  0x16   : > { %v1700_v23 = vpack.i.bf16 %v302_v21, %v286_v20  ;;  %v1702_v29 = vpack.i.bf16 %v303_v27, %v287_v26  ;;  %v1704_v35 = vpack.i.bf16 %v304_v33, %v288_v32  ;;  %v321_v36 = vld [vmem:[%s1958_s30 + $0x130] sm:$0xff]  ;;  %v322_v42 = vld [vmem:[%s1958_s30 + $0x138] sm:$0xff]  ;;  %v323_v48 = vld [vmem:[%s1958_s30 + $0x140] sm:$0xff] }
  0x17   : > { %v337_v37 = vld [vmem:[%s1958_s30 + $0x1b0] sm:$0xff]  ;;  %v338_v43 = vld [vmem:[%s1958_s30 + $0x1b8] sm:$0xff]  ;;  %v339_v49 = vld [vmem:[%s1958_s30 + $0x1c0] sm:$0xff] }
  0x18   : > { %v289_v38 = vld [vmem:[%s1958_s30 + $0x30] sm:$0xff]  ;;  %v1654_v40 = vpack.i.bf16 %v337_v37, %v321_v36  ;;  %v290_v44 = vld [vmem:[%s1958_s30 + $0x38] sm:$0xff]  ;;  %v1656_v46 = vpack.i.bf16 %v338_v43, %v322_v42  ;;  %v291_v50 = vld [vmem:[%s1958_s30 + $0x40] sm:$0xff]  ;;  %v1658_v52 = vpack.i.bf16 %v339_v49, %v323_v48 }
  0x19   : > { %v305_v39 = vld [vmem:[%s1958_s30 + $0xb0] sm:$0xff]  ;;  %v306_v45 = vld [vmem:[%s1958_s30 + $0xb8] sm:$0xff]  ;;  %v307_v51 = vld [vmem:[%s1958_s30 + $0xc0] sm:$0xff] }
  0x1a   : > { %1645 = vxpose.xlu0.b32.cont [2/16] (narrow) %v1644_v10, 32  ;;  %v1706_v41 = vpack.i.bf16 %v305_v39, %v289_v38  ;;  %v1708_v47 = vpack.i.bf16 %v306_v45, %v290_v44  ;;  %v1710_v53 = vpack.i.bf16 %v307_v51, %v291_v50  ;;  %v324_v54 = vld [vmem:[%s1958_s30 + $0x148] sm:$0xff]  ;;  %v325_v60 = vld [vmem:[%s1958_s30 + $0x150] sm:$0xff]  ;;  %v326_v2 = vld [vmem:[%s1958_s30 + $0x158] sm:$0xff] }
  0x1b   : > { %v340_v55 = vld [vmem:[%s1958_s30 + $0x1c8] sm:$0xff]  ;;  %v341_v61 = vld [vmem:[%s1958_s30 + $0x1d0] sm:$0xff]  ;;  %v342_v3 = vld [vmem:[%s1958_s30 + $0x1d8] sm:$0xff] }
  0x1c   : > { %1697 = vxpose.xlu1.b32.cont [2/16] (narrow) %v1696_v11, 32  ;;  %v292_v56 = vld [vmem:[%s1958_s30 + $0x48] sm:$0xff]  ;;  %v1660_v58 = vpack.i.bf16 %v340_v55, %v324_v54  ;;  %v293_v62 = vld [vmem:[%s1958_s30 + $0x50] sm:$0xff]  ;;  %v1662_v0 = vpack.i.bf16 %v341_v61, %v325_v60  ;;  %v294_v4 = vld [vmem:[%s1958_s30 + $0x58] sm:$0xff]  ;;  %v1664_v6 = vpack.i.bf16 %v342_v3, %v326_v2 }
  0x1d   : > { %v308_v57 = vld [vmem:[%s1958_s30 + $0xc8] sm:$0xff]  ;;  %v309_v63 = vld [vmem:[%s1958_s30 + $0xd0] sm:$0xff]  ;;  %v310_v5 = vld [vmem:[%s1958_s30 + $0xd8] sm:$0xff] }
  0x1e   : > { %v1712_v59 = vpack.i.bf16 %v308_v57, %v292_v56  ;;  %v1714_v1 = vpack.i.bf16 %v309_v63, %v293_v62  ;;  %v1716_v7 = vpack.i.bf16 %v310_v5, %v294_v4  ;;  %v327_v8 = vld [vmem:[%s1958_s30 + $0x160] sm:$0xff]  ;;  %v497_v10 = vld [vmem:[%s2466_s4 + $0x30] sm:$0xff]  ;;  %v344_v18 = vld [vmem:[%s1958_s30 + $0x1e8] sm:$0xff] }
  0x1f   : > { %v343_v9 = vld [vmem:[%s1958_s30 + $0x1e0] sm:$0xff]  ;;  %531 = vperm.xlu2 %1746, %v497_v10   ;;  %v296_v19 = vld [vmem:[%s1958_s30 + $0x68] sm:$0xff]  ;;  %v329_v24 = vld [vmem:[%s1958_s30 + $0x170] sm:$0xff] }
  0x20   : > { %v295_v11 = vld [vmem:[%s1958_s30 + $0x60] sm:$0xff]  ;;  %v1666_v14 = vpack.i.bf16 %v343_v9, %v327_v8  ;;  %v312_v20 = vld [vmem:[%s1958_s30 + $0xe8] sm:$0xff]  ;;  %v345_v25 = vld [vmem:[%s1958_s30 + $0x1f0] sm:$0xff] }
  0x21   : > { %v311_v12 = vld [vmem:[%s1958_s30 + $0xe0] sm:$0xff]  ;;  %v297_v26 = vld [vmem:[%s1958_s30 + $0x70] sm:$0xff]  ;;  %v496_v30 = vld [vmem:[%s2466_s4 + $0x28] sm:$0xff] }
  0x22   : > { %1647 = vxpose.xlu0.b32.cont [3/16] (narrow) %v1646_v16, 32  ;;  %v1718_v15 = vpack.i.bf16 %v311_v12, %v295_v11  ;;  %v498_v16 = vld [vmem:[%s2466_s4 + $0x38] sm:$0xff]  ;;  %v313_v27 = vld [vmem:[%s1958_s30 + $0xf0] sm:$0xff]  ;;  %v491_v39 = vld [vmem:[%s2466_s4] sm:$0xff] }
  0x23   : > { %v330_v31 = vld [vmem:[%s1958_s30 + $0x178] sm:$0xff]  ;;  %v493_v37 = vld [vmem:[%s2466_s4 + $0x10] sm:$0xff]  ;;  %v845_v49 = vld [vmem:[%s2467_s5 + $0x28] sm:$0xff] }
  0x24   : > { %1699 = vxpose.xlu1.b32.cont [3/16] (narrow) %v1698_v17, 32  ;;  %v328_v17 = vld [vmem:[%s1958_s30 + $0x168] sm:$0xff]  ;;  %v346_v32 = vld [vmem:[%s1958_s30 + $0x1f8] sm:$0xff]  ;;  %v842_v60 = vld [vmem:[%s2467_s5 + $0x10] sm:$0xff] }
  0x25   : > { %v1668_v21 = vpack.i.bf16 %v344_v18, %v328_v17  ;;  %v298_v33 = vld [vmem:[%s1958_s30 + $0x78] sm:$0xff]  ;;  %v840_v17 = vld [vmem:[%s2467_s5] sm:$0xff]  ;;  %v1624_v18 = vld [vmem:[%s2463_s1 + $0x8] sm:$0xff] }
  0x26   : > { %v494_v38 = vld [vmem:[%s2466_s4 + $0x18] sm:$0xff] }
  0x27   : > { %536 = vperm.xlu2 %1746, %v498_v16   ;;  %v847_v44 = vld [vmem:[%s2467_s5 + $0x38] sm:$0xff] }
  0x28   : > { %v843_v16 = vld [vmem:[%s2467_s5 + $0x18] sm:$0xff] }
  0x2a   : > { %1649 = vxpose.xlu0.b32.cont [4/16] (narrow) %v1648_v22, 32  ;;  %v1720_v22 = vpack.i.bf16 %v312_v20, %v296_v19  ;;  %v841_v19 = vld [vmem:[%s2467_s5 + $0x8] sm:$0xff]  ;;  %v1625_v20 = vld [vmem:[%s2463_s1 + $0x10] sm:$0xff] }
  0x2c   : > { %1701 = vxpose.xlu1.b32.cont [4/16] (narrow) %v1700_v23, 32  ;;  %v495_v23 = vld [vmem:[%s2466_s4 + $0x20] sm:$0xff] }
  0x2f   : > { %521 = vperm.xlu2 %1746, %v495_v23  }
  0x32   : > { %1651 = vxpose.xlu0.b32.cont [5/16] (narrow) %v1650_v28, 32  ;;  %v1670_v28 = vpack.i.bf16 %v345_v25, %v329_v24 }
  0x34   : > { %1703 = vxpose.xlu1.b32.cont [5/16] (narrow) %v1702_v29, 32  ;;  %v1722_v29 = vpack.i.bf16 %v313_v27, %v297_v26 }
  0x37   : > { %526 = vperm.xlu2 %1746, %v496_v30  }
  0x3a   : > { %1653 = vxpose.xlu0.b32.cont [6/16] (narrow) %v1652_v34, 32  ;;  %v314_v34 = vld [vmem:[%s1958_s30 + $0xf8] sm:$0xff] }
  0x3b   : > { %v1724_v36 = vpack.i.bf16 %v314_v34, %v298_v33 }
  0x3c   : > { %1705 = vxpose.xlu1.b32.cont [6/16] (narrow) %v1704_v35, 32  ;;  %v1672_v35 = vpack.i.bf16 %v346_v32, %v330_v31 }
  0x3f   : > { %511 = vperm.xlu2 %1746, %v493_v37  }
  0x42   : > { %1655 = vxpose.xlu0.b32.cont [7/16] (narrow) %v1654_v40, 32  ;;  %v492_v40 = vld [vmem:[%s2466_s4 + $0x8] sm:$0xff] }
  0x44   : > { %1707 = vxpose.xlu1.b32.cont [7/16] (narrow) %v1706_v41, 32  ;;  %v846_v41 = vld [vmem:[%s2467_s5 + $0x30] sm:$0xff] }
  0x47   : > { %516 = vperm.xlu2 %1746, %v494_v38  }
  0x4a   : > { %1657 = vxpose.xlu0.b32.cont [8/16] (narrow) %v1656_v46, 32  ;;  %v844_v46 = vld [vmem:[%s2467_s5 + $0x20] sm:$0xff] }
  0x4c   : > { %1709 = vxpose.xlu1.b32.cont [8/16] (narrow) %v1708_v47, 32 }
  0x4f   : > { %501 = vperm.xlu2 %1746, %v491_v39  }
  0x52   : > { %1659 = vxpose.xlu0.b32.cont [9/16] (narrow) %v1658_v52, 32 }
  0x54   : > { %1711 = vxpose.xlu1.b32.cont [9/16] (narrow) %v1710_v53, 32 }
  0x57   : > { %506 = vperm.xlu2 %1746, %v492_v40  }
  0x5a   : > { %1661 = vxpose.xlu0.b32.cont [10/16] (narrow) %v1660_v58, 32 }
  0x5c   : > { %1713 = vxpose.xlu1.b32.cont [10/16] (narrow) %v1712_v59, 32 }
  0x5f   : > { %880 = vperm.xlu2 %1746, %v846_v41  }
  0x62   : > { %1663 = vxpose.xlu0.b32.cont [11/16] (narrow) %v1662_v0, 32 }
  0x64   : > { %1715 = vxpose.xlu1.b32.cont [11/16] (narrow) %v1714_v1, 32 }
  0x67   : > { %885 = vperm.xlu2 %1746, %v847_v44  }
  0x6a   : > { %1665 = vxpose.xlu0.b32.cont [12/16] (narrow) %v1664_v6, 32 }
  0x6c   : > { %1717 = vxpose.xlu1.b32.cont [12/16] (narrow) %v1716_v7, 32 }
  0x6f   : > { %870 = vperm.xlu2 %1746, %v844_v46  }
  0x72   : > { %1667 = vxpose.xlu0.b32.cont [13/16] (narrow) %v1666_v14, 32 }
  0x74   : > { %1719 = vxpose.xlu1.b32.cont [13/16] (narrow) %v1718_v15, 32  ;;  %v1623_v15 = vld [vmem:[%s2463_s1] sm:$0xff] }
  0x77   : > { %875 = vperm.xlu2 %1746, %v845_v49  }
  0x7a   : > { %1669 = vxpose.xlu0.b32.cont [14/16] (narrow) %v1668_v21, 32  ;;  %v1626_v21 = vld [vmem:[%s2463_s1 + $0x18] sm:$0xff] }
  0x7c   : > { %1721 = vxpose.xlu1.b32.cont [14/16] (narrow) %v1720_v22, 32 }
  0x7f   : > { %860 = vperm.xlu2 %1746, %v842_v60  }
  0x82   : > { %1671 = vxpose.xlu0.b32.cont [15/16] (narrow) %v1670_v28, 32 }
  0x84   : > { %1723 = vxpose.xlu1.b32.cont [15/16] (narrow) %v1722_v29, 32 }
  0x87   : > { %865 = vperm.xlu2 %1746, %v843_v16  }
  0x8a   : > { %1673 = vxpose.xlu0.b32.end [16/16] (narrow) %v1672_v35, 32 }
  0x8c   : > { %1725 = vxpose.xlu1.b32.end [16/16] (narrow) %v1724_v36, 32 }
  0x8f   : > { %850 = vperm.xlu2 %1746, %v840_v17  }
  0x97   : > { %855 = vperm.xlu2 %1746, %v841_v19  }
  0xb6   : > { %v1674_v42 = vpop.trf.xlu0 }
  0xb7   : > { %v1675_v53 = vunpack.i.l.bf16 %v1674_v42  ;;  %v1678_v54 = vunpack.i.h.bf16 %v1674_v42 }
  0xb8   : > { %v1726_v43 = vpop.trf.xlu1 }
  0xb9   : > { %v1727_v10 = vunpack.i.l.bf16 %v1726_v43  ;;  %v1730_v11 = vunpack.i.h.bf16 %v1726_v43 }
  0xbe   : > { %v1679_v45 = vpop.trf.xlu0 }
  0xbf   : > { %v1680_v58 = vunpack.i.l.bf16 %v1679_v45  ;;  %v1683_v59 = vunpack.i.h.bf16 %v1679_v45 }
  0xc0   : > { %v1731_v47 = vpop.trf.xlu1 }
  0xc1   : > { %v1732_v6 = vunpack.i.l.bf16 %v1731_v47  ;;  %v1735_v7 = vunpack.i.h.bf16 %v1731_v47  ;;  %v485_v8 = vpack.c.bf16 %v1680_v58, %v1675_v53  ;;  %v486_v9 = vpack.c.bf16 %v1683_v59, %v1678_v54 }
  0xc3   : > { %v483_v12 = vpack.c.bf16 %v1732_v6, %v1727_v10  ;;  %v484_v14 = vpack.c.bf16 %v1735_v7, %v1730_v11 }
  0xc6   : > { %v1684_v48 = vpop.trf.xlu0 }
  0xc7   : > { %v1685_v51 = vunpack.i.l.bf16 %v1684_v48  ;;  %v1688_v52 = vunpack.i.h.bf16 %v1684_v48 }
  0xc8   : > { %v1736_v50 = vpop.trf.xlu1 }
  0xc9   : > { %v1737_v56 = vunpack.i.l.bf16 %v1736_v50  ;;  %v1740_v57 = vunpack.i.h.bf16 %v1736_v50 }
  0xce   : > { %v1689_v55 = vpop.trf.xlu0 }
  0xcf   : > { %v1690_v62 = vunpack.i.l.bf16 %v1689_v55  ;;  %v1693_v63 = vunpack.i.h.bf16 %v1689_v55 }
  0xd0   : > { %v1741_v61 = vpop.trf.xlu1 }
  0xd1   : > { %v1742_v0 = vunpack.i.l.bf16 %v1741_v61  ;;  %v1745_v1 = vunpack.i.h.bf16 %v1741_v61  ;;  %v489_v2 = vpack.c.bf16 %v1690_v62, %v1685_v51  ;;  %v490_v3 = vpack.c.bf16 %v1693_v63, %v1688_v52 }
  0xd3   : > { %v487_v4 = vpack.c.bf16 %v1742_v0, %v1737_v56  ;;  %v488_v5 = vpack.c.bf16 %v1745_v1, %v1740_v57  ;;  %636 = vmatpush.bf16.msra.mxu2 %v489_v2  ;;  %665 = vmatpush.bf16.msra.mxu3 %v490_v3 }
  0xd5   : > { %578 = vmatpush.bf16.msra.mxu0 %v487_v4  ;;  %607 = vmatpush.bf16.msra.mxu1 %v488_v5 }
  0xd7   : > { %637 = vmatpush.bf16.msra.mxu2 %v485_v8  ;;  %666 = vmatpush.bf16.msra.mxu3 %v486_v9 }
  0xd9   : > { %579 = vmatpush.bf16.msra.mxu0 %v483_v12  ;;  %608 = vmatpush.bf16.msra.mxu1 %v484_v14 }
  0xda   : > { %1573 = vmatmul.msk.bf16.vlgmr.msra.gmra.mxu2 %vm559_vm0, %v1623_v15  ;;  %1577 = vmatmul.msk.bf16.vlgmr.msra.gmra.mxu3 %vm559_vm0, %v1623_v15 }
  0xdc   : > { %1565 = vmatmul.msk.bf16.vlgmr.msra.gmra.mxu0 %vm559_vm0, %v1623_v15  ;;  %1569 = vmatmul.msk.bf16.vlgmr.msra.gmra.mxu1 %vm559_vm0, %v1623_v15 }
  0xdf   : > { %1748 = vset.pattern.permute.xlu1 %v1901_v13 }
  0xea   : > { %1574 = vmatmul.msk.bf16.gmra.mxu2 %vm559_vm0, %v1624_v18  ;;  %1578 = vmatmul.msk.bf16.gmra.mxu3 %vm559_vm0, %v1624_v18 }
  0xec   : > { %1566 = vmatmul.msk.bf16.gmra.mxu0 %vm559_vm0, %v1624_v18  ;;  %1570 = vmatmul.msk.bf16.gmra.mxu1 %vm559_vm0, %v1624_v18 }
  0xf1   : > { %1747 = vset.pattern.permute.xlu0 %v1901_v13  ;;  %v2103_v13 = vpop.permute.xlu2 %531 }
  0xf9   : > { %v2105_v22 = vpop.permute.xlu2 %536 }
  0xfa   : > { %1575 = vmatmul.msk.bf16.gmra.mxu2 %vm559_vm0, %v1625_v20  ;;  %1579 = vmatmul.msk.bf16.gmra.mxu3 %vm559_vm0, %v1625_v20 }
  0xfc   : > { %1567 = vmatmul.msk.bf16.gmra.mxu0 %vm559_vm0, %v1625_v20  ;;  %1571 = vmatmul.msk.bf16.gmra.mxu1 %vm559_vm0, %v1625_v20 }
 0x101   : > { %v2107_v23 = vpop.permute.xlu2 %521 }
 0x109   : > { %v2109_v24 = vpop.permute.xlu2 %526 }
 0x10a   : > { %1576 = vmatmul.msk.bf16.gmra.mxu2 %vm559_vm0, %v1626_v21  ;;  %1580 = vmatmul.msk.bf16.gmra.mxu3 %vm559_vm0, %v1626_v21 }
 0x10c   : > { %1568 = vmatmul.msk.bf16.gmra.mxu0 %vm559_vm0, %v1626_v21  ;;  %1572 = vmatmul.msk.bf16.gmra.mxu1 %vm559_vm0, %v1626_v21 }
 0x111   : > { %v512_v27 = vpop.permute.xlu2 %511 }
 0x119   : > { %v2111_v32 = vpop.permute.xlu2 %516 }
 0x121   : > { %v502_v39 = vpop.permute.xlu2 %501 }
 0x129   : > { %v507_v49 = vpop.permute.xlu2 %506 }
 0x159   : > { %v581_v25 = vpop.f32.mrf.mxu0  ;;  %v610_v26 = vpop.f32.mrf.mxu1 }
 0x15a   : > { %v582_v44 = vadd.f32 %v581_v25, %v502_v39  ;;  %v611_v45 = vadd.f32 %v610_v26, %v502_v39 }
 0x15c   : > { %v688_v51 = vmul.f32 0.5, %v582_v44  ;;  %v689_v53 = vmul.f32 0.5, %v611_v45 }
 0x15d   : > { %v639_v28 = vpop.f32.mrf.mxu2  ;;  %v668_v29 = vpop.f32.mrf.mxu3 }
 0x15e   : > { %v640_v46 = vadd.f32 %v639_v28, %v502_v39  ;;  %v669_v50 = vadd.f32 %v668_v29, %v502_v39  ;;  %1749 = vtanh.f32 %v688_v51 }
 0x15f   : > { %1751 = vtanh.f32 %v689_v53 }
 0x160   : > { %v690_v55 = vmul.f32 0.5, %v640_v46  ;;  %v691_v57 = vmul.f32 0.5, %v669_v50 }
 0x161   : > { %v583_v30 = vpop.f32.mrf.mxu0  ;;  %v612_v31 = vpop.f32.mrf.mxu1 }
 0x162   : > { %v584_v52 = vadd.f32 %v583_v30, %v507_v49  ;;  %v613_v54 = vadd.f32 %v612_v31, %v507_v49  ;;  %1753 = vtanh.f32 %v690_v55 }
 0x163   : > { %1755 = vtanh.f32 %v691_v57 }
 0x164   : > { %v692_v61 = vmul.f32 0.5, %v584_v52  ;;  %v693_v63 = vmul.f32 0.5, %v613_v54  ;;  %v2119_v11 = vpop.eup %1749 }
 0x165   : > { %v641_v33 = vpop.f32.mrf.mxu2  ;;  %v670_v34 = vpop.f32.mrf.mxu3 }
 0x166   : > { %v642_v56 = vadd.f32 %v641_v33, %v507_v49  ;;  %v671_v58 = vadd.f32 %v670_v34, %v507_v49  ;;  %1757 = vtanh.f32 %v692_v61  ;;  %v2122_v15 = vpop.eup %1751 }
 0x167   : > { %1759 = vtanh.f32 %v693_v63 }
 0x168   : > { %v694_v1 = vmul.f32 0.5, %v642_v56  ;;  %v695_v5 = vmul.f32 0.5, %v671_v58  ;;  %v2125_v20 = vpop.eup %1753 }
 0x169   : > { %v586_v35 = vpop.f32.mrf.mxu0  ;;  %v615_v36 = vpop.f32.mrf.mxu1 }
 0x16a   : > { %v587_v62 = vadd.f32 %v586_v35, %v512_v27  ;;  %v616_v0 = vadd.f32 %v615_v36, %v512_v27  ;;  %1761 = vtanh.f32 %v694_v1  ;;  %v2128_v26 = vpop.eup %1755 }
 0x16b   : > { %1763 = vtanh.f32 %v695_v5 }
 0x16c   : > { %v696_v7 = vmul.f32 0.5, %v587_v62  ;;  %v697_v9 = vmul.f32 0.5, %v616_v0  ;;  %v2131_v29 = vpop.eup %1757 }
 0x16d   : > { %v644_v37 = vpop.f32.mrf.mxu2  ;;  %v673_v38 = vpop.f32.mrf.mxu3 }
 0x16e   : > { %v645_v2 = vadd.f32 %v644_v37, %v512_v27  ;;  %v674_v6 = vadd.f32 %v673_v38, %v512_v27  ;;  %1765 = vtanh.f32 %v696_v7  ;;  %v2134_v35 = vpop.eup %1759 }
 0x16f   : > { %1767 = vtanh.f32 %v697_v9 }
 0x170   : > { %v698_v12 = vmul.f32 0.5, %v645_v2  ;;  %v699_v16 = vmul.f32 0.5, %v674_v6  ;;  %v2137_v38 = vpop.eup %1761 }
 0x171   : > { %v588_v40 = vpop.f32.mrf.mxu0  ;;  %v617_v41 = vpop.f32.mrf.mxu1 }
 0x172   : > { %v589_v8 = vadd.f32 %v588_v40, %v2111_v32  ;;  %v618_v10 = vadd.f32 %v617_v41, %v2111_v32  ;;  %1769 = vtanh.f32 %v698_v12  ;;  %v2140_v40 = vpop.eup %1763 }
 0x173   : > { %1771 = vtanh.f32 %v699_v16 }
 0x174   : > { %v700_v21 = vmul.f32 0.5, %v589_v8  ;;  %v701_v27 = vmul.f32 0.5, %v618_v10  ;;  %v2143_v45 = vpop.eup %1765 }
 0x175   : > { %v2113_v42 = vpop.f32.mrf.mxu2  ;;  %v2115_v43 = vpop.f32.mrf.mxu3 }
 0x176   : > { %1773 = vtanh.f32 %v700_v21  ;;  %v647_v7 = vadd.f32 %v2113_v42, %v2111_v32  ;;  %v676_v9 = vadd.f32 %v2115_v43, %v2111_v32  ;;  %v2169_v43 = vmul.f32 0.5, %v2119_v11 }
 0x177   : > { %1775 = vtanh.f32 %v701_v27 }
 0x179   : > { %v591_v47 = vpop.f32.mrf.mxu0  ;;  %v620_v48 = vpop.f32.mrf.mxu1 }
 0x17a   : > { %v592_v14 = vadd.f32 %v591_v47, %v2107_v23  ;;  %v621_v17 = vadd.f32 %v620_v48, %v2107_v23  ;;  %v2145_v47 = vpop.eup %1767 }
 0x17b   : > { %v2147_v51 = vpop.eup %1769 }
 0x17c   : > { %v704_v30 = vmul.f32 0.5, %v592_v14  ;;  %v705_v36 = vmul.f32 0.5, %v621_v17  ;;  %v2150_v54 = vpop.eup %1771  ;;  %v753_v17 = vmul.f32 0.5, %v2122_v15  ;;  %v2172_v15 = vmul.f32 0.5, %v2131_v29 }
 0x17d   : > { %v649_v59 = vpop.f32.mrf.mxu2  ;;  %v678_v60 = vpop.f32.mrf.mxu3  ;;  %v761_v29 = vmul.f32 0.5, %v2145_v47 }
 0x17e   : > { %v650_v25 = vadd.f32 %v649_v59, %v2107_v23  ;;  %v679_v28 = vadd.f32 %v678_v60, %v2107_v23  ;;  %1777 = vtanh.f32 %v704_v30  ;;  %v1774_v57 = vpop.eup %1773  ;;  %v703_v30 = vmul.f32 0.5, %v676_v9 }
 0x17f   : > { %1779 = vtanh.f32 %v705_v36  ;;  %v1776_v62 = vpop.eup %1775  ;;  %v2177_v36 = vmul.f32 0.5, %v2134_v35 }
 0x180   : > { %v706_v39 = vmul.f32 0.5, %v650_v25  ;;  %v707_v41 = vmul.f32 0.5, %v679_v28  ;;  %v702_v25 = vmul.f32 0.5, %v647_v7 }
 0x181   : > { %v593_v3 = vpop.f32.mrf.mxu0  ;;  %v622_v4 = vpop.f32.mrf.mxu1 }
 0x182   : > { %v594_v31 = vadd.f32 %v593_v3, %v2109_v24  ;;  %v623_v44 = vadd.f32 %v622_v4, %v2109_v24  ;;  %1781 = vtanh.f32 %v706_v39 }
 0x183   : > { %1783 = vtanh.f32 %v707_v41 }
 0x184   : > { %v708_v46 = vmul.f32 0.5, %v594_v31  ;;  %v709_v55 = vmul.f32 0.5, %v623_v44  ;;  %v1778_v2 = vpop.eup %1777 }
 0x185   : > { %v651_v18 = vpop.f32.mrf.mxu2  ;;  %v680_v19 = vpop.f32.mrf.mxu3 }
 0x186   : > { %1785 = vtanh.f32 %v708_v46  ;;  %v652_v58 = vadd.f32 %v651_v18, %v2109_v24  ;;  %v681_v63 = vadd.f32 %v680_v19, %v2109_v24  ;;  %v1780_v3 = vpop.eup %1779 }
 0x188   : > { %v2157_v6 = vpop.eup %1781  ;;  %v710_v8 = vmul.f32 0.5, %v652_v58  ;;  %v711_v10 = vmul.f32 0.5, %v681_v63 }
 0x189   : > { %v596_v33 = vpop.f32.mrf.mxu0  ;;  %v625_v34 = vpop.f32.mrf.mxu1 }
 0x18a   : > { %v597_v37 = vadd.f32 %v596_v33, %v2103_v13  ;;  %v626_v23 = vadd.f32 %v625_v34, %v2103_v13  ;;  %v2161_v24 = vpop.eup %1783 }
 0x18c   : > { %v712_v48 = vmul.f32 0.5, %v597_v37  ;;  %v713_v52 = vmul.f32 0.5, %v626_v23  ;;  %v1786_v16 = vpop.eup %1785  ;;  %v760_v37 = vmul.f32 0.5, %v2143_v45  ;;  %v764_v23 = vmul.f32 0.5, %v1774_v57 }
 0x18d   : > { %v654_v49 = vpop.f32.mrf.mxu2  ;;  %v683_v50 = vpop.f32.mrf.mxu3  ;;  %v772_v41 = vmul.f32 0.5, %v1786_v16  ;;  %v769_v45 = vmul.f32 0.5, %v1780_v3 }
 0x18e   : > { %v655_v53 = vadd.f32 %v654_v49, %v2103_v13  ;;  %v684_v56 = vadd.f32 %v683_v50, %v2103_v13  ;;  %1787 = vtanh.f32 %v712_v48 }
 0x18f   : > { %1789 = vtanh.f32 %v713_v52  ;;  %v765_v52 = vmul.f32 0.5, %v1776_v62 }
 0x190   : > { %v714_v59 = vmul.f32 0.5, %v655_v53  ;;  %1791 = vtanh.f32 %v709_v55  ;;  %v715_v13 = vmul.f32 0.5, %v684_v56  ;;  %v768_v53 = vmul.f32 0.5, %v1778_v2 }
 0x191   : > { %v598_v60 = vpop.f32.mrf.mxu0  ;;  %v627_v61 = vpop.f32.mrf.mxu1 }
 0x192   : > { %v599_v0 = vadd.f32 %v598_v60, %v2105_v22  ;;  %v628_v1 = vadd.f32 %v627_v61, %v2105_v22  ;;  %1793 = vtanh.f32 %v714_v59  ;;  %v800_v9 = vadd.f32 0.5, %v768_v53 }
 0x194   : > { %v716_v4 = vmul.f32 0.5, %v599_v0  ;;  %v717_v5 = vmul.f32 0.5, %v628_v1  ;;  %v1788_v42 = vpop.eup %1787  ;;  %v804_v0 = vadd.f32 0.5, %v772_v41  ;;  %v796_v1 = vadd.f32 0.5, %v764_v23 }
 0x195   : > { %v656_v12 = vpop.f32.mrf.mxu2  ;;  %v685_v14 = vpop.f32.mrf.mxu3  ;;  %v776_v33 = vmul.f32 0.5, %v1788_v42  ;;  %v763_v23 = vmul.f32 0.5, %v2150_v54 }
 0x196   : > { %1795 = vtanh.f32 %v716_v4  ;;  %v657_v18 = vadd.f32 %v656_v12, %v2105_v22  ;;  %v686_v19 = vadd.f32 %v685_v14, %v2105_v22  ;;  %v1790_v21 = vpop.eup %1789  ;;  %v2174_v22 = vadd.f32 0.5, %v753_v17 }
 0x197   : > { %1797 = vtanh.f32 %v717_v5  ;;  %v1792_v32 = vpop.eup %1791  ;;  %v777_v39 = vmul.f32 0.5, %v1790_v21  ;;  %v808_v35 = vadd.f32 0.5, %v776_v33  ;;  %v770_v12 = vmul.f32 0.5, %v2157_v6 }
 0x198   : > { %1799 = vtanh.f32 %v715_v13  ;;  %v718_v27 = vmul.f32 0.5, %v657_v18  ;;  %v719_v28 = vmul.f32 0.5, %v686_v19  ;;  %v1794_v31 = vpop.eup %1793  ;;  %v773_v48 = vmul.f32 0.5, %v1792_v32 }
 0x199   : > { %1801 = vtanh.f32 %v710_v8  ;;  %v778_v58 = vmul.f32 0.5, %v1794_v31  ;;  %v809_v59 = vadd.f32 0.5, %v777_v39  ;;  %v801_v14 = vadd.f32 0.5, %v769_v45 }
 0x19a   : > { %1803 = vtanh.f32 %v711_v10  ;;  %v805_v7 = vadd.f32 0.5, %v773_v48  ;;  %v797_v10 = vadd.f32 0.5, %v765_v52  ;;  %v771_v18 = vmul.f32 0.5, %v2161_v24 }
 0x19b   : > { %1805 = vtanh.f32 %v718_v27  ;;  %v810_v16 = vadd.f32 0.5, %v778_v58  ;;  %v832_v19 = vpack.c.bf16 %v804_v0, %v800_v9  ;;  %v792_v33 = vadd.f32 0.5, %v760_v37 }
 0x19c   : > { %v1796_v34 = vpop.eup %1795  ;;  %1807 = vtanh.f32 %v719_v28  ;;  %v833_v27 = vpack.c.bf16 %v805_v7, %v801_v14  ;;  %v762_v6 = vmul.f32 0.5, %v2147_v51  ;;  %v793_v39 = vadd.f32 0.5, %v761_v29 }
 0x19d   : > { %v1798_v11 = vpop.eup %1797  ;;  %1809 = vtanh.f32 %v702_v25  ;;  %v780_v44 = vmul.f32 0.5, %v1796_v34  ;;  %v788_v24 = vadd.f32 0.5, %v2172_v15  ;;  %v828_v41 = vpack.c.bf16 %v796_v1, %v792_v33 }
 0x19e   : > { %v1800_v46 = vpop.eup %1799  ;;  %1811 = vtanh.f32 %v703_v30  ;;  %v781_v49 = vmul.f32 0.5, %v1798_v11  ;;  %v802_v11 = vadd.f32 0.5, %v770_v12  ;;  %v758_v48 = vmul.f32 0.5, %v2137_v38 }
 0x19f   : > { %v1802_v50 = vpop.eup %1801  ;;  %v812_v55 = vadd.f32 0.5, %v780_v44  ;;  %v779_v61 = vmul.f32 0.5, %v1800_v46  ;;  %v803_v44 = vadd.f32 0.5, %v771_v18  ;;  %v789_v46 = vadd.f32 0.5, %v2177_v36 }
 0x1a0   : > { %v1804_v56 = vpop.eup %1803  ;;  %v813_v60 = vadd.f32 0.5, %v781_v49  ;;  %v774_v47 = vmul.f32 0.5, %v1802_v50  ;;  %v829_v49 = vpack.c.bf16 %v797_v10, %v793_v39  ;;  %v759_v51 = vmul.f32 0.5, %v2140_v40  ;;  %v1627_v40 = vld [vmem:[%s2464_s2] sm:$0xff] }
 0x1a1   : > { %v1806_v57 = vpop.eup %1805  ;;  %v836_v63 = vpack.c.bf16 %v812_v55, %v808_v35  ;;  %v775_v62 = vmul.f32 0.5, %v1804_v56  ;;  %v811_v42 = vadd.f32 0.5, %v779_v61  ;;  %v784_v29 = vadd.f32 0.5, %v2169_v43  ;;  %v1630_v61 = vld [vmem:[%s2464_s2 + $0x18] sm:$0xff] }
 0x1a2   : > { %v1808_v13 = vpop.eup %1807  ;;  %v782_v4 = vmul.f32 0.5, %v1806_v57  ;;  %v837_v5 = vpack.c.bf16 %v813_v60, %v809_v59  ;;  %v806_v32 = vadd.f32 0.5, %v774_v47  ;;  %v754_v15 = vmul.f32 0.5, %v2125_v20  ;;  %v1628_v60 = vld [vmem:[%s2464_s2 + $0x8] sm:$0xff]  ;;  %v1629_v57 = vld [vmem:[%s2464_s2 + $0x10] sm:$0xff] }
 0x1a3   : > { %v1810_v8 = vpop.eup %1809  ;;  %v783_v2 = vmul.f32 0.5, %v1808_v13  ;;  %925 = vmatpush.bf16.msrb.mxu0 %v836_v63  ;;  %v807_v34 = vadd.f32 0.5, %v775_v62  ;;  %v794_v54 = vadd.f32 0.5, %v762_v6  ;;  %v755_v35 = vmul.f32 0.5, %v2128_v26  ;;  %v2221_v63 = vpop.permute.xlu2 %880 }
 0x1a4   : > { %v1812_v3 = vpop.eup %1811  ;;  %954 = vmatpush.bf16.msrb.mxu1 %v837_v5  ;;  %v814_v17 = vadd.f32 0.5, %v782_v4  ;;  %v766_v25 = vmul.f32 0.5, %v1810_v8  ;;  %v834_v37 = vpack.c.bf16 %v806_v32, %v802_v11  ;;  %v824_v36 = vpack.c.bf16 %v788_v24, %v784_v29 }
 0x1a5   : > { %v815_v21 = vadd.f32 0.5, %v783_v2  ;;  %v767_v30 = vmul.f32 0.5, %v1812_v3  ;;  %v835_v52 = vpack.c.bf16 %v807_v34, %v803_v44  ;;  %v795_v38 = vadd.f32 0.5, %v763_v23 }
 0x1a6   : > { %v838_v28 = vpack.c.bf16 %v814_v17, %v810_v16  ;;  %v798_v50 = vadd.f32 0.5, %v766_v25  ;;  %v825_v55 = vpack.c.bf16 %v789_v46, %v2174_v22  ;;  %v790_v45 = vadd.f32 0.5, %v758_v48 }
 0x1a7   : > { %926 = vmatpush.bf16.msrb.mxu0 %v832_v19  ;;  %v839_v31 = vpack.c.bf16 %v815_v21, %v811_v42  ;;  %v799_v53 = vadd.f32 0.5, %v767_v30  ;;  %v791_v20 = vadd.f32 0.5, %v759_v51  ;;  %v786_v58 = vadd.f32 0.5, %v754_v15 }
 0x1a8   : > { %955 = vmatpush.bf16.msrb.mxu1 %v833_v27  ;;  %983 = vmatpush.bf16.msrb.mxu2 %v838_v28  ;;  %v830_v56 = vpack.c.bf16 %v798_v50, %v794_v54  ;;  %v787_v26 = vadd.f32 0.5, %v755_v35 }
 0x1a9   : > { %1012 = vmatpush.bf16.msrb.mxu3 %v839_v31  ;;  %v831_v43 = vpack.c.bf16 %v799_v53, %v795_v38  ;;  %v826_v59 = vpack.c.bf16 %v790_v45, %v786_v58 }
 0x1aa   : > { %v827_v22 = vpack.c.bf16 %v791_v20, %v787_v26 }
 0x1ab   : > { %927 = vmatpush.bf16.msrb.mxu0 %v828_v41  ;;  %v2223_v0 = vpop.permute.xlu2 %885 }
 0x1ac   : > { %956 = vmatpush.bf16.msrb.mxu1 %v829_v49  ;;  %984 = vmatpush.bf16.msrb.mxu2 %v834_v37 }
 0x1ad   : > { %1013 = vmatpush.bf16.msrb.mxu3 %v835_v52 }
 0x1af   : > { %928 = vmatpush.bf16.msrb.mxu0 %v824_v36 }
 0x1b0   : > { %957 = vmatpush.bf16.msrb.mxu1 %v825_v55  ;;  %985 = vmatpush.bf16.msrb.mxu2 %v830_v56 }
 0x1b1   : > { %1014 = vmatpush.bf16.msrb.mxu3 %v831_v43 }
 0x1b2   : > { %1597 = vmatmul.msk.bf16.vlgmr.msrb.gmra.mxu0 %vm908_vm1, %v1627_v40 }
 0x1b3   : > { %1601 = vmatmul.msk.bf16.vlgmr.msrb.gmra.mxu1 %vm908_vm1, %v1627_v40  ;;  %v2225_v1 = vpop.permute.xlu2 %870 }
 0x1b4   : > { %986 = vmatpush.bf16.msrb.mxu2 %v826_v59 }
 0x1b5   : > { %1015 = vmatpush.bf16.msrb.mxu3 %v827_v22 }
 0x1b7   : > { %1605 = vmatmul.msk.bf16.vlgmr.msrb.gmra.mxu2 %vm908_vm1, %v1627_v40 }
 0x1b8   : > { %1609 = vmatmul.msk.bf16.vlgmr.msrb.gmra.mxu3 %vm908_vm1, %v1627_v40 }
 0x1bb   : > { %v2227_v13 = vpop.permute.xlu2 %875 }
 0x1c2   : > { %1598 = vmatmul.msk.bf16.gmra.mxu0 %vm908_vm1, %v1628_v60 }
 0x1c3   : > { %1602 = vmatmul.msk.bf16.gmra.mxu1 %vm908_vm1, %v1628_v60  ;;  %v2229_v8 = vpop.permute.xlu2 %860 }
 0x1c7   : > { %1606 = vmatmul.msk.bf16.gmra.mxu2 %vm908_vm1, %v1628_v60 }
 0x1c8   : > { %1610 = vmatmul.msk.bf16.gmra.mxu3 %vm908_vm1, %v1628_v60 }
 0x1cb   : > { %v2233_v12 = vpop.permute.xlu2 %865 }
 0x1d2   : > { %1599 = vmatmul.msk.bf16.gmra.mxu0 %vm908_vm1, %v1629_v57 }
 0x1d3   : > { %1603 = vmatmul.msk.bf16.gmra.mxu1 %vm908_vm1, %v1629_v57  ;;  %v851_v42 = vpop.permute.xlu2 %850 }
 0x1d7   : > { %1607 = vmatmul.msk.bf16.gmra.mxu2 %vm908_vm1, %v1629_v57 }
 0x1d8   : > { %1611 = vmatmul.msk.bf16.gmra.mxu3 %vm908_vm1, %v1629_v57 }
 0x1db   : > { %v2245_v30 = vpop.permute.xlu2 %855 }
 0x1e2   : > { %1600 = vmatmul.msk.bf16.gmra.mxu0 %vm908_vm1, %v1630_v61 }
 0x1e3   : > { %1604 = vmatmul.msk.bf16.gmra.mxu1 %vm908_vm1, %v1630_v61 }
 0x1e7   : > { %1608 = vmatmul.msk.bf16.gmra.mxu2 %vm908_vm1, %v1630_v61 }
 0x1e8   : > { %1612 = vmatmul.msk.bf16.gmra.mxu3 %vm908_vm1, %v1630_v61 }
 0x22f   : > { %v930_v47 = vpop.f32.mrf.mxu0 }
 0x230   : > { %v959_v4 = vpop.f32.mrf.mxu1  ;;  %v931_v32 = vadd.f32 %v930_v47, %v851_v42 }
 0x231   : > { %v960_v31 = vadd.f32 %v959_v4, %v851_v42 }
 0x232   : > { %v1037_v11 = vmul.f32 0.5, %v931_v32 }
 0x233   : > { %v1038_v41 = vmul.f32 0.5, %v960_v31 }
 0x234   : > { %1813 = vtanh.f32 %v1037_v11 }
 0x235   : > { %1815 = vtanh.f32 %v1038_v41 }
 0x237   : > { %v932_v5 = vpop.f32.mrf.mxu0 }
 0x238   : > { %v961_v7 = vpop.f32.mrf.mxu1  ;;  %v933_v34 = vadd.f32 %v932_v5, %v2245_v30 }
 0x239   : > { %v962_v39 = vadd.f32 %v961_v7, %v2245_v30 }
 0x23a   : > { %v988_v62 = vpop.f32.mrf.mxu2  ;;  %v1041_v48 = vmul.f32 0.5, %v933_v34  ;;  %v1814_v26 = vpop.eup %1813 }
 0x23b   : > { %v1017_v2 = vpop.f32.mrf.mxu3  ;;  %v989_v24 = vadd.f32 %v988_v62, %v851_v42  ;;  %v1042_v37 = vmul.f32 0.5, %v962_v39  ;;  %v1816_v60 = vpop.eup %1815  ;;  %v2261_v7 = vmul.f32 0.5, %v1814_v26 }
 0x23c   : > { %v1018_v44 = vadd.f32 %v1017_v2, %v851_v42  ;;  %1817 = vtanh.f32 %v1041_v48 }
 0x23d   : > { %v1039_v51 = vmul.f32 0.5, %v989_v24  ;;  %1819 = vtanh.f32 %v1042_v37 }
 0x23e   : > { %v1040_v29 = vmul.f32 0.5, %v1018_v44 }
 0x23f   : > { %v935_v9 = vpop.f32.mrf.mxu0  ;;  %1821 = vtanh.f32 %v1039_v51 }
 0x240   : > { %v964_v10 = vpop.f32.mrf.mxu1  ;;  %v936_v49 = vadd.f32 %v935_v9, %v2229_v8  ;;  %1823 = vtanh.f32 %v1040_v29 }
 0x241   : > { %v965_v50 = vadd.f32 %v964_v10, %v2229_v8  ;;  %v2265_v10 = vmul.f32 0.5, %v1816_v60 }
 0x242   : > { %v2231_v3 = vpop.f32.mrf.mxu2  ;;  %v1045_v54 = vmul.f32 0.5, %v936_v49  ;;  %v1818_v47 = vpop.eup %1817 }
 0x243   : > { %v2235_v14 = vpop.f32.mrf.mxu3  ;;  %v1046_v38 = vmul.f32 0.5, %v965_v50  ;;  %v2259_v5 = vpop.eup %1819  ;;  %v2287_v50 = vmul.f32 0.5, %v1818_v47 }
 0x244   : > { %1825 = vtanh.f32 %v1045_v54 }
 0x245   : > { %1827 = vtanh.f32 %v1046_v38  ;;  %v2263_v9 = vpop.eup %1821 }
 0x247   : > { %v937_v16 = vpop.f32.mrf.mxu0 }
 0x248   : > { %v966_v17 = vpop.f32.mrf.mxu1  ;;  %v938_v59 = vadd.f32 %v937_v16, %v2233_v12 }
 0x249   : > { %v967_v57 = vadd.f32 %v966_v17, %v2233_v12 }
 0x24a   : > { %v2237_v18 = vpop.f32.mrf.mxu2  ;;  %v1049_v16 = vmul.f32 0.5, %v938_v59 }
 0x24b   : > { %v2239_v19 = vpop.f32.mrf.mxu3  ;;  %v994_v34 = vadd.f32 %v2237_v18, %v2229_v8 }
 0x24c   : > { %v1023_v41 = vadd.f32 %v2239_v19, %v2229_v8 }
 0x24e   : > { %v2297_v54 = vmul.f32 0.5, %v1023_v41 }
 0x24f   : > { %v940_v21 = vpop.f32.mrf.mxu0 }
 0x250   : > { %v969_v25 = vpop.f32.mrf.mxu1  ;;  %v941_v52 = vadd.f32 %v940_v21, %v2225_v1  ;;  %v2268_v21 = vpop.eup %1823 }
 0x251   : > { %v970_v53 = vadd.f32 %v969_v25, %v2225_v1  ;;  %v1050_v25 = vmul.f32 0.5, %v967_v57 }
 0x252   : > { %v2241_v27 = vpop.f32.mrf.mxu2  ;;  %v1053_v56 = vmul.f32 0.5, %v941_v52  ;;  %v991_v52 = vadd.f32 %v2231_v3, %v2245_v30 }
 0x253   : > { %v2243_v28 = vpop.f32.mrf.mxu3  ;;  %v1054_v43 = vmul.f32 0.5, %v970_v53  ;;  %v996_v37 = vadd.f32 %v2241_v27, %v2233_v12 }
 0x254   : > { %1829 = vtanh.f32 %v1053_v56  ;;  %v1025_v18 = vadd.f32 %v2243_v28, %v2233_v12  ;;  %v1020_v12 = vadd.f32 %v2235_v14, %v2245_v30  ;;  %v1184_v14 = vld [vmem:[%s2468_s6 + $0x8] sm:$0xff] }
 0x255   : > { %1831 = vtanh.f32 %v1054_v43  ;;  %1192 = vperm.xlu1 %1748, %v1184_v14  }
 0x257   : > { %v942_v33 = vpop.f32.mrf.mxu0 }
 0x258   : > { %v971_v6 = vpop.f32.mrf.mxu1  ;;  %v943_v40 = vadd.f32 %v942_v33, %v2227_v13  ;;  %v2272_v33 = vpop.eup %1825 }
 0x259   : > { %v972_v20 = vadd.f32 %v971_v6, %v2227_v13  ;;  %v2277_v24 = vpop.eup %1827 }
 0x25a   : > { %v998_v23 = vpop.f32.mrf.mxu2  ;;  %v1057_v4 = vmul.f32 0.5, %v943_v40  ;;  %v1830_v49 = vpop.eup %1829 }
 0x25b   : > { %v1027_v46 = vpop.f32.mrf.mxu3  ;;  %v1058_v62 = vmul.f32 0.5, %v972_v20  ;;  %v999_v32 = vadd.f32 %v998_v23, %v2225_v1  ;;  %v1117_v3 = vmul.f32 0.5, %v1830_v49  ;;  %v1109_v49 = vmul.f32 0.5, %v2272_v33 }
 0x25c   : > { %v1028_v6 = vadd.f32 %v1027_v46, %v2225_v1  ;;  %v1832_v46 = vpop.eup %1831 }
 0x25d   : > { %v1055_v51 = vmul.f32 0.5, %v999_v32 }
 0x25e   : > { %v1056_v29 = vmul.f32 0.5, %v1028_v6 }
 0x25f   : > { %v945_v15 = vpop.f32.mrf.mxu0 }
 0x260   : > { %v946_v35 = vadd.f32 %v945_v15, %v2221_v63  ;;  %v974_v36 = vpop.f32.mrf.mxu1 }
 0x261   : > { %v975_v55 = vadd.f32 %v974_v36, %v2221_v63  ;;  %v1052_v36 = vmul.f32 0.5, %v1025_v18  ;;  %v1149_v18 = vadd.f32 0.5, %v1117_v3 }
 0x262   : > { %v1000_v45 = vpop.f32.mrf.mxu2  ;;  %v1061_v22 = vmul.f32 0.5, %v946_v35  ;;  %v1051_v35 = vmul.f32 0.5, %v996_v37  ;;  %v1043_v37 = vmul.f32 0.5, %v991_v52 }
 0x263   : > { %v1029_v58 = vpop.f32.mrf.mxu3  ;;  %v1062_v61 = vmul.f32 0.5, %v975_v55  ;;  %v1001_v8 = vadd.f32 %v1000_v45, %v2227_v13  ;;  %v1118_v45 = vmul.f32 0.5, %v1832_v46  ;;  %v1110_v46 = vmul.f32 0.5, %v2277_v24 }
 0x264   : > { %1833 = vtanh.f32 %v1061_v22  ;;  %v1030_v27 = vadd.f32 %v1029_v58, %v2227_v13  ;;  %v1183_v13 = vld [vmem:[%s2468_s6] sm:$0xff]  ;;  %v1137_v24 = vadd.f32 0.5, %v2287_v50 }
 0x265   : > { %1835 = vtanh.f32 %v1062_v61  ;;  %v1059_v40 = vmul.f32 0.5, %v1001_v8  ;;  %1187 = vperm.xlu0 %1747, %v1183_v13   ;;  %v1150_v8 = vadd.f32 0.5, %v1118_v45 }
 0x266   : > { %1837 = vtanh.f32 %v1057_v4  ;;  %v1060_v20 = vmul.f32 0.5, %v1030_v27 }
 0x267   : > { %v947_v2 = vpop.f32.mrf.mxu0  ;;  %1839 = vtanh.f32 %v1058_v62 }
 0x268   : > { %v948_v42 = vadd.f32 %v947_v2, %v2223_v0  ;;  %v976_v17 = vpop.f32.mrf.mxu1 }
 0x269   : > { %v977_v31 = vadd.f32 %v976_v17, %v2223_v0 }
 0x26a   : > { %v1065_v39 = vmul.f32 0.5, %v948_v42  ;;  %v1003_v11 = vpop.f32.mrf.mxu2  ;;  %v1834_v19 = vpop.eup %1833 }
 0x26b   : > { %v1066_v23 = vmul.f32 0.5, %v977_v31  ;;  %v1004_v44 = vadd.f32 %v1003_v11, %v2221_v63  ;;  %v1032_v48 = vpop.f32.mrf.mxu3  ;;  %v1836_v53 = vpop.eup %1835  ;;  %v1125_v56 = vmul.f32 0.5, %v1834_v19 }
 0x26c   : > { %1841 = vtanh.f32 %v1065_v39  ;;  %v1033_v1 = vadd.f32 %v1032_v48, %v2221_v63  ;;  %v2295_v63 = vmul.f32 0.5, %v994_v34  ;;  %v1838_v15 = vpop.eup %1837  ;;  %v1126_v43 = vmul.f32 0.5, %v1836_v53 }
 0x26d   : > { %1843 = vtanh.f32 %v1066_v23  ;;  %v1063_v28 = vmul.f32 0.5, %v1004_v44  ;;  %v1840_v55 = vpop.eup %1839  ;;  %v1121_v59 = vmul.f32 0.5, %v1838_v15 }
 0x26e   : > { %1845 = vtanh.f32 %v1049_v16  ;;  %v1064_v38 = vmul.f32 0.5, %v1033_v1  ;;  %v1122_v47 = vmul.f32 0.5, %v1840_v55  ;;  %v1157_v16 = vadd.f32 0.5, %v1125_v56 }
 0x26f   : > { %1847 = vtanh.f32 %v1050_v25  ;;  %v1158_v25 = vadd.f32 0.5, %v1126_v43  ;;  %v1153_v39 = vadd.f32 0.5, %v1121_v59  ;;  %v1142_v55 = vadd.f32 0.5, %v1110_v46 }
 0x270   : > { %1849 = vtanh.f32 %v1055_v51  ;;  %v1154_v44 = vadd.f32 0.5, %v1122_v47  ;;  %v1044_v51 = vmul.f32 0.5, %v1020_v12  ;;  %v1141_v12 = vadd.f32 0.5, %v1109_v49 }
 0x271   : > { %1851 = vtanh.f32 %v1056_v29  ;;  %v1106_v29 = vmul.f32 0.5, %v2259_v5  ;;  %v1175_v53 = vpack.c.bf16 %v1153_v39, %v1149_v18 }
 0x272   : > { %v1842_v30 = vpop.eup %1841  ;;  %v1005_v58 = vpop.f32.mrf.mxu2  ;;  %1853 = vtanh.f32 %v1063_v28  ;;  %v1176_v15 = vpack.c.bf16 %v1154_v44, %v1150_v8 }
 0x273   : > { %v1844_v26 = vpop.eup %1843  ;;  %v1129_v22 = vmul.f32 0.5, %v1842_v30  ;;  %v1006_v60 = vadd.f32 %v1005_v58, %v2223_v0  ;;  %v1034_v57 = vpop.f32.mrf.mxu3  ;;  %1855 = vtanh.f32 %v1064_v38  ;;  %v1138_v56 = vadd.f32 0.5, %v1106_v29 }
 0x274   : > { %v1846_v61 = vpop.eup %1845  ;;  %v1130_v4 = vmul.f32 0.5, %v1844_v26  ;;  %v1035_v62 = vadd.f32 %v1034_v57, %v2223_v0  ;;  %1857 = vtanh.f32 %v1059_v40  ;;  %v1133_v58 = vadd.f32 0.5, %v2261_v7 }
 0x275   : > { %v1848_v2 = vpop.eup %1847  ;;  %v1161_v42 = vadd.f32 0.5, %v1129_v22  ;;  %v1067_v17 = vmul.f32 0.5, %v1006_v60  ;;  %1859 = vtanh.f32 %v1060_v20  ;;  %v1113_v6 = vmul.f32 0.5, %v1846_v61 }
 0x276   : > { %v1162_v32 = vadd.f32 0.5, %v1130_v4  ;;  %v1068_v31 = vmul.f32 0.5, %v1035_v62  ;;  %v1850_v34 = vpop.eup %1849  ;;  %v1114_v23 = vmul.f32 0.5, %v1848_v2  ;;  %v1134_v57 = vadd.f32 0.5, %v2265_v10 }
 0x277   : > { %v1179_v11 = vpack.c.bf16 %v1161_v42, %v1157_v16  ;;  %1861 = vtanh.f32 %v1067_v17  ;;  %v1852_v41 = vpop.eup %1851  ;;  %v1145_v27 = vadd.f32 0.5, %v1113_v6  ;;  %v1119_v30 = vmul.f32 0.5, %v1850_v34  ;;  %v1631_v34 = vld [vmem:[%s2465_s3] sm:$0xff] }
 0x278   : > { %v1180_v48 = vpack.c.bf16 %v1162_v32, %v1158_v25  ;;  %1863 = vtanh.f32 %v1068_v31  ;;  %v1854_v0 = vpop.eup %1853  ;;  %v1146_v33 = vadd.f32 0.5, %v1114_v23  ;;  %v1120_v26 = vmul.f32 0.5, %v1852_v41 }
 0x279   : > { %1865 = vtanh.f32 %v1051_v35  ;;  %1207 = vmatpush.bf16.msra.mxu0 %v1179_v11  ;;  %v1856_v1 = vpop.eup %1855  ;;  %v1127_v52 = vmul.f32 0.5, %v1854_v0  ;;  %v1167_v17 = vpack.c.bf16 %v1137_v24, %v1133_v58  ;;  %v1151_v31 = vadd.f32 0.5, %v1119_v30 }
 0x27a   : > { %1867 = vtanh.f32 %v1052_v36  ;;  %1221 = vmatpush.bf16.msra.mxu1 %v1180_v48  ;;  %v1858_v19 = vpop.eup %1857  ;;  %v1128_v36 = vmul.f32 0.5, %v1856_v1  ;;  %v1172_v50 = vpack.c.bf16 %v1146_v33, %v1142_v55  ;;  %v1168_v7 = vpack.c.bf16 %v1138_v56, %v1134_v57 }
 0x27b   : > { %1869 = vtanh.f32 %v2295_v63  ;;  %v1860_v28 = vpop.eup %1859  ;;  %v1123_v5 = vmul.f32 0.5, %v1858_v19  ;;  %v1159_v45 = vadd.f32 0.5, %v1127_v52  ;;  %v1152_v10 = vadd.f32 0.5, %v1120_v26 }
 0x27c   : > { %1871 = vtanh.f32 %v2297_v54  ;;  %v1124_v40 = vmul.f32 0.5, %v1860_v28  ;;  %v1171_v54 = vpack.c.bf16 %v1145_v27, %v1141_v12  ;;  %v1160_v59 = vadd.f32 0.5, %v1128_v36 }
 0x27d   : > { %v1862_v35 = vpop.eup %1861  ;;  %1873 = vtanh.f32 %v1043_v37  ;;  %1208 = vmatpush.bf16.msra.mxu0 %v1175_v53  ;;  %v1155_v47 = vadd.f32 0.5, %v1123_v5  ;;  %v1103_v0 = vmul.f32 0.5, %v2263_v9  ;;  %v1104_v37 = vmul.f32 0.5, %v2268_v21 }
 0x27e   : > { %v1864_v38 = vpop.eup %1863  ;;  %1875 = vtanh.f32 %v1044_v51  ;;  %v1131_v3 = vmul.f32 0.5, %v1862_v35  ;;  %1222 = vmatpush.bf16.msra.mxu1 %v1176_v15  ;;  %v1156_v16 = vadd.f32 0.5, %v1124_v40 }
 0x27f   : > { %v1866_v63 = vpop.eup %1865  ;;  %v1132_v13 = vmul.f32 0.5, %v1864_v38  ;;  %v1177_v41 = vpack.c.bf16 %v1155_v47, %v1151_v31  ;;  %v1135_v19 = vadd.f32 0.5, %v1103_v0  ;;  %v1136_v29 = vadd.f32 0.5, %v1104_v37 }
 0x280   : > { %v1868_v14 = vpop.eup %1867  ;;  %v1163_v43 = vadd.f32 0.5, %v1131_v3  ;;  %v1115_v61 = vmul.f32 0.5, %v1866_v63  ;;  %v1178_v48 = vpack.c.bf16 %v1156_v16, %v1152_v10 }
 0x281   : > { %v1870_v20 = vpop.eup %1869  ;;  %v1164_v22 = vadd.f32 0.5, %v1132_v13  ;;  %1209 = vmatpush.bf16.msra.mxu0 %v1171_v54  ;;  %v1116_v2 = vmul.f32 0.5, %v1868_v14 }
 0x282   : > { %v1872_v60 = vpop.eup %1871  ;;  %v1181_v4 = vpack.c.bf16 %v1163_v43, %v1159_v45  ;;  %1223 = vmatpush.bf16.msra.mxu1 %v1172_v50  ;;  %v1111_v32 = vmul.f32 0.5, %v1870_v20  ;;  %v1147_v11 = vadd.f32 0.5, %v1115_v61 }
 0x283   : > { %v1874_v62 = vpop.eup %1873  ;;  %v1182_v42 = vpack.c.bf16 %v1164_v22, %v1160_v59  ;;  %v1112_v6 = vmul.f32 0.5, %v1872_v60  ;;  %v1148_v44 = vadd.f32 0.5, %v1116_v2 }
 0x284   : > { %v1876_v25 = vpop.eup %1875  ;;  %1235 = vmatpush.bf16.msra.mxu2 %v1181_v4  ;;  %v1107_v39 = vmul.f32 0.5, %v1874_v62  ;;  %v1143_v49 = vadd.f32 0.5, %v1111_v32 }
 0x285   : > { %1210 = vmatpush.bf16.msra.mxu0 %v1167_v17  ;;  %1249 = vmatpush.bf16.msra.mxu3 %v1182_v42  ;;  %v1108_v23 = vmul.f32 0.5, %v1876_v25  ;;  %v1144_v18 = vadd.f32 0.5, %v1112_v6 }
 0x286   : > { %1224 = vmatpush.bf16.msra.mxu1 %v1168_v7  ;;  %v1139_v1 = vadd.f32 0.5, %v1107_v39  ;;  %v1173_v46 = vpack.c.bf16 %v1147_v11, %v1143_v49 }
 0x287   : > { %v1140_v51 = vadd.f32 0.5, %v1108_v23  ;;  %v1174_v8 = vpack.c.bf16 %v1148_v44, %v1144_v18 }
 0x288   : > { %1617 = vmatmul.msk.bf16.vlgmr.msra.gmra.mxu0 %vm908_vm1, %v1631_v34  ;;  %1236 = vmatpush.bf16.msra.mxu2 %v1177_v41  ;;  %v1169_v27 = vpack.c.bf16 %v1139_v1, %v1135_v19 }
 0x289   : > { %1250 = vmatpush.bf16.msra.mxu3 %v1178_v48  ;;  %1618 = vmatmul.msk.bf16.vlgmr.msra.gmra.mxu1 %vm908_vm1, %v1631_v34  ;;  %v1170_v9 = vpack.c.bf16 %v1140_v51, %v1136_v29 }
 0x28c   : > { %1237 = vmatpush.bf16.msra.mxu2 %v1173_v46 }
 0x28d   : > { %1251 = vmatpush.bf16.msra.mxu3 %v1174_v8 }
 0x290   : > { %1238 = vmatpush.bf16.msra.mxu2 %v1169_v27 }
 0x291   : > { %1252 = vmatpush.bf16.msra.mxu3 %v1170_v9 }
 0x293   : > { %1619 = vmatmul.msk.bf16.vlgmr.msra.gmra.mxu2 %vm908_vm1, %v1631_v34 }
 0x294   : > { %1620 = vmatmul.msk.bf16.vlgmr.msra.gmra.mxu3 %vm908_vm1, %v1631_v34 }
 0x2c7   : > { %v1193_v52 = vpop.permute.xlu1 %1192 }
 0x2d7   : > { %v1188_v21 = vpop.permute.xlu0 %1187 }
 0x305   : > { %v1212_v53 = vpop.f32.mrf.mxu0 }
 0x306   : > { %v1213_v28 = vadd.f32 %v1212_v53, %v1188_v21  ;;  %v1226_v17 = vpop.f32.mrf.mxu1 }
 0x307   : > { %v1227_v25 = vadd.f32 %v1226_v17, %v1188_v21 }
 0x308   : > { %v1259_v33 = vmul.f32 0.5, %v1213_v28 }
 0x309   : > { %v1260_v32 = vmul.f32 0.5, %v1227_v25 }
 0x30a   : > { %1877 = vtanh.f32 %v1259_v33 }
 0x30d   : > { %v1214_v15 = vpop.f32.mrf.mxu0 }
 0x30e   : > { %v1215_v35 = vadd.f32 %v1214_v15, %v1193_v52  ;;  %v1228_v31 = vpop.f32.mrf.mxu1 }
 0x30f   : > { %v1229_v7 = vadd.f32 %v1228_v31, %v1193_v52 }
 0x310   : > { %v1878_v24 = vpop.eup %1877  ;;  %v1263_v12 = vmul.f32 0.5, %v1215_v35 }
 0x311   : > { %v1275_v36 = vmul.f32 0.5, %v1878_v24  ;;  %v1264_v34 = vmul.f32 0.5, %v1229_v7 }
 0x312   : > { %1879 = vtanh.f32 %v1263_v12 }
 0x313   : > { %v1283_v38 = vadd.f32 0.5, %v1275_v36 }
 0x315   : > { %1291 = vxpose.xlu2.b32.start [1/2] (short) %v1283_v38, 128 }
 0x316   : > { %v1240_v55 = vpop.f32.mrf.mxu2 }
 0x317   : > { %v1241_v5 = vadd.f32 %v1240_v55, %v1188_v21  ;;  %v1254_v3 = vpop.f32.mrf.mxu3 }
 0x318   : > { %v1880_v63 = vpop.eup %1879  ;;  %v1255_v56 = vadd.f32 %v1254_v3, %v1188_v21 }
 0x319   : > { %v1279_v40 = vmul.f32 0.5, %v1880_v63  ;;  %v1261_v13 = vmul.f32 0.5, %v1241_v5 }
 0x31a   : > { %v1262_v54 = vmul.f32 0.5, %v1255_v56 }
 0x31b   : > { %v1287_v14 = vadd.f32 0.5, %v1279_v40  ;;  %1881 = vtanh.f32 %v1261_v13 }
 0x31c   : > { %1883 = vtanh.f32 %v1262_v54 }
 0x31d   : > { %1292 = vxpose.xlu2.b32.end [2/2] (short) %v1287_v14, 128 }
 0x31e   : > { %v1242_v30 = vpop.f32.mrf.mxu2 }
 0x31f   : > { %v1243_v45 = vadd.f32 %v1242_v30, %v1193_v52  ;;  %v1256_v43 = vpop.f32.mrf.mxu3 }
 0x320   : > { %v1257_v50 = vadd.f32 %v1256_v43, %v1193_v52 }
 0x321   : > { %v1882_v20 = vpop.eup %1881  ;;  %v1265_v58 = vmul.f32 0.5, %v1243_v45 }
 0x322   : > { %v1884_v26 = vpop.eup %1883  ;;  %v1277_v59 = vmul.f32 0.5, %v1882_v20  ;;  %v1266_v22 = vmul.f32 0.5, %v1257_v50 }
 0x323   : > { %v1278_v60 = vmul.f32 0.5, %v1884_v26  ;;  %1885 = vtanh.f32 %v1265_v58 }
 0x324   : > { %v1285_v57 = vadd.f32 0.5, %v1277_v59  ;;  %1887 = vtanh.f32 %v1266_v22 }
 0x325   : > { %v1286_v61 = vadd.f32 0.5, %v1278_v60  ;;  %1889 = vtanh.f32 %v1260_v32 }
 0x326   : > { %1355 = vxpose.xlu1.b32.start [1/2] (short) %v1285_v57, 128  ;;  %1891 = vtanh.f32 %v1264_v34 }
 0x327   : > { %1387 = vxpose.xlu0.b32.start [1/2] (short) %v1286_v61, 128 }
 0x329   : > { %v1886_v47 = vpop.eup %1885 }
 0x32a   : > { %v1888_v4 = vpop.eup %1887  ;;  %v1281_v62 = vmul.f32 0.5, %v1886_v47 }
 0x32b   : > { %v1282_v2 = vmul.f32 0.5, %v1888_v4  ;;  %v1890_v6 = vpop.eup %1889 }
 0x32c   : > { %v1289_v16 = vadd.f32 0.5, %v1281_v62  ;;  %v1276_v10 = vmul.f32 0.5, %v1890_v6  ;;  %v1892_v11 = vpop.eup %1891 }
 0x32d   : > { %v1290_v42 = vadd.f32 0.5, %v1282_v2  ;;  %v1280_v41 = vmul.f32 0.5, %v1892_v11 }
 0x32e   : > { %1356 = vxpose.xlu1.b32.end [2/2] (short) %v1289_v16, 128  ;;  %v1284_v39 = vadd.f32 0.5, %v1276_v10 }
 0x32f   : > { %1388 = vxpose.xlu0.b32.end [2/2] (short) %v1290_v42, 128  ;;  %v1288_v23 = vadd.f32 0.5, %v1280_v41 }
 0x395   : > { %1323 = vxpose.xlu2.b32.start [1/2] (short) %v1284_v39, 128 }
 0x39d   : > { %1324 = vxpose.xlu2.b32.end [2/2] (short) %v1288_v23, 128 }
 0x3ae   : > { %v1307_v44 = vpop.trf.xlu2 }
 0x3af   : > { %1420 = vst.msk [vmem:[%s2329_s25] sm:$0xff] %vm1419_vm2, %v1307_v44 }
 0x3b6   : > { %v1308_v48 = vpop.trf.xlu2 }
 0x3b7   : > { %1421 = vst.msk [vmem:[%s2329_s25 + $0x8] sm:$0xff] %vm1419_vm2, %v1308_v48 }
 0x3be   : > { %v1309_v0 = vpop.trf.xlu2 }
 0x3bf   : > { %1422 = vst.msk [vmem:[%s2329_s25 + $0x10] sm:$0xff] %vm1419_vm2, %v1309_v0 }
 0x3c6   : > { %v1310_v49 = vpop.trf.xlu2 }
 0x3c7   : > { %1423 = vst.msk [vmem:[%s2329_s25 + $0x18] sm:$0xff] %vm1419_vm2, %v1310_v49 }
 0x3ca   : > { %v1371_v9 = vpop.trf.xlu1 }
 0x3cb   : > { %v1403_v27 = vpop.trf.xlu0  ;;  %1452 = vst.msk [vmem:[%s2329_s25 + $0x100] sm:$0xff] %vm1419_vm2, %v1371_v9 }
 0x3cc   : > { %1468 = vst.msk [vmem:[%s2329_s25 + $0x180] sm:$0xff] %vm1419_vm2, %v1403_v27 }
 0x3ce   : > { %v1311_v37 = vpop.trf.xlu2 }
 0x3cf   : > { %1424 = vst.msk [vmem:[%s2329_s25 + $0x20] sm:$0xff] %vm1419_vm2, %v1311_v37 }
 0x3d2   : > { %v1372_v28 = vpop.trf.xlu1 }
 0x3d3   : > { %v1404_v53 = vpop.trf.xlu0  ;;  %1453 = vst.msk [vmem:[%s2329_s25 + $0x108] sm:$0xff] %vm1419_vm2, %v1372_v28 }
 0x3d4   : > { %1469 = vst.msk [vmem:[%s2329_s25 + $0x188] sm:$0xff] %vm1419_vm2, %v1404_v53 }
 0x3d6   : > { %v1312_v18 = vpop.trf.xlu2 }
 0x3d7   : > { %1425 = vst.msk [vmem:[%s2329_s25 + $0x28] sm:$0xff] %vm1419_vm2, %v1312_v18 }
 0x3da   : > { %v1373_v15 = vpop.trf.xlu1 }
 0x3db   : > { %v1405_v52 = vpop.trf.xlu0  ;;  %1454 = vst.msk [vmem:[%s2329_s25 + $0x110] sm:$0xff] %vm1419_vm2, %v1373_v15 }
 0x3dc   : > { %1470 = vst.msk [vmem:[%s2329_s25 + $0x190] sm:$0xff] %vm1419_vm2, %v1405_v52 }
 0x3de   : > { %v1313_v1 = vpop.trf.xlu2 }
 0x3df   : > { %1426 = vst.msk [vmem:[%s2329_s25 + $0x30] sm:$0xff] %vm1419_vm2, %v1313_v1 }
 0x3e2   : > { %v1374_v12 = vpop.trf.xlu1 }
 0x3e3   : > { %v1406_v24 = vpop.trf.xlu0  ;;  %1455 = vst.msk [vmem:[%s2329_s25 + $0x118] sm:$0xff] %vm1419_vm2, %v1374_v12 }
 0x3e4   : > { %1471 = vst.msk [vmem:[%s2329_s25 + $0x198] sm:$0xff] %vm1419_vm2, %v1406_v24 }
 0x3e6   : > { %v1314_v46 = vpop.trf.xlu2 }
 0x3e7   : > { %1427 = vst.msk [vmem:[%s2329_s25 + $0x38] sm:$0xff] %vm1419_vm2, %v1314_v46 }
 0x3ea   : > { %v1375_v55 = vpop.trf.xlu1 }
 0x3eb   : > { %v1407_v38 = vpop.trf.xlu0  ;;  %1456 = vst.msk [vmem:[%s2329_s25 + $0x120] sm:$0xff] %vm1419_vm2, %v1375_v55 }
 0x3ec   : > { %1472 = vst.msk [vmem:[%s2329_s25 + $0x1a0] sm:$0xff] %vm1419_vm2, %v1407_v38 }
 0x3ee   : > { %v1315_v51 = vpop.trf.xlu2 }
 0x3ef   : > { %1428 = vst.msk [vmem:[%s2329_s25 + $0x40] sm:$0xff] %vm1419_vm2, %v1315_v51 }
 0x3f2   : > { %v1376_v63 = vpop.trf.xlu1 }
 0x3f3   : > { %v1408_v3 = vpop.trf.xlu0  ;;  %1457 = vst.msk [vmem:[%s2329_s25 + $0x128] sm:$0xff] %vm1419_vm2, %v1376_v63 }
 0x3f4   : > { %1473 = vst.msk [vmem:[%s2329_s25 + $0x1a8] sm:$0xff] %vm1419_vm2, %v1408_v3 }
 0x3f6   : > { %v1316_v8 = vpop.trf.xlu2 }
 0x3f7   : > { %1429 = vst.msk [vmem:[%s2329_s25 + $0x48] sm:$0xff] %vm1419_vm2, %v1316_v8 }
 0x3fa   : > { %v1377_v13 = vpop.trf.xlu1 }
 0x3fb   : > { %v1409_v40 = vpop.trf.xlu0  ;;  %1458 = vst.msk [vmem:[%s2329_s25 + $0x130] sm:$0xff] %vm1419_vm2, %v1377_v13 }
 0x3fc   : > { %1474 = vst.msk [vmem:[%s2329_s25 + $0x1b0] sm:$0xff] %vm1419_vm2, %v1409_v40 }
 0x3fe   : > { %v1317_v19 = vpop.trf.xlu2 }
 0x3ff   : > { %1430 = vst.msk [vmem:[%s2329_s25 + $0x50] sm:$0xff] %vm1419_vm2, %v1317_v19 }
 0x402   : > { %v1378_v30 = vpop.trf.xlu1 }
 0x403   : > { %v1410_v14 = vpop.trf.xlu0  ;;  %1459 = vst.msk [vmem:[%s2329_s25 + $0x138] sm:$0xff] %vm1419_vm2, %v1378_v30 }
 0x404   : > { %1475 = vst.msk [vmem:[%s2329_s25 + $0x1b8] sm:$0xff] %vm1419_vm2, %v1410_v14 }
 0x406   : > { %v1318_v29 = vpop.trf.xlu2 }
 0x407   : > { %1431 = vst.msk [vmem:[%s2329_s25 + $0x58] sm:$0xff] %vm1419_vm2, %v1318_v29 }
 0x40a   : > { %v1379_v50 = vpop.trf.xlu1 }
 0x40b   : > { %v1411_v43 = vpop.trf.xlu0  ;;  %1460 = vst.msk [vmem:[%s2329_s25 + $0x140] sm:$0xff] %vm1419_vm2, %v1379_v50 }
 0x40c   : > { %1476 = vst.msk [vmem:[%s2329_s25 + $0x1c0] sm:$0xff] %vm1419_vm2, %v1411_v43 }
 0x40e   : > { %v1319_v21 = vpop.trf.xlu2 }
 0x40f   : > { %1432 = vst.msk [vmem:[%s2329_s25 + $0x60] sm:$0xff] %vm1419_vm2, %v1319_v21 }
 0x412   : > { %v1380_v26 = vpop.trf.xlu1 }
 0x413   : > { %v1412_v58 = vpop.trf.xlu0  ;;  %1461 = vst.msk [vmem:[%s2329_s25 + $0x148] sm:$0xff] %vm1419_vm2, %v1380_v26 }
 0x414   : > { %1477 = vst.msk [vmem:[%s2329_s25 + $0x1c8] sm:$0xff] %vm1419_vm2, %v1412_v58 }
 0x416   : > { %v1320_v33 = vpop.trf.xlu2 }
 0x417   : > { %1433 = vst.msk [vmem:[%s2329_s25 + $0x68] sm:$0xff] %vm1419_vm2, %v1320_v33 }
 0x41a   : > { %v1381_v60 = vpop.trf.xlu1 }
 0x41b   : > { %v1413_v22 = vpop.trf.xlu0  ;;  %1462 = vst.msk [vmem:[%s2329_s25 + $0x150] sm:$0xff] %vm1419_vm2, %v1381_v60 }
 0x41c   : > { %1478 = vst.msk [vmem:[%s2329_s25 + $0x1d0] sm:$0xff] %vm1419_vm2, %v1413_v22 }
 0x41e   : > { %v1321_v35 = vpop.trf.xlu2 }
 0x41f   : > { %1434 = vst.msk [vmem:[%s2329_s25 + $0x70] sm:$0xff] %vm1419_vm2, %v1321_v35 }
 0x422   : > { %v1382_v47 = vpop.trf.xlu1 }
 0x423   : > { %v1414_v61 = vpop.trf.xlu0  ;;  %1463 = vst.msk [vmem:[%s2329_s25 + $0x158] sm:$0xff] %vm1419_vm2, %v1382_v47 }
 0x424   : > { %1479 = vst.msk [vmem:[%s2329_s25 + $0x1d8] sm:$0xff] %vm1419_vm2, %v1414_v61 }
 0x426   : > { %v1322_v36 = vpop.trf.xlu2 }
 0x427   : > { %1435 = vst.msk [vmem:[%s2329_s25 + $0x78] sm:$0xff] %vm1419_vm2, %v1322_v36 }
 0x42a   : > { %v1383_v2 = vpop.trf.xlu1 }
 0x42b   : > { %v1415_v62 = vpop.trf.xlu0  ;;  %1464 = vst.msk [vmem:[%s2329_s25 + $0x160] sm:$0xff] %vm1419_vm2, %v1383_v2 }
 0x42c   : > { %1480 = vst.msk [vmem:[%s2329_s25 + $0x1e0] sm:$0xff] %vm1419_vm2, %v1415_v62 }
 0x42e   : > { %v1339_v5 = vpop.trf.xlu2 }
 0x42f   : > { %1436 = vst.msk [vmem:[%s2329_s25 + $0x80] sm:$0xff] %vm1419_vm2, %v1339_v5 }
 0x432   : > { %v1384_v17 = vpop.trf.xlu1 }
 0x433   : > { %v1416_v42 = vpop.trf.xlu0  ;;  %1465 = vst.msk [vmem:[%s2329_s25 + $0x168] sm:$0xff] %vm1419_vm2, %v1384_v17 }
 0x434   : > { %1481 = vst.msk [vmem:[%s2329_s25 + $0x1e8] sm:$0xff] %vm1419_vm2, %v1416_v42 }
 0x436   : > { %v1340_v56 = vpop.trf.xlu2 }
 0x437   : > { %1437 = vst.msk [vmem:[%s2329_s25 + $0x88] sm:$0xff] %vm1419_vm2, %v1340_v56 }
 0x43a   : > { %v1385_v31 = vpop.trf.xlu1 }
 0x43b   : > { %v1417_v32 = vpop.trf.xlu0  ;;  %1466 = vst.msk [vmem:[%s2329_s25 + $0x170] sm:$0xff] %vm1419_vm2, %v1385_v31 }
 0x43c   : > { %1482 = vst.msk [vmem:[%s2329_s25 + $0x1f0] sm:$0xff] %vm1419_vm2, %v1417_v32 }
 0x43e   : > { %v1341_v54 = vpop.trf.xlu2 }
 0x43f   : > { %1438 = vst.msk [vmem:[%s2329_s25 + $0x90] sm:$0xff] %vm1419_vm2, %v1341_v54 }
 0x442   : > { %v1386_v6 = vpop.trf.xlu1 }
 0x443   : > { %v1418_v34 = vpop.trf.xlu0  ;;  %1467 = vst.msk [vmem:[%s2329_s25 + $0x178] sm:$0xff] %vm1419_vm2, %v1386_v6 }
 0x444   : > { %1483 = vst.msk [vmem:[%s2329_s25 + $0x1f8] sm:$0xff] %vm1419_vm2, %v1418_v34 }
 0x446   : > { %v1342_v45 = vpop.trf.xlu2 }
 0x447   : > { %1439 = vst.msk [vmem:[%s2329_s25 + $0x98] sm:$0xff] %vm1419_vm2, %v1342_v45 }
 0x44e   : > { %v1343_v20 = vpop.trf.xlu2 }
 0x44f   : > { %1440 = vst.msk [vmem:[%s2329_s25 + $0xa0] sm:$0xff] %vm1419_vm2, %v1343_v20 }
 0x456   : > { %v1344_v59 = vpop.trf.xlu2 }
 0x457   : > { %1441 = vst.msk [vmem:[%s2329_s25 + $0xa8] sm:$0xff] %vm1419_vm2, %v1344_v59 }
 0x45e   : > { %v1345_v57 = vpop.trf.xlu2 }
 0x45f   : > { %1442 = vst.msk [vmem:[%s2329_s25 + $0xb0] sm:$0xff] %vm1419_vm2, %v1345_v57 }
 0x466   : > { %v1346_v4 = vpop.trf.xlu2 }
 0x467   : > { %1443 = vst.msk [vmem:[%s2329_s25 + $0xb8] sm:$0xff] %vm1419_vm2, %v1346_v4 }
 0x46e   : > { %v1347_v16 = vpop.trf.xlu2 }
 0x46f   : > { %1444 = vst.msk [vmem:[%s2329_s25 + $0xc0] sm:$0xff] %vm1419_vm2, %v1347_v16 }
 0x476   : > { %v1348_v25 = vpop.trf.xlu2 }
 0x477   : > { %1445 = vst.msk [vmem:[%s2329_s25 + $0xc8] sm:$0xff] %vm1419_vm2, %v1348_v25 }
 0x47e   : > { %v1349_v7 = vpop.trf.xlu2 }
 0x47f   : > { %1446 = vst.msk [vmem:[%s2329_s25 + $0xd0] sm:$0xff] %vm1419_vm2, %v1349_v7 }
 0x486   : > { %v1350_v10 = vpop.trf.xlu2 }
 0x487   : > { %1447 = vst.msk [vmem:[%s2329_s25 + $0xd8] sm:$0xff] %vm1419_vm2, %v1350_v10 }
 0x48e   : > { %v1351_v39 = vpop.trf.xlu2 }
 0x48f   : > { %1448 = vst.msk [vmem:[%s2329_s25 + $0xe0] sm:$0xff] %vm1419_vm2, %v1351_v39 }
 0x496   : > { %v1352_v11 = vpop.trf.xlu2 }
 0x497   : > { %1449 = vst.msk [vmem:[%s2329_s25 + $0xe8] sm:$0xff] %vm1419_vm2, %v1352_v11 }
 0x49e   : > { %v1353_v41 = vpop.trf.xlu2 }
 0x49f   : > { %1450 = vst.msk [vmem:[%s2329_s25 + $0xf0] sm:$0xff] %vm1419_vm2, %v1353_v41 }
 0x4a6   : > { %v1354_v23 = vpop.trf.xlu2 }
 0x4a7   : > { %1451 = vst.msk [vmem:[%s2329_s25 + $0xf8] sm:$0xff] %vm1419_vm2, %v1354_v23 }
 0x4a8 PF: > { %s17_s24 = sadd.s32 1, %s1899_s24  }
 0x4a9   : > { %p14_p4 = scmp.ge.s32.totalorder %s17_s24, 4  }
 0x4ab   :  { %16 = sbr.rel (!%p14_p4) target bundleno = 1 (0x1), region = 78 }

// kernel: tpu_custom_call.1
= control target key start
LH: loop header
LB: loop body
LE: loop exit
PB: predicated region body
PF: predicated region fallthrough
CT: control target
= control target key end

     0   :  { %s1942_s24 = smov 0   ;;  %s2462_s0 = inlined_call_operand.vmem [shape: f32[1024,32], index: 0, kind: input, shape index: {}]   ;;  %s2463_s1 = inlined_call_operand.vmem [shape: bf16[64,32], index: 1, kind: input, shape index: {}]   ;;  %s2464_s2 = inlined_call_operand.vmem [shape: bf16[64,64], index: 2, kind: input, shape index: {}]   ;;  %s2465_s3 = inlined_call_operand.vmem [shape: bf16[16,64], index: 3, kind: input, shape index: {}]   ;;  %s2466_s4 = inlined_call_operand.vmem [shape: f32[64,1], index: 4, kind: input, shape index: {}]   ;;  %s2467_s5 = inlined_call_operand.vmem [shape: f32[64,1], index: 5, kind: input, shape index: {}]   ;;  %s2468_s6 = inlined_call_operand.vmem [shape: f32[16,1], index: 6, kind: input, shape index: {}]   ;;  %s2469_s7 = inlined_call_operand.vmem [shape: f32[1024,16], index: 7, kind: output, shape index: {}]  }
   0x1 LB: > { %s1540_s25 = sadd.s32 4294967295, %s1899_s24   ;;  %p1544_p0 = scmp.ge.s32.totalorder %s1899_s24, 1  ;;  %s1899_s24 = sphi %s1942_s24, %s17_s24  }
   0x2   : > { %p238_p1 = scmp.lt.s32.totalorder %s1899_s24, 3 }
   0x4   : > { %p239_p2 = pnand %p1544_p0, %p238_p1 }
   0x5   : > { %s1545_s26 = sshll.u32 (!%p239_p2), %s1540_s25, 6 }
   0x6   : > { %242 = sbr.rel (%p239_p2) target bundleno = 1192 (0x4a8), region = 48  ;;  %p271_p3 = scmp.lt.s32.totalorder (!%p239_p2), %s1545_s26, 127 }
   0xb   : > { %s2471_s26 = smov (!%p271_p3, %s1545_s26), 127  ;;  %vm559_vm0 = vcmask 261120   ;;  %vm908_vm1 = vcmask 523264   ;;  %vm1419_vm2 = vcmask 130048  }
   0xc   : > { %s1546_s27 = sshll.u32 %s2471_s26, 3 }
   0xd   : > { %s1958_s30 = scalar_lea.vmem %s2462_s0, %s1546_s27  ;;  %s2329_s25 = scalar_lea.vmem %s2469_s7, %s1546_s27 }
   0xe   : > { %v315_v0 = vld [vmem:[%s1958_s30 + $0x100] sm:$0xff]  ;;  %v316_v6 = vld [vmem:[%s1958_s30 + $0x108] sm:$0xff]  ;;  %v317_v12 = vld [vmem:[%s1958_s30 + $0x110] sm:$0xff] }
   0xf   : > { %v331_v1 = vld [vmem:[%s1958_s30 + $0x180] sm:$0xff]  ;;  %v332_v7 = vld [vmem:[%s1958_s30 + $0x188] sm:$0xff]  ;;  %v333_v13 = vld [vmem:[%s1958_s30 + $0x190] sm:$0xff] }
  0x10   : > { %v283_v2 = vld [vmem:[%s1958_s30] sm:$0xff]  ;;  %v1642_v3 = vpack.i.bf16 %v331_v1, %v315_v0  ;;  %v284_v8 = vld [vmem:[%s1958_s30 + $0x8] sm:$0xff]  ;;  %v1644_v10 = vpack.i.bf16 %v332_v7, %v316_v6  ;;  %v285_v14 = vld [vmem:[%s1958_s30 + $0x10] sm:$0xff]  ;;  %v1646_v16 = vpack.i.bf16 %v333_v13, %v317_v12  ;;  %v1901_v13 = vmov 0  }
  0x11   : > { %v299_v4 = vld [vmem:[%s1958_s30 + $0x80] sm:$0xff]  ;;  %v300_v9 = vld [vmem:[%s1958_s30 + $0x88] sm:$0xff]  ;;  %v301_v15 = vld [vmem:[%s1958_s30 + $0x90] sm:$0xff]  ;;  %1746 = vset.pattern.permute.xlu2 %v1901_v13 }
  0x12   : > { %v1694_v5 = vpack.i.bf16 %v299_v4, %v283_v2  ;;  %1643 = vxpose.xlu0.b32.start [1/16] (narrow) %v1642_v3, 32  ;;  %v1696_v11 = vpack.i.bf16 %v300_v9, %v284_v8  ;;  %v1698_v17 = vpack.i.bf16 %v301_v15, %v285_v14  ;;  %v318_v18 = vld [vmem:[%s1958_s30 + $0x118] sm:$0xff]  ;;  %v319_v24 = vld [vmem:[%s1958_s30 + $0x120] sm:$0xff]  ;;  %v320_v30 = vld [vmem:[%s1958_s30 + $0x128] sm:$0xff] }
  0x13   : > { %v334_v19 = vld [vmem:[%s1958_s30 + $0x198] sm:$0xff]  ;;  %v335_v25 = vld [vmem:[%s1958_s30 + $0x1a0] sm:$0xff]  ;;  %v336_v31 = vld [vmem:[%s1958_s30 + $0x1a8] sm:$0xff] }
  0x14   : > { %1695 = vxpose.xlu1.b32.start [1/16] (narrow) %v1694_v5, 32  ;;  %v286_v20 = vld [vmem:[%s1958_s30 + $0x18] sm:$0xff]  ;;  %v1648_v22 = vpack.i.bf16 %v334_v19, %v318_v18  ;;  %v287_v26 = vld [vmem:[%s1958_s30 + $0x20] sm:$0xff]  ;;  %v1650_v28 = vpack.i.bf16 %v335_v25, %v319_v24  ;;  %v288_v32 = vld [vmem:[%s1958_s30 + $0x28] sm:$0xff]  ;;  %v1652_v34 = vpack.i.bf16 %v336_v31, %v320_v30 }
  0x15   : > { %v302_v21 = vld [vmem:[%s1958_s30 + $0x98] sm:$0xff]  ;;  %v303_v27 = vld [vmem:[%s1958_s30 + $0xa0] sm:$0xff]  ;;  %v304_v33 = vld [vmem:[%s1958_s30 + $0xa8] sm:$0xff] }
  0x16   : > { %v1700_v23 = vpack.i.bf16 %v302_v21, %v286_v20  ;;  %v1702_v29 = vpack.i.bf16 %v303_v27, %v287_v26  ;;  %v1704_v35 = vpack.i.bf16 %v304_v33, %v288_v32  ;;  %v321_v36 = vld [vmem:[%s1958_s30 + $0x130] sm:$0xff]  ;;  %v322_v42 = vld [vmem:[%s1958_s30 + $0x138] sm:$0xff]  ;;  %v323_v48 = vld [vmem:[%s1958_s30 + $0x140] sm:$0xff] }
  0x17   : > { %v337_v37 = vld [vmem:[%s1958_s30 + $0x1b0] sm:$0xff]  ;;  %v338_v43 = vld [vmem:[%s1958_s30 + $0x1b8] sm:$0xff]  ;;  %v339_v49 = vld [vmem:[%s1958_s30 + $0x1c0] sm:$0xff] }
  0x18   : > { %v289_v38 = vld [vmem:[%s1958_s30 + $0x30] sm:$0xff]  ;;  %v1654_v40 = vpack.i.bf16 %v337_v37, %v321_v36  ;;  %v290_v44 = vld [vmem:[%s1958_s30 + $0x38] sm:$0xff]  ;;  %v1656_v46 = vpack.i.bf16 %v338_v43, %v322_v42  ;;  %v291_v50 = vld [vmem:[%s1958_s30 + $0x40] sm:$0xff]  ;;  %v1658_v52 = vpack.i.bf16 %v339_v49, %v323_v48 }
  0x19   : > { %v305_v39 = vld [vmem:[%s1958_s30 + $0xb0] sm:$0xff]  ;;  %v306_v45 = vld [vmem:[%s1958_s30 + $0xb8] sm:$0xff]  ;;  %v307_v51 = vld [vmem:[%s1958_s30 + $0xc0] sm:$0xff] }
  0x1a   : > { %1645 = vxpose.xlu0.b32.cont [2/16] (narrow) %v1644_v10, 32  ;;  %v1706_v41 = vpack.i.bf16 %v305_v39, %v289_v38  ;;  %v1708_v47 = vpack.i.bf16 %v306_v45, %v290_v44  ;;  %v1710_v53 = vpack.i.bf16 %v307_v51, %v291_v50  ;;  %v324_v54 = vld [vmem:[%s1958_s30 + $0x148] sm:$0xff]  ;;  %v325_v60 = vld [vmem:[%s1958_s30 + $0x150] sm:$0xff]  ;;  %v326_v2 = vld [vmem:[%s1958_s30 + $0x158] sm:$0xff] }
  0x1b   : > { %v340_v55 = vld [vmem:[%s1958_s30 + $0x1c8] sm:$0xff]  ;;  %v341_v61 = vld [vmem:[%s1958_s30 + $0x1d0] sm:$0xff]  ;;  %v342_v3 = vld [vmem:[%s1958_s30 + $0x1d8] sm:$0xff] }
  0x1c   : > { %1697 = vxpose.xlu1.b32.cont [2/16] (narrow) %v1696_v11, 32  ;;  %v292_v56 = vld [vmem:[%s1958_s30 + $0x48] sm:$0xff]  ;;  %v1660_v58 = vpack.i.bf16 %v340_v55, %v324_v54  ;;  %v293_v62 = vld [vmem:[%s1958_s30 + $0x50] sm:$0xff]  ;;  %v1662_v0 = vpack.i.bf16 %v341_v61, %v325_v60  ;;  %v294_v4 = vld [vmem:[%s1958_s30 + $0x58] sm:$0xff]  ;;  %v1664_v6 = vpack.i.bf16 %v342_v3, %v326_v2 }
  0x1d   : > { %v308_v57 = vld [vmem:[%s1958_s30 + $0xc8] sm:$0xff]  ;;  %v309_v63 = vld [vmem:[%s1958_s30 + $0xd0] sm:$0xff]  ;;  %v310_v5 = vld [vmem:[%s1958_s30 + $0xd8] sm:$0xff] }
  0x1e   : > { %v1712_v59 = vpack.i.bf16 %v308_v57, %v292_v56  ;;  %v1714_v1 = vpack.i.bf16 %v309_v63, %v293_v62  ;;  %v1716_v7 = vpack.i.bf16 %v310_v5, %v294_v4  ;;  %v327_v8 = vld [vmem:[%s1958_s30 + $0x160] sm:$0xff]  ;;  %v497_v10 = vld [vmem:[%s2466_s4 + $0x30] sm:$0xff]  ;;  %v344_v18 = vld [vmem:[%s1958_s30 + $0x1e8] sm:$0xff] }
  0x1f   : > { %v343_v9 = vld [vmem:[%s1958_s30 + $0x1e0] sm:$0xff]  ;;  %531 = vperm.xlu2 %1746, %v497_v10   ;;  %v296_v19 = vld [vmem:[%s1958_s30 + $0x68] sm:$0xff]  ;;  %v329_v24 = vld [vmem:[%s1958_s30 + $0x170] sm:$0xff] }
  0x20   : > { %v295_v11 = vld [vmem:[%s1958_s30 + $0x60] sm:$0xff]  ;;  %v1666_v14 = vpack.i.bf16 %v343_v9, %v327_v8  ;;  %v312_v20 = vld [vmem:[%s1958_s30 + $0xe8] sm:$0xff]  ;;  %v345_v25 = vld [vmem:[%s1958_s30 + $0x1f0] sm:$0xff] }
  0x21   : > { %v311_v12 = vld [vmem:[%s1958_s30 + $0xe0] sm:$0xff]  ;;  %v297_v26 = vld [vmem:[%s1958_s30 + $0x70] sm:$0xff]  ;;  %v496_v30 = vld [vmem:[%s2466_s4 + $0x28] sm:$0xff] }
  0x22   : > { %1647 = vxpose.xlu0.b32.cont [3/16] (narrow) %v1646_v16, 32  ;;  %v1718_v15 = vpack.i.bf16 %v311_v12, %v295_v11  ;;  %v498_v16 = vld [vmem:[%s2466_s4 + $0x38] sm:$0xff]  ;;  %v313_v27 = vld [vmem:[%s1958_s30 + $0xf0] sm:$0xff]  ;;  %v491_v39 = vld [vmem:[%s2466_s4] sm:$0xff] }
  0x23   : > { %v330_v31 = vld [vmem:[%s1958_s30 + $0x178] sm:$0xff]  ;;  %v493_v37 = vld [vmem:[%s2466_s4 + $0x10] sm:$0xff]  ;;  %v845_v49 = vld [vmem:[%s2467_s5 + $0x28] sm:$0xff] }
  0x24   : > { %1699 = vxpose.xlu1.b32.cont [3/16] (narrow) %v1698_v17, 32  ;;  %v328_v17 = vld [vmem:[%s1958_s30 + $0x168] sm:$0xff]  ;;  %v346_v32 = vld [vmem:[%s1958_s30 + $0x1f8] sm:$0xff]  ;;  %v842_v60 = vld [vmem:[%s2467_s5 + $0x10] sm:$0xff] }
  0x25   : > { %v1668_v21 = vpack.i.bf16 %v344_v18, %v328_v17  ;;  %v298_v33 = vld [vmem:[%s1958_s30 + $0x78] sm:$0xff]  ;;  %v840_v17 = vld [vmem:[%s2467_s5] sm:$0xff]  ;;  %v1624_v18 = vld [vmem:[%s2463_s1 + $0x8] sm:$0xff] }
  0x26   : > { %v494_v38 = vld [vmem:[%s2466_s4 + $0x18] sm:$0xff] }
  0x27   : > { %536 = vperm.xlu2 %1746, %v498_v16   ;;  %v847_v44 = vld [vmem:[%s2467_s5 + $0x38] sm:$0xff] }
  0x28   : > { %v843_v16 = vld [vmem:[%s2467_s5 + $0x18] sm:$0xff] }
  0x2a   : > { %1649 = vxpose.xlu0.b32.cont [4/16] (narrow) %v1648_v22, 32  ;;  %v1720_v22 = vpack.i.bf16 %v312_v20, %v296_v19  ;;  %v841_v19 = vld [vmem:[%s2467_s5 + $0x8] sm:$0xff]  ;;  %v1625_v20 = vld [vmem:[%s2463_s1 + $0x10] sm:$0xff] }
  0x2c   : > { %1701 = vxpose.xlu1.b32.cont [4/16] (narrow) %v1700_v23, 32  ;;  %v495_v23 = vld [vmem:[%s2466_s4 + $0x20] sm:$0xff] }
  0x2f   : > { %521 = vperm.xlu2 %1746, %v495_v23  }
  0x32   : > { %1651 = vxpose.xlu0.b32.cont [5/16] (narrow) %v1650_v28, 32  ;;  %v1670_v28 = vpack.i.bf16 %v345_v25, %v329_v24 }
  0x34   : > { %1703 = vxpose.xlu1.b32.cont [5/16] (narrow) %v1702_v29, 32  ;;  %v1722_v29 = vpack.i.bf16 %v313_v27, %v297_v26 }
  0x37   : > { %526 = vperm.xlu2 %1746, %v496_v30  }
  0x3a   : > { %1653 = vxpose.xlu0.b32.cont [6/16] (narrow) %v1652_v34, 32  ;;  %v314_v34 = vld [vmem:[%s1958_s30 + $0xf8] sm:$0xff] }
  0x3b   : > { %v1724_v36 = vpack.i.bf16 %v314_v34, %v298_v33 }
  0x3c   : > { %1705 = vxpose.xlu1.b32.cont [6/16] (narrow) %v1704_v35, 32  ;;  %v1672_v35 = vpack.i.bf16 %v346_v32, %v330_v31 }
  0x3f   : > { %511 = vperm.xlu2 %1746, %v493_v37  }
  0x42   : > { %1655 = vxpose.xlu0.b32.cont [7/16] (narrow) %v1654_v40, 32  ;;  %v492_v40 = vld [vmem:[%s2466_s4 + $0x8] sm:$0xff] }
  0x44   : > { %1707 = vxpose.xlu1.b32.cont [7/16] (narrow) %v1706_v41, 32  ;;  %v846_v41 = vld [vmem:[%s2467_s5 + $0x30] sm:$0xff] }
  0x47   : > { %516 = vperm.xlu2 %1746, %v494_v38  }
  0x4a   : > { %1657 = vxpose.xlu0.b32.cont [8/16] (narrow) %v1656_v46, 32  ;;  %v844_v46 = vld [vmem:[%s2467_s5 + $0x20] sm:$0xff] }
  0x4c   : > { %1709 = vxpose.xlu1.b32.cont [8/16] (narrow) %v1708_v47, 32 }
  0x4f   : > { %501 = vperm.xlu2 %1746, %v491_v39  }
  0x52   : > { %1659 = vxpose.xlu0.b32.cont [9/16] (narrow) %v1658_v52, 32 }
  0x54   : > { %1711 = vxpose.xlu1.b32.cont [9/16] (narrow) %v1710_v53, 32 }
  0x57   : > { %506 = vperm.xlu2 %1746, %v492_v40  }
  0x5a   : > { %1661 = vxpose.xlu0.b32.cont [10/16] (narrow) %v1660_v58, 32 }
  0x5c   : > { %1713 = vxpose.xlu1.b32.cont [10/16] (narrow) %v1712_v59, 32 }
  0x5f   : > { %880 = vperm.xlu2 %1746, %v846_v41  }
  0x62   : > { %1663 = vxpose.xlu0.b32.cont [11/16] (narrow) %v1662_v0, 32 }
  0x64   : > { %1715 = vxpose.xlu1.b32.cont [11/16] (narrow) %v1714_v1, 32 }
  0x67   : > { %885 = vperm.xlu2 %1746, %v847_v44  }
  0x6a   : > { %1665 = vxpose.xlu0.b32.cont [12/16] (narrow) %v1664_v6, 32 }
  0x6c   : > { %1717 = vxpose.xlu1.b32.cont [12/16] (narrow) %v1716_v7, 32 }
  0x6f   : > { %870 = vperm.xlu2 %1746, %v844_v46  }
  0x72   : > { %1667 = vxpose.xlu0.b32.cont [13/16] (narrow) %v1666_v14, 32 }
  0x74   : > { %1719 = vxpose.xlu1.b32.cont [13/16] (narrow) %v1718_v15, 32  ;;  %v1623_v15 = vld [vmem:[%s2463_s1] sm:$0xff] }
  0x77   : > { %875 = vperm.xlu2 %1746, %v845_v49  }
  0x7a   : > { %1669 = vxpose.xlu0.b32.cont [14/16] (narrow) %v1668_v21, 32  ;;  %v1626_v21 = vld [vmem:[%s2463_s1 + $0x18] sm:$0xff] }
  0x7c   : > { %1721 = vxpose.xlu1.b32.cont [14/16] (narrow) %v1720_v22, 32 }
  0x7f   : > { %860 = vperm.xlu2 %1746, %v842_v60  }
  0x82   : > { %1671 = vxpose.xlu0.b32.cont [15/16] (narrow) %v1670_v28, 32 }
  0x84   : > { %1723 = vxpose.xlu1.b32.cont [15/16] (narrow) %v1722_v29, 32 }
  0x87   : > { %865 = vperm.xlu2 %1746, %v843_v16  }
  0x8a   : > { %1673 = vxpose.xlu0.b32.end [16/16] (narrow) %v1672_v35, 32 }
  0x8c   : > { %1725 = vxpose.xlu1.b32.end [16/16] (narrow) %v1724_v36, 32 }
  0x8f   : > { %850 = vperm.xlu2 %1746, %v840_v17  }
  0x97   : > { %855 = vperm.xlu2 %1746, %v841_v19  }
  0xb6   : > { %v1674_v42 = vpop.trf.xlu0 }
  0xb7   : > { %v1675_v53 = vunpack.i.l.bf16 %v1674_v42  ;;  %v1678_v54 = vunpack.i.h.bf16 %v1674_v42 }
  0xb8   : > { %v1726_v43 = vpop.trf.xlu1 }
  0xb9   : > { %v1727_v10 = vunpack.i.l.bf16 %v1726_v43  ;;  %v1730_v11 = vunpack.i.h.bf16 %v1726_v43 }
  0xbe   : > { %v1679_v45 = vpop.trf.xlu0 }
  0xbf   : > { %v1680_v58 = vunpack.i.l.bf16 %v1679_v45  ;;  %v1683_v59 = vunpack.i.h.bf16 %v1679_v45 }
  0xc0   : > { %v1731_v47 = vpop.trf.xlu1 }
  0xc1   : > { %v1732_v6 = vunpack.i.l.bf16 %v1731_v47  ;;  %v1735_v7 = vunpack.i.h.bf16 %v1731_v47  ;;  %v485_v8 = vpack.c.bf16 %v1680_v58, %v1675_v53  ;;  %v486_v9 = vpack.c.bf16 %v1683_v59, %v1678_v54 }
  0xc3   : > { %v483_v12 = vpack.c.bf16 %v1732_v6, %v1727_v10  ;;  %v484_v14 = vpack.c.bf16 %v1735_v7, %v1730_v11 }
  0xc6   : > { %v1684_v48 = vpop.trf.xlu0 }
  0xc7   : > { %v1685_v51 = vunpack.i.l.bf16 %v1684_v48  ;;  %v1688_v52 = vunpack.i.h.bf16 %v1684_v48 }
  0xc8   : > { %v1736_v50 = vpop.trf.xlu1 }
  0xc9   : > { %v1737_v56 = vunpack.i.l.bf16 %v1736_v50  ;;  %v1740_v57 = vunpack.i.h.bf16 %v1736_v50 }
  0xce   : > { %v1689_v55 = vpop.trf.xlu0 }
  0xcf   : > { %v1690_v62 = vunpack.i.l.bf16 %v1689_v55  ;;  %v1693_v63 = vunpack.i.h.bf16 %v1689_v55 }
  0xd0   : > { %v1741_v61 = vpop.trf.xlu1 }
  0xd1   : > { %v1742_v0 = vunpack.i.l.bf16 %v1741_v61  ;;  %v1745_v1 = vunpack.i.h.bf16 %v1741_v61  ;;  %v489_v2 = vpack.c.bf16 %v1690_v62, %v1685_v51  ;;  %v490_v3 = vpack.c.bf16 %v1693_v63, %v1688_v52 }
  0xd3   : > { %v487_v4 = vpack.c.bf16 %v1742_v0, %v1737_v56  ;;  %v488_v5 = vpack.c.bf16 %v1745_v1, %v1740_v57  ;;  %636 = vmatpush.bf16.msra.mxu2 %v489_v2  ;;  %665 = vmatpush.bf16.msra.mxu3 %v490_v3 }
  0xd5   : > { %578 = vmatpush.bf16.msra.mxu0 %v487_v4  ;;  %607 = vmatpush.bf16.msra.mxu1 %v488_v5 }
  0xd7   : > { %637 = vmatpush.bf16.msra.mxu2 %v485_v8  ;;  %666 = vmatpush.bf16.msra.mxu3 %v486_v9 }
  0xd9   : > { %579 = vmatpush.bf16.msra.mxu0 %v483_v12  ;;  %608 = vmatpush.bf16.msra.mxu1 %v484_v14 }
  0xda   : > { %1573 = vmatmul.msk.bf16.vlgmr.msra.gmra.mxu2 %vm559_vm0, %v1623_v15  ;;  %1577 = vmatmul.msk.bf16.vlgmr.msra.gmra.mxu3 %vm559_vm0, %v1623_v15 }
  0xdc   : > { %1565 = vmatmul.msk.bf16.vlgmr.msra.gmra.mxu0 %vm559_vm0, %v1623_v15  ;;  %1569 = vmatmul.msk.bf16.vlgmr.msra.gmra.mxu1 %vm559_vm0, %v1623_v15 }
  0xdf   : > { %1748 = vset.pattern.permute.xlu1 %v1901_v13 }
  0xea   : > { %1574 = vmatmul.msk.bf16.gmra.mxu2 %vm559_vm0, %v1624_v18  ;;  %1578 = vmatmul.msk.bf16.gmra.mxu3 %vm559_vm0, %v1624_v18 }
  0xec   : > { %1566 = vmatmul.msk.bf16.gmra.mxu0 %vm559_vm0, %v1624_v18  ;;  %1570 = vmatmul.msk.bf16.gmra.mxu1 %vm559_vm0, %v1624_v18 }
  0xf1   : > { %1747 = vset.pattern.permute.xlu0 %v1901_v13  ;;  %v2103_v13 = vpop.permute.xlu2 %531 }
  0xf9   : > { %v2105_v22 = vpop.permute.xlu2 %536 }
  0xfa   : > { %1575 = vmatmul.msk.bf16.gmra.mxu2 %vm559_vm0, %v1625_v20  ;;  %1579 = vmatmul.msk.bf16.gmra.mxu3 %vm559_vm0, %v1625_v20 }
  0xfc   : > { %1567 = vmatmul.msk.bf16.gmra.mxu0 %vm559_vm0, %v1625_v20  ;;  %1571 = vmatmul.msk.bf16.gmra.mxu1 %vm559_vm0, %v1625_v20 }
 0x101   : > { %v2107_v23 = vpop.permute.xlu2 %521 }
 0x109   : > { %v2109_v24 = vpop.permute.xlu2 %526 }
 0x10a   : > { %1576 = vmatmul.msk.bf16.gmra.mxu2 %vm559_vm0, %v1626_v21  ;;  %1580 = vmatmul.msk.bf16.gmra.mxu3 %vm559_vm0, %v1626_v21 }
 0x10c   : > { %1568 = vmatmul.msk.bf16.gmra.mxu0 %vm559_vm0, %v1626_v21  ;;  %1572 = vmatmul.msk.bf16.gmra.mxu1 %vm559_vm0, %v1626_v21 }
 0x111   : > { %v512_v27 = vpop.permute.xlu2 %511 }
 0x119   : > { %v2111_v32 = vpop.permute.xlu2 %516 }
 0x121   : > { %v502_v39 = vpop.permute.xlu2 %501 }
 0x129   : > { %v507_v49 = vpop.permute.xlu2 %506 }
 0x159   : > { %v581_v25 = vpop.f32.mrf.mxu0  ;;  %v610_v26 = vpop.f32.mrf.mxu1 }
 0x15a   : > { %v582_v44 = vadd.f32 %v581_v25, %v502_v39  ;;  %v611_v45 = vadd.f32 %v610_v26, %v502_v39 }
 0x15c   : > { %v688_v51 = vmul.f32 0.5, %v582_v44  ;;  %v689_v53 = vmul.f32 0.5, %v611_v45 }
 0x15d   : > { %v639_v28 = vpop.f32.mrf.mxu2  ;;  %v668_v29 = vpop.f32.mrf.mxu3 }
 0x15e   : > { %v640_v46 = vadd.f32 %v639_v28, %v502_v39  ;;  %v669_v50 = vadd.f32 %v668_v29, %v502_v39  ;;  %1749 = vtanh.f32 %v688_v51 }
 0x15f   : > { %1751 = vtanh.f32 %v689_v53 }
 0x160   : > { %v690_v55 = vmul.f32 0.5, %v640_v46  ;;  %v691_v57 = vmul.f32 0.5, %v669_v50 }
 0x161   : > { %v583_v30 = vpop.f32.mrf.mxu0  ;;  %v612_v31 = vpop.f32.mrf.mxu1 }
 0x162   : > { %v584_v52 = vadd.f32 %v583_v30, %v507_v49  ;;  %v613_v54 = vadd.f32 %v612_v31, %v507_v49  ;;  %1753 = vtanh.f32 %v690_v55 }
 0x163   : > { %1755 = vtanh.f32 %v691_v57 }
 0x164   : > { %v692_v61 = vmul.f32 0.5, %v584_v52  ;;  %v693_v63 = vmul.f32 0.5, %v613_v54  ;;  %v2119_v11 = vpop.eup %1749 }
 0x165   : > { %v641_v33 = vpop.f32.mrf.mxu2  ;;  %v670_v34 = vpop.f32.mrf.mxu3 }
 0x166   : > { %v642_v56 = vadd.f32 %v641_v33, %v507_v49  ;;  %v671_v58 = vadd.f32 %v670_v34, %v507_v49  ;;  %1757 = vtanh.f32 %v692_v61  ;;  %v2122_v15 = vpop.eup %1751 }
 0x167   : > { %1759 = vtanh.f32 %v693_v63 }
 0x168   : > { %v694_v1 = vmul.f32 0.5, %v642_v56  ;;  %v695_v5 = vmul.f32 0.5, %v671_v58  ;;  %v2125_v20 = vpop.eup %1753 }
 0x169   : > { %v586_v35 = vpop.f32.mrf.mxu0  ;;  %v615_v36 = vpop.f32.mrf.mxu1 }
 0x16a   : > { %v587_v62 = vadd.f32 %v586_v35, %v512_v27  ;;  %v616_v0 = vadd.f32 %v615_v36, %v512_v27  ;;  %1761 = vtanh.f32 %v694_v1  ;;  %v2128_v26 = vpop.eup %1755 }
 0x16b   : > { %1763 = vtanh.f32 %v695_v5 }
 0x16c   : > { %v696_v7 = vmul.f32 0.5, %v587_v62  ;;  %v697_v9 = vmul.f32 0.5, %v616_v0  ;;  %v2131_v29 = vpop.eup %1757 }
 0x16d   : > { %v644_v37 = vpop.f32.mrf.mxu2  ;;  %v673_v38 = vpop.f32.mrf.mxu3 }
 0x16e   : > { %v645_v2 = vadd.f32 %v644_v37, %v512_v27  ;;  %v674_v6 = vadd.f32 %v673_v38, %v512_v27  ;;  %1765 = vtanh.f32 %v696_v7  ;;  %v2134_v35 = vpop.eup %1759 }
 0x16f   : > { %1767 = vtanh.f32 %v697_v9 }
 0x170   : > { %v698_v12 = vmul.f32 0.5, %v645_v2  ;;  %v699_v16 = vmul.f32 0.5, %v674_v6  ;;  %v2137_v38 = vpop.eup %1761 }
 0x171   : > { %v588_v40 = vpop.f32.mrf.mxu0  ;;  %v617_v41 = vpop.f32.mrf.mxu1 }
 0x172   : > { %v589_v8 = vadd.f32 %v588_v40, %v2111_v32  ;;  %v618_v10 = vadd.f32 %v617_v41, %v2111_v32  ;;  %1769 = vtanh.f32 %v698_v12  ;;  %v2140_v40 = vpop.eup %1763 }
 0x173   : > { %1771 = vtanh.f32 %v699_v16 }
 0x174   : > { %v700_v21 = vmul.f32 0.5, %v589_v8  ;;  %v701_v27 = vmul.f32 0.5, %v618_v10  ;;  %v2143_v45 = vpop.eup %1765 }
 0x175   : > { %v2113_v42 = vpop.f32.mrf.mxu2  ;;  %v2115_v43 = vpop.f32.mrf.mxu3 }
 0x176   : > { %1773 = vtanh.f32 %v700_v21  ;;  %v647_v7 = vadd.f32 %v2113_v42, %v2111_v32  ;;  %v676_v9 = vadd.f32 %v2115_v43, %v2111_v32  ;;  %v2169_v43 = vmul.f32 0.5, %v2119_v11 }
 0x177   : > { %1775 = vtanh.f32 %v701_v27 }
 0x179   : > { %v591_v47 = vpop.f32.mrf.mxu0  ;;  %v620_v48 = vpop.f32.mrf.mxu1 }
 0x17a   : > { %v592_v14 = vadd.f32 %v591_v47, %v2107_v23  ;;  %v621_v17 = vadd.f32 %v620_v48, %v2107_v23  ;;  %v2145_v47 = vpop.eup %1767 }
 0x17b   : > { %v2147_v51 = vpop.eup %1769 }
 0x17c   : > { %v704_v30 = vmul.f32 0.5, %v592_v14  ;;  %v705_v36 = vmul.f32 0.5, %v621_v17  ;;  %v2150_v54 = vpop.eup %1771  ;;  %v753_v17 = vmul.f32 0.5, %v2122_v15  ;;  %v2172_v15 = vmul.f32 0.5, %v2131_v29 }
 0x17d   : > { %v649_v59 = vpop.f32.mrf.mxu2  ;;  %v678_v60 = vpop.f32.mrf.mxu3  ;;  %v761_v29 = vmul.f32 0.5, %v2145_v47 }
 0x17e   : > { %v650_v25 = vadd.f32 %v649_v59, %v2107_v23  ;;  %v679_v28 = vadd.f32 %v678_v60, %v2107_v23  ;;  %1777 = vtanh.f32 %v704_v30  ;;  %v1774_v57 = vpop.eup %1773  ;;  %v703_v30 = vmul.f32 0.5, %v676_v9 }
 0x17f   : > { %1779 = vtanh.f32 %v705_v36  ;;  %v1776_v62 = vpop.eup %1775  ;;  %v2177_v36 = vmul.f32 0.5, %v2134_v35 }
 0x180   : > { %v706_v39 = vmul.f32 0.5, %v650_v25  ;;  %v707_v41 = vmul.f32 0.5, %v679_v28  ;;  %v702_v25 = vmul.f32 0.5, %v647_v7 }
 0x181   : > { %v593_v3 = vpop.f32.mrf.mxu0  ;;  %v622_v4 = vpop.f32.mrf.mxu1 }
 0x182   : > { %v594_v31 = vadd.f32 %v593_v3, %v2109_v24  ;;  %v623_v44 = vadd.f32 %v622_v4, %v2109_v24  ;;  %1781 = vtanh.f32 %v706_v39 }
 0x183   : > { %1783 = vtanh.f32 %v707_v41 }
 0x184   : > { %v708_v46 = vmul.f32 0.5, %v594_v31  ;;  %v709_v55 = vmul.f32 0.5, %v623_v44  ;;  %v1778_v2 = vpop.eup %1777 }
 0x185   : > { %v651_v18 = vpop.f32.mrf.mxu2  ;;  %v680_v19 = vpop.f32.mrf.mxu3 }
 0x186   : > { %1785 = vtanh.f32 %v708_v46  ;;  %v652_v58 = vadd.f32 %v651_v18, %v2109_v24  ;;  %v681_v63 = vadd.f32 %v680_v19, %v2109_v24  ;;  %v1780_v3 = vpop.eup %1779 }
 0x188   : > { %v2157_v6 = vpop.eup %1781  ;;  %v710_v8 = vmul.f32 0.5, %v652_v58  ;;  %v711_v10 = vmul.f32 0.5, %v681_v63 }
 0x189   : > { %v596_v33 = vpop.f32.mrf.mxu0  ;;  %v625_v34 = vpop.f32.mrf.mxu1 }
 0x18a   : > { %v597_v37 = vadd.f32 %v596_v33, %v2103_v13  ;;  %v626_v23 = vadd.f32 %v625_v34, %v2103_v13  ;;  %v2161_v24 = vpop.eup %1783 }
 0x18c   : > { %v712_v48 = vmul.f32 0.5, %v597_v37  ;;  %v713_v52 = vmul.f32 0.5, %v626_v23  ;;  %v1786_v16 = vpop.eup %1785  ;;  %v760_v37 = vmul.f32 0.5, %v2143_v45  ;;  %v764_v23 = vmul.f32 0.5, %v1774_v57 }
 0x18d   : > { %v654_v49 = vpop.f32.mrf.mxu2  ;;  %v683_v50 = vpop.f32.mrf.mxu3  ;;  %v772_v41 = vmul.f32 0.5, %v1786_v16  ;;  %v769_v45 = vmul.f32 0.5, %v1780_v3 }
 0x18e   : > { %v655_v53 = vadd.f32 %v654_v49, %v2103_v13  ;;  %v684_v56 = vadd.f32 %v683_v50, %v2103_v13  ;;  %1787 = vtanh.f32 %v712_v48 }
 0x18f   : > { %1789 = vtanh.f32 %v713_v52  ;;  %v765_v52 = vmul.f32 0.5, %v1776_v62 }
 0x190   : > { %v714_v59 = vmul.f32 0.5, %v655_v53  ;;  %1791 = vtanh.f32 %v709_v55  ;;  %v715_v13 = vmul.f32 0.5, %v684_v56  ;;  %v768_v53 = vmul.f32 0.5, %v1778_v2 }
 0x191   : > { %v598_v60 = vpop.f32.mrf.mxu0  ;;  %v627_v61 = vpop.f32.mrf.mxu1 }
 0x192   : > { %v599_v0 = vadd.f32 %v598_v60, %v2105_v22  ;;  %v628_v1 = vadd.f32 %v627_v61, %v2105_v22  ;;  %1793 = vtanh.f32 %v714_v59  ;;  %v800_v9 = vadd.f32 0.5, %v768_v53 }
 0x194   : > { %v716_v4 = vmul.f32 0.5, %v599_v0  ;;  %v717_v5 = vmul.f32 0.5, %v628_v1  ;;  %v1788_v42 = vpop.eup %1787  ;;  %v804_v0 = vadd.f32 0.5, %v772_v41  ;;  %v796_v1 = vadd.f32 0.5, %v764_v23 }
 0x195   : > { %v656_v12 = vpop.f32.mrf.mxu2  ;;  %v685_v14 = vpop.f32.mrf.mxu3  ;;  %v776_v33 = vmul.f32 0.5, %v1788_v42  ;;  %v763_v23 = vmul.f32 0.5, %v2150_v54 }
 0x196   : > { %1795 = vtanh.f32 %v716_v4  ;;  %v657_v18 = vadd.f32 %v656_v12, %v2105_v22  ;;  %v686_v19 = vadd.f32 %v685_v14, %v2105_v22  ;;  %v1790_v21 = vpop.eup %1789  ;;  %v2174_v22 = vadd.f32 0.5, %v753_v17 }
 0x197   : > { %1797 = vtanh.f32 %v717_v5  ;;  %v1792_v32 = vpop.eup %1791  ;;  %v777_v39 = vmul.f32 0.5, %v1790_v21  ;;  %v808_v35 = vadd.f32 0.5, %v776_v33  ;;  %v770_v12 = vmul.f32 0.5, %v2157_v6 }
 0x198   : > { %1799 = vtanh.f32 %v715_v13  ;;  %v718_v27 = vmul.f32 0.5, %v657_v18  ;;  %v719_v28 = vmul.f32 0.5, %v686_v19  ;;  %v1794_v31 = vpop.eup %1793  ;;  %v773_v48 = vmul.f32 0.5, %v1792_v32 }
 0x199   : > { %1801 = vtanh.f32 %v710_v8  ;;  %v778_v58 = vmul.f32 0.5, %v1794_v31  ;;  %v809_v59 = vadd.f32 0.5, %v777_v39  ;;  %v801_v14 = vadd.f32 0.5, %v769_v45 }
 0x19a   : > { %1803 = vtanh.f32 %v711_v10  ;;  %v805_v7 = vadd.f32 0.5, %v773_v48  ;;  %v797_v10 = vadd.f32 0.5, %v765_v52  ;;  %v771_v18 = vmul.f32 0.5, %v2161_v24 }
 0x19b   : > { %1805 = vtanh.f32 %v718_v27  ;;  %v810_v16 = vadd.f32 0.5, %v778_v58  ;;  %v832_v19 = vpack.c.bf16 %v804_v0, %v800_v9  ;;  %v792_v33 = vadd.f32 0.5, %v760_v37 }
 0x19c   : > { %v1796_v34 = vpop.eup %1795  ;;  %1807 = vtanh.f32 %v719_v28  ;;  %v833_v27 = vpack.c.bf16 %v805_v7, %v801_v14  ;;  %v762_v6 = vmul.f32 0.5, %v2147_v51  ;;  %v793_v39 = vadd.f32 0.5, %v761_v29 }
 0x19d   : > { %v1798_v11 = vpop.eup %1797  ;;  %1809 = vtanh.f32 %v702_v25  ;;  %v780_v44 = vmul.f32 0.5, %v1796_v34  ;;  %v788_v24 = vadd.f32 0.5, %v2172_v15  ;;  %v828_v41 = vpack.c.bf16 %v796_v1, %v792_v33 }
 0x19e   : > { %v1800_v46 = vpop.eup %1799  ;;  %1811 = vtanh.f32 %v703_v30  ;;  %v781_v49 = vmul.f32 0.5, %v1798_v11  ;;  %v802_v11 = vadd.f32 0.5, %v770_v12  ;;  %v758_v48 = vmul.f32 0.5, %v2137_v38 }
 0x19f   : > { %v1802_v50 = vpop.eup %1801  ;;  %v812_v55 = vadd.f32 0.5, %v780_v44  ;;  %v779_v61 = vmul.f32 0.5, %v1800_v46  ;;  %v803_v44 = vadd.f32 0.5, %v771_v18  ;;  %v789_v46 = vadd.f32 0.5, %v2177_v36 }
 0x1a0   : > { %v1804_v56 = vpop.eup %1803  ;;  %v813_v60 = vadd.f32 0.5, %v781_v49  ;;  %v774_v47 = vmul.f32 0.5, %v1802_v50  ;;  %v829_v49 = vpack.c.bf16 %v797_v10, %v793_v39  ;;  %v759_v51 = vmul.f32 0.5, %v2140_v40  ;;  %v1627_v40 = vld [vmem:[%s2464_s2] sm:$0xff] }
 0x1a1   : > { %v1806_v57 = vpop.eup %1805  ;;  %v836_v63 = vpack.c.bf16 %v812_v55, %v808_v35  ;;  %v775_v62 = vmul.f32 0.5, %v1804_v56  ;;  %v811_v42 = vadd.f32 0.5, %v779_v61  ;;  %v784_v29 = vadd.f32 0.5, %v2169_v43  ;;  %v1630_v61 = vld [vmem:[%s2464_s2 + $0x18] sm:$0xff] }
 0x1a2   : > { %v1808_v13 = vpop.eup %1807  ;;  %v782_v4 = vmul.f32 0.5, %v1806_v57  ;;  %v837_v5 = vpack.c.bf16 %v813_v60, %v809_v59  ;;  %v806_v32 = vadd.f32 0.5, %v774_v47  ;;  %v754_v15 = vmul.f32 0.5, %v2125_v20  ;;  %v1628_v60 = vld [vmem:[%s2464_s2 + $0x8] sm:$0xff]  ;;  %v1629_v57 = vld [vmem:[%s2464_s2 + $0x10] sm:$0xff] }
 0x1a3   : > { %v1810_v8 = vpop.eup %1809  ;;  %v783_v2 = vmul.f32 0.5, %v1808_v13  ;;  %925 = vmatpush.bf16.msrb.mxu0 %v836_v63  ;;  %v807_v34 = vadd.f32 0.5, %v775_v62  ;;  %v794_v54 = vadd.f32 0.5, %v762_v6  ;;  %v755_v35 = vmul.f32 0.5, %v2128_v26  ;;  %v2221_v63 = vpop.permute.xlu2 %880 }
 0x1a4   : > { %v1812_v3 = vpop.eup %1811  ;;  %954 = vmatpush.bf16.msrb.mxu1 %v837_v5  ;;  %v814_v17 = vadd.f32 0.5, %v782_v4  ;;  %v766_v25 = vmul.f32 0.5, %v1810_v8  ;;  %v834_v37 = vpack.c.bf16 %v806_v32, %v802_v11  ;;  %v824_v36 = vpack.c.bf16 %v788_v24, %v784_v29 }
 0x1a5   : > { %v815_v21 = vadd.f32 0.5, %v783_v2  ;;  %v767_v30 = vmul.f32 0.5, %v1812_v3  ;;  %v835_v52 = vpack.c.bf16 %v807_v34, %v803_v44  ;;  %v795_v38 = vadd.f32 0.5, %v763_v23 }
 0x1a6   : > { %v838_v28 = vpack.c.bf16 %v814_v17, %v810_v16  ;;  %v798_v50 = vadd.f32 0.5, %v766_v25  ;;  %v825_v55 = vpack.c.bf16 %v789_v46, %v2174_v22  ;;  %v790_v45 = vadd.f32 0.5, %v758_v48 }
 0x1a7   : > { %926 = vmatpush.bf16.msrb.mxu0 %v832_v19  ;;  %v839_v31 = vpack.c.bf16 %v815_v21, %v811_v42  ;;  %v799_v53 = vadd.f32 0.5, %v767_v30  ;;  %v791_v20 = vadd.f32 0.5, %v759_v51  ;;  %v786_v58 = vadd.f32 0.5, %v754_v15 }
 0x1a8   : > { %955 = vmatpush.bf16.msrb.mxu1 %v833_v27  ;;  %983 = vmatpush.bf16.msrb.mxu2 %v838_v28  ;;  %v830_v56 = vpack.c.bf16 %v798_v50, %v794_v54  ;;  %v787_v26 = vadd.f32 0.5, %v755_v35 }
 0x1a9   : > { %1012 = vmatpush.bf16.msrb.mxu3 %v839_v31  ;;  %v831_v43 = vpack.c.bf16 %v799_v53, %v795_v38  ;;  %v826_v59 = vpack.c.bf16 %v790_v45, %v786_v58 }
 0x1aa   : > { %v827_v22 = vpack.c.bf16 %v791_v20, %v787_v26 }
 0x1ab   : > { %927 = vmatpush.bf16.msrb.mxu0 %v828_v41  ;;  %v2223_v0 = vpop.permute.xlu2 %885 }
 0x1ac   : > { %956 = vmatpush.bf16.msrb.mxu1 %v829_v49  ;;  %984 = vmatpush.bf16.msrb.mxu2 %v834_v37 }
 0x1ad   : > { %1013 = vmatpush.bf16.msrb.mxu3 %v835_v52 }
 0x1af   : > { %928 = vmatpush.bf16.msrb.mxu0 %v824_v36 }
 0x1b0   : > { %957 = vmatpush.bf16.msrb.mxu1 %v825_v55  ;;  %985 = vmatpush.bf16.msrb.mxu2 %v830_v56 }
 0x1b1   : > { %1014 = vmatpush.bf16.msrb.mxu3 %v831_v43 }
 0x1b2   : > { %1597 = vmatmul.msk.bf16.vlgmr.msrb.gmra.mxu0 %vm908_vm1, %v1627_v40 }
 0x1b3   : > { %1601 = vmatmul.msk.bf16.vlgmr.msrb.gmra.mxu1 %vm908_vm1, %v1627_v40  ;;  %v2225_v1 = vpop.permute.xlu2 %870 }
 0x1b4   : > { %986 = vmatpush.bf16.msrb.mxu2 %v826_v59 }
 0x1b5   : > { %1015 = vmatpush.bf16.msrb.mxu3 %v827_v22 }
 0x1b7   : > { %1605 = vmatmul.msk.bf16.vlgmr.msrb.gmra.mxu2 %vm908_vm1, %v1627_v40 }
 0x1b8   : > { %1609 = vmatmul.msk.bf16.vlgmr.msrb.gmra.mxu3 %vm908_vm1, %v1627_v40 }
 0x1bb   : > { %v2227_v13 = vpop.permute.xlu2 %875 }
 0x1c2   : > { %1598 = vmatmul.msk.bf16.gmra.mxu0 %vm908_vm1, %v1628_v60 }
 0x1c3   : > { %1602 = vmatmul.msk.bf16.gmra.mxu1 %vm908_vm1, %v1628_v60  ;;  %v2229_v8 = vpop.permute.xlu2 %860 }
 0x1c7   : > { %1606 = vmatmul.msk.bf16.gmra.mxu2 %vm908_vm1, %v1628_v60 }
 0x1c8   : > { %1610 = vmatmul.msk.bf16.gmra.mxu3 %vm908_vm1, %v1628_v60 }
 0x1cb   : > { %v2233_v12 = vpop.permute.xlu2 %865 }
 0x1d2   : > { %1599 = vmatmul.msk.bf16.gmra.mxu0 %vm908_vm1, %v1629_v57 }
 0x1d3   : > { %1603 = vmatmul.msk.bf16.gmra.mxu1 %vm908_vm1, %v1629_v57  ;;  %v851_v42 = vpop.permute.xlu2 %850 }
 0x1d7   : > { %1607 = vmatmul.msk.bf16.gmra.mxu2 %vm908_vm1, %v1629_v57 }
 0x1d8   : > { %1611 = vmatmul.msk.bf16.gmra.mxu3 %vm908_vm1, %v1629_v57 }
 0x1db   : > { %v2245_v30 = vpop.permute.xlu2 %855 }
 0x1e2   : > { %1600 = vmatmul.msk.bf16.gmra.mxu0 %vm908_vm1, %v1630_v61 }
 0x1e3   : > { %1604 = vmatmul.msk.bf16.gmra.mxu1 %vm908_vm1, %v1630_v61 }
 0x1e7   : > { %1608 = vmatmul.msk.bf16.gmra.mxu2 %vm908_vm1, %v1630_v61 }
 0x1e8   : > { %1612 = vmatmul.msk.bf16.gmra.mxu3 %vm908_vm1, %v1630_v61 }
 0x22f   : > { %v930_v47 = vpop.f32.mrf.mxu0 }
 0x230   : > { %v959_v4 = vpop.f32.mrf.mxu1  ;;  %v931_v32 = vadd.f32 %v930_v47, %v851_v42 }
 0x231   : > { %v960_v31 = vadd.f32 %v959_v4, %v851_v42 }
 0x232   : > { %v1037_v11 = vmul.f32 0.5, %v931_v32 }
 0x233   : > { %v1038_v41 = vmul.f32 0.5, %v960_v31 }
 0x234   : > { %1813 = vtanh.f32 %v1037_v11 }
 0x235   : > { %1815 = vtanh.f32 %v1038_v41 }
 0x237   : > { %v932_v5 = vpop.f32.mrf.mxu0 }
 0x238   : > { %v961_v7 = vpop.f32.mrf.mxu1  ;;  %v933_v34 = vadd.f32 %v932_v5, %v2245_v30 }
 0x239   : > { %v962_v39 = vadd.f32 %v961_v7, %v2245_v30 }
 0x23a   : > { %v988_v62 = vpop.f32.mrf.mxu2  ;;  %v1041_v48 = vmul.f32 0.5, %v933_v34  ;;  %v1814_v26 = vpop.eup %1813 }
 0x23b   : > { %v1017_v2 = vpop.f32.mrf.mxu3  ;;  %v989_v24 = vadd.f32 %v988_v62, %v851_v42  ;;  %v1042_v37 = vmul.f32 0.5, %v962_v39  ;;  %v1816_v60 = vpop.eup %1815  ;;  %v2261_v7 = vmul.f32 0.5, %v1814_v26 }
 0x23c   : > { %v1018_v44 = vadd.f32 %v1017_v2, %v851_v42  ;;  %1817 = vtanh.f32 %v1041_v48 }
 0x23d   : > { %v1039_v51 = vmul.f32 0.5, %v989_v24  ;;  %1819 = vtanh.f32 %v1042_v37 }
 0x23e   : > { %v1040_v29 = vmul.f32 0.5, %v1018_v44 }
 0x23f   : > { %v935_v9 = vpop.f32.mrf.mxu0  ;;  %1821 = vtanh.f32 %v1039_v51 }
 0x240   : > { %v964_v10 = vpop.f32.mrf.mxu1  ;;  %v936_v49 = vadd.f32 %v935_v9, %v2229_v8  ;;  %1823 = vtanh.f32 %v1040_v29 }
 0x241   : > { %v965_v50 = vadd.f32 %v964_v10, %v2229_v8  ;;  %v2265_v10 = vmul.f32 0.5, %v1816_v60 }
 0x242   : > { %v2231_v3 = vpop.f32.mrf.mxu2  ;;  %v1045_v54 = vmul.f32 0.5, %v936_v49  ;;  %v1818_v47 = vpop.eup %1817 }
 0x243   : > { %v2235_v14 = vpop.f32.mrf.mxu3  ;;  %v1046_v38 = vmul.f32 0.5, %v965_v50  ;;  %v2259_v5 = vpop.eup %1819  ;;  %v2287_v50 = vmul.f32 0.5, %v1818_v47 }
 0x244   : > { %1825 = vtanh.f32 %v1045_v54 }
 0x245   : > { %1827 = vtanh.f32 %v1046_v38  ;;  %v2263_v9 = vpop.eup %1821 }
 0x247   : > { %v937_v16 = vpop.f32.mrf.mxu0 }
 0x248   : > { %v966_v17 = vpop.f32.mrf.mxu1  ;;  %v938_v59 = vadd.f32 %v937_v16, %v2233_v12 }
 0x249   : > { %v967_v57 = vadd.f32 %v966_v17, %v2233_v12 }
 0x24a   : > { %v2237_v18 = vpop.f32.mrf.mxu2  ;;  %v1049_v16 = vmul.f32 0.5, %v938_v59 }
 0x24b   : > { %v2239_v19 = vpop.f32.mrf.mxu3  ;;  %v994_v34 = vadd.f32 %v2237_v18, %v2229_v8 }
 0x24c   : > { %v1023_v41 = vadd.f32 %v2239_v19, %v2229_v8 }
 0x24e   : > { %v2297_v54 = vmul.f32 0.5, %v1023_v41 }
 0x24f   : > { %v940_v21 = vpop.f32.mrf.mxu0 }
 0x250   : > { %v969_v25 = vpop.f32.mrf.mxu1  ;;  %v941_v52 = vadd.f32 %v940_v21, %v2225_v1  ;;  %v2268_v21 = vpop.eup %1823 }
 0x251   : > { %v970_v53 = vadd.f32 %v969_v25, %v2225_v1  ;;  %v1050_v25 = vmul.f32 0.5, %v967_v57 }
 0x252   : > { %v2241_v27 = vpop.f32.mrf.mxu2  ;;  %v1053_v56 = vmul.f32 0.5, %v941_v52  ;;  %v991_v52 = vadd.f32 %v2231_v3, %v2245_v30 }
 0x253   : > { %v2243_v28 = vpop.f32.mrf.mxu3  ;;  %v1054_v43 = vmul.f32 0.5, %v970_v53  ;;  %v996_v37 = vadd.f32 %v2241_v27, %v2233_v12 }
 0x254   : > { %1829 = vtanh.f32 %v1053_v56  ;;  %v1025_v18 = vadd.f32 %v2243_v28, %v2233_v12  ;;  %v1020_v12 = vadd.f32 %v2235_v14, %v2245_v30  ;;  %v1184_v14 = vld [vmem:[%s2468_s6 + $0x8] sm:$0xff] }
 0x255   : > { %1831 = vtanh.f32 %v1054_v43  ;;  %1192 = vperm.xlu1 %1748, %v1184_v14  }
 0x257   : > { %v942_v33 = vpop.f32.mrf.mxu0 }
 0x258   : > { %v971_v6 = vpop.f32.mrf.mxu1  ;;  %v943_v40 = vadd.f32 %v942_v33, %v2227_v13  ;;  %v2272_v33 = vpop.eup %1825 }
 0x259   : > { %v972_v20 = vadd.f32 %v971_v6, %v2227_v13  ;;  %v2277_v24 = vpop.eup %1827 }
 0x25a   : > { %v998_v23 = vpop.f32.mrf.mxu2  ;;  %v1057_v4 = vmul.f32 0.5, %v943_v40  ;;  %v1830_v49 = vpop.eup %1829 }
 0x25b   : > { %v1027_v46 = vpop.f32.mrf.mxu3  ;;  %v1058_v62 = vmul.f32 0.5, %v972_v20  ;;  %v999_v32 = vadd.f32 %v998_v23, %v2225_v1  ;;  %v1117_v3 = vmul.f32 0.5, %v1830_v49  ;;  %v1109_v49 = vmul.f32 0.5, %v2272_v33 }
 0x25c   : > { %v1028_v6 = vadd.f32 %v1027_v46, %v2225_v1  ;;  %v1832_v46 = vpop.eup %1831 }
 0x25d   : > { %v1055_v51 = vmul.f32 0.5, %v999_v32 }
 0x25e   : > { %v1056_v29 = vmul.f32 0.5, %v1028_v6 }
 0x25f   : > { %v945_v15 = vpop.f32.mrf.mxu0 }
 0x260   : > { %v946_v35 = vadd.f32 %v945_v15, %v2221_v63  ;;  %v974_v36 = vpop.f32.mrf.mxu1 }
 0x261   : > { %v975_v55 = vadd.f32 %v974_v36, %v2221_v63  ;;  %v1052_v36 = vmul.f32 0.5, %v1025_v18  ;;  %v1149_v18 = vadd.f32 0.5, %v1117_v3 }
 0x262   : > { %v1000_v45 = vpop.f32.mrf.mxu2  ;;  %v1061_v22 = vmul.f32 0.5, %v946_v35  ;;  %v1051_v35 = vmul.f32 0.5, %v996_v37  ;;  %v1043_v37 = vmul.f32 0.5, %v991_v52 }
 0x263   : > { %v1029_v58 = vpop.f32.mrf.mxu3  ;;  %v1062_v61 = vmul.f32 0.5, %v975_v55  ;;  %v1001_v8 = vadd.f32 %v1000_v45, %v2227_v13  ;;  %v1118_v45 = vmul.f32 0.5, %v1832_v46  ;;  %v1110_v46 = vmul.f32 0.5, %v2277_v24 }
 0x264   : > { %1833 = vtanh.f32 %v1061_v22  ;;  %v1030_v27 = vadd.f32 %v1029_v58, %v2227_v13  ;;  %v1183_v13 = vld [vmem:[%s2468_s6] sm:$0xff]  ;;  %v1137_v24 = vadd.f32 0.5, %v2287_v50 }
 0x265   : > { %1835 = vtanh.f32 %v1062_v61  ;;  %v1059_v40 = vmul.f32 0.5, %v1001_v8  ;;  %1187 = vperm.xlu0 %1747, %v1183_v13   ;;  %v1150_v8 = vadd.f32 0.5, %v1118_v45 }
 0x266   : > { %1837 = vtanh.f32 %v1057_v4  ;;  %v1060_v20 = vmul.f32 0.5, %v1030_v27 }
 0x267   : > { %v947_v2 = vpop.f32.mrf.mxu0  ;;  %1839 = vtanh.f32 %v1058_v62 }
 0x268   : > { %v948_v42 = vadd.f32 %v947_v2, %v2223_v0  ;;  %v976_v17 = vpop.f32.mrf.mxu1 }
 0x269   : > { %v977_v31 = vadd.f32 %v976_v17, %v2223_v0 }
 0x26a   : > { %v1065_v39 = vmul.f32 0.5, %v948_v42  ;;  %v1003_v11 = vpop.f32.mrf.mxu2  ;;  %v1834_v19 = vpop.eup %1833 }
 0x26b   : > { %v1066_v23 = vmul.f32 0.5, %v977_v31  ;;  %v1004_v44 = vadd.f32 %v1003_v11, %v2221_v63  ;;  %v1032_v48 = vpop.f32.mrf.mxu3  ;;  %v1836_v53 = vpop.eup %1835  ;;  %v1125_v56 = vmul.f32 0.5, %v1834_v19 }
 0x26c   : > { %1841 = vtanh.f32 %v1065_v39  ;;  %v1033_v1 = vadd.f32 %v1032_v48, %v2221_v63  ;;  %v2295_v63 = vmul.f32 0.5, %v994_v34  ;;  %v1838_v15 = vpop.eup %1837  ;;  %v1126_v43 = vmul.f32 0.5, %v1836_v53 }
 0x26d   : > { %1843 = vtanh.f32 %v1066_v23  ;;  %v1063_v28 = vmul.f32 0.5, %v1004_v44  ;;  %v1840_v55 = vpop.eup %1839  ;;  %v1121_v59 = vmul.f32 0.5, %v1838_v15 }
 0x26e   : > { %1845 = vtanh.f32 %v1049_v16  ;;  %v1064_v38 = vmul.f32 0.5, %v1033_v1  ;;  %v1122_v47 = vmul.f32 0.5, %v1840_v55  ;;  %v1157_v16 = vadd.f32 0.5, %v1125_v56 }
 0x26f   : > { %1847 = vtanh.f32 %v1050_v25  ;;  %v1158_v25 = vadd.f32 0.5, %v1126_v43  ;;  %v1153_v39 = vadd.f32 0.5, %v1121_v59  ;;  %v1142_v55 = vadd.f32 0.5, %v1110_v46 }
 0x270   : > { %1849 = vtanh.f32 %v1055_v51  ;;  %v1154_v44 = vadd.f32 0.5, %v1122_v47  ;;  %v1044_v51 = vmul.f32 0.5, %v1020_v12  ;;  %v1141_v12 = vadd.f32 0.5, %v1109_v49 }
 0x271   : > { %1851 = vtanh.f32 %v1056_v29  ;;  %v1106_v29 = vmul.f32 0.5, %v2259_v5  ;;  %v1175_v53 = vpack.c.bf16 %v1153_v39, %v1149_v18 }
 0x272   : > { %v1842_v30 = vpop.eup %1841  ;;  %v1005_v58 = vpop.f32.mrf.mxu2  ;;  %1853 = vtanh.f32 %v1063_v28  ;;  %v1176_v15 = vpack.c.bf16 %v1154_v44, %v1150_v8 }
 0x273   : > { %v1844_v26 = vpop.eup %1843  ;;  %v1129_v22 = vmul.f32 0.5, %v1842_v30  ;;  %v1006_v60 = vadd.f32 %v1005_v58, %v2223_v0  ;;  %v1034_v57 = vpop.f32.mrf.mxu3  ;;  %1855 = vtanh.f32 %v1064_v38  ;;  %v1138_v56 = vadd.f32 0.5, %v1106_v29 }
 0x274   : > { %v1846_v61 = vpop.eup %1845  ;;  %v1130_v4 = vmul.f32 0.5, %v1844_v26  ;;  %v1035_v62 = vadd.f32 %v1034_v57, %v2223_v0  ;;  %1857 = vtanh.f32 %v1059_v40  ;;  %v1133_v58 = vadd.f32 0.5, %v2261_v7 }
 0x275   : > { %v1848_v2 = vpop.eup %1847  ;;  %v1161_v42 = vadd.f32 0.5, %v1129_v22  ;;  %v1067_v17 = vmul.f32 0.5, %v1006_v60  ;;  %1859 = vtanh.f32 %v1060_v20  ;;  %v1113_v6 = vmul.f32 0.5, %v1846_v61 }
 0x276   : > { %v1162_v32 = vadd.f32 0.5, %v1130_v4  ;;  %v1068_v31 = vmul.f32 0.5, %v1035_v62  ;;  %v1850_v34 = vpop.eup %1849  ;;  %v1114_v23 = vmul.f32 0.5, %v1848_v2  ;;  %v1134_v57 = vadd.f32 0.5, %v2265_v10 }
 0x277   : > { %v1179_v11 = vpack.c.bf16 %v1161_v42, %v1157_v16  ;;  %1861 = vtanh.f32 %v1067_v17  ;;  %v1852_v41 = vpop.eup %1851  ;;  %v1145_v27 = vadd.f32 0.5, %v1113_v6  ;;  %v1119_v30 = vmul.f32 0.5, %v1850_v34  ;;  %v1631_v34 = vld [vmem:[%s2465_s3] sm:$0xff] }
 0x278   : > { %v1180_v48 = vpack.c.bf16 %v1162_v32, %v1158_v25  ;;  %1863 = vtanh.f32 %v1068_v31  ;;  %v1854_v0 = vpop.eup %1853  ;;  %v1146_v33 = vadd.f32 0.5, %v1114_v23  ;;  %v1120_v26 = vmul.f32 0.5, %v1852_v41 }
 0x279   : > { %1865 = vtanh.f32 %v1051_v35  ;;  %1207 = vmatpush.bf16.msra.mxu0 %v1179_v11  ;;  %v1856_v1 = vpop.eup %1855  ;;  %v1127_v52 = vmul.f32 0.5, %v1854_v0  ;;  %v1167_v17 = vpack.c.bf16 %v1137_v24, %v1133_v58  ;;  %v1151_v31 = vadd.f32 0.5, %v1119_v30 }
 0x27a   : > { %1867 = vtanh.f32 %v1052_v36  ;;  %1221 = vmatpush.bf16.msra.mxu1 %v1180_v48  ;;  %v1858_v19 = vpop.eup %1857  ;;  %v1128_v36 = vmul.f32 0.5, %v1856_v1  ;;  %v1172_v50 = vpack.c.bf16 %v1146_v33, %v1142_v55  ;;  %v1168_v7 = vpack.c.bf16 %v1138_v56, %v1134_v57 }
 0x27b   : > { %1869 = vtanh.f32 %v2295_v63  ;;  %v1860_v28 = vpop.eup %1859  ;;  %v1123_v5 = vmul.f32 0.5, %v1858_v19  ;;  %v1159_v45 = vadd.f32 0.5, %v1127_v52  ;;  %v1152_v10 = vadd.f32 0.5, %v1120_v26 }
 0x27c   : > { %1871 = vtanh.f32 %v2297_v54  ;;  %v1124_v40 = vmul.f32 0.5, %v1860_v28  ;;  %v1171_v54 = vpack.c.bf16 %v1145_v27, %v1141_v12  ;;  %v1160_v59 = vadd.f32 0.5, %v1128_v36 }
 0x27d   : > { %v1862_v35 = vpop.eup %1861  ;;  %1873 = vtanh.f32 %v1043_v37  ;;  %1208 = vmatpush.bf16.msra.mxu0 %v1175_v53  ;;  %v1155_v47 = vadd.f32 0.5, %v1123_v5  ;;  %v1103_v0 = vmul.f32 0.5, %v2263_v9  ;;  %v1104_v37 = vmul.f32 0.5, %v2268_v21 }
 0x27e   : > { %v1864_v38 = vpop.eup %1863  ;;  %1875 = vtanh.f32 %v1044_v51  ;;  %v1131_v3 = vmul.f32 0.5, %v1862_v35  ;;  %1222 = vmatpush.bf16.msra.mxu1 %v1176_v15  ;;  %v1156_v16 = vadd.f32 0.5, %v1124_v40 }
 0x27f   : > { %v1866_v63 = vpop.eup %1865  ;;  %v1132_v13 = vmul.f32 0.5, %v1864_v38  ;;  %v1177_v41 = vpack.c.bf16 %v1155_v47, %v1151_v31  ;;  %v1135_v19 = vadd.f32 0.5, %v1103_v0  ;;  %v1136_v29 = vadd.f32 0.5, %v1104_v37 }
 0x280   : > { %v1868_v14 = vpop.eup %1867  ;;  %v1163_v43 = vadd.f32 0.5, %v1131_v3  ;;  %v1115_v61 = vmul.f32 0.5, %v1866_v63  ;;  %v1178_v48 = vpack.c.bf16 %v1156_v16, %v1152_v10 }
 0x281   : > { %v1870_v20 = vpop.eup %1869  ;;  %v1164_v22 = vadd.f32 0.5, %v1132_v13  ;;  %1209 = vmatpush.bf16.msra.mxu0 %v1171_v54  ;;  %v1116_v2 = vmul.f32 0.5, %v1868_v14 }
 0x282   : > { %v1872_v60 = vpop.eup %1871  ;;  %v1181_v4 = vpack.c.bf16 %v1163_v43, %v1159_v45  ;;  %1223 = vmatpush.bf16.msra.mxu1 %v1172_v50  ;;  %v1111_v32 = vmul.f32 0.5, %v1870_v20  ;;  %v1147_v11 = vadd.f32 0.5, %v1115_v61 }
 0x283   : > { %v1874_v62 = vpop.eup %1873  ;;  %v1182_v42 = vpack.c.bf16 %v1164_v22, %v1160_v59  ;;  %v1112_v6 = vmul.f32 0.5, %v1872_v60  ;;  %v1148_v44 = vadd.f32 0.5, %v1116_v2 }
 0x284   : > { %v1876_v25 = vpop.eup %1875  ;;  %1235 = vmatpush.bf16.msra.mxu2 %v1181_v4  ;;  %v1107_v39 = vmul.f32 0.5, %v1874_v62  ;;  %v1143_v49 = vadd.f32 0.5, %v1111_v32 }
 0x285   : > { %1210 = vmatpush.bf16.msra.mxu0 %v1167_v17  ;;  %1249 = vmatpush.bf16.msra.mxu3 %v1182_v42  ;;  %v1108_v23 = vmul.f32 0.5, %v1876_v25  ;;  %v1144_v18 = vadd.f32 0.5, %v1112_v6 }
 0x286   : > { %1224 = vmatpush.bf16.msra.mxu1 %v1168_v7  ;;  %v1139_v1 = vadd.f32 0.5, %v1107_v39  ;;  %v1173_v46 = vpack.c.bf16 %v1147_v11, %v1143_v49 }
 0x287   : > { %v1140_v51 = vadd.f32 0.5, %v1108_v23  ;;  %v1174_v8 = vpack.c.bf16 %v1148_v44, %v1144_v18 }
 0x288   : > { %1617 = vmatmul.msk.bf16.vlgmr.msra.gmra.mxu0 %vm908_vm1, %v1631_v34  ;;  %1236 = vmatpush.bf16.msra.mxu2 %v1177_v41  ;;  %v1169_v27 = vpack.c.bf16 %v1139_v1, %v1135_v19 }
 0x289   : > { %1250 = vmatpush.bf16.msra.mxu3 %v1178_v48  ;;  %1618 = vmatmul.msk.bf16.vlgmr.msra.gmra.mxu1 %vm908_vm1, %v1631_v34  ;;  %v1170_v9 = vpack.c.bf16 %v1140_v51, %v1136_v29 }
 0x28c   : > { %1237 = vmatpush.bf16.msra.mxu2 %v1173_v46 }
 0x28d   : > { %1251 = vmatpush.bf16.msra.mxu3 %v1174_v8 }
 0x290   : > { %1238 = vmatpush.bf16.msra.mxu2 %v1169_v27 }
 0x291   : > { %1252 = vmatpush.bf16.msra.mxu3 %v1170_v9 }
 0x293   : > { %1619 = vmatmul.msk.bf16.vlgmr.msra.gmra.mxu2 %vm908_vm1, %v1631_v34 }
 0x294   : > { %1620 = vmatmul.msk.bf16.vlgmr.msra.gmra.mxu3 %vm908_vm1, %v1631_v34 }
 0x2c7   : > { %v1193_v52 = vpop.permute.xlu1 %1192 }
 0x2d7   : > { %v1188_v21 = vpop.permute.xlu0 %1187 }
 0x305   : > { %v1212_v53 = vpop.f32.mrf.mxu0 }
 0x306   : > { %v1213_v28 = vadd.f32 %v1212_v53, %v1188_v21  ;;  %v1226_v17 = vpop.f32.mrf.mxu1 }
 0x307   : > { %v1227_v25 = vadd.f32 %v1226_v17, %v1188_v21 }
 0x308   : > { %v1259_v33 = vmul.f32 0.5, %v1213_v28 }
 0x309   : > { %v1260_v32 = vmul.f32 0.5, %v1227_v25 }
 0x30a   : > { %1877 = vtanh.f32 %v1259_v33 }
 0x30d   : > { %v1214_v15 = vpop.f32.mrf.mxu0 }
 0x30e   : > { %v1215_v35 = vadd.f32 %v1214_v15, %v1193_v52  ;;  %v1228_v31 = vpop.f32.mrf.mxu1 }
 0x30f   : > { %v1229_v7 = vadd.f32 %v1228_v31, %v1193_v52 }
 0x310   : > { %v1878_v24 = vpop.eup %1877  ;;  %v1263_v12 = vmul.f32 0.5, %v1215_v35 }
 0x311   : > { %v1275_v36 = vmul.f32 0.5, %v1878_v24  ;;  %v1264_v34 = vmul.f32 0.5, %v1229_v7 }
 0x312   : > { %1879 = vtanh.f32 %v1263_v12 }
 0x313   : > { %v1283_v38 = vadd.f32 0.5, %v1275_v36 }
 0x315   : > { %1291 = vxpose.xlu2.b32.start [1/2] (short) %v1283_v38, 128 }
 0x316   : > { %v1240_v55 = vpop.f32.mrf.mxu2 }
 0x317   : > { %v1241_v5 = vadd.f32 %v1240_v55, %v1188_v21  ;;  %v1254_v3 = vpop.f32.mrf.mxu3 }
 0x318   : > { %v1880_v63 = vpop.eup %1879  ;;  %v1255_v56 = vadd.f32 %v1254_v3, %v1188_v21 }
 0x319   : > { %v1279_v40 = vmul.f32 0.5, %v1880_v63  ;;  %v1261_v13 = vmul.f32 0.5, %v1241_v5 }
 0x31a   : > { %v1262_v54 = vmul.f32 0.5, %v1255_v56 }
 0x31b   : > { %v1287_v14 = vadd.f32 0.5, %v1279_v40  ;;  %1881 = vtanh.f32 %v1261_v13 }
 0x31c   : > { %1883 = vtanh.f32 %v1262_v54 }
 0x31d   : > { %1292 = vxpose.xlu2.b32.end [2/2] (short) %v1287_v14, 128 }
 0x31e   : > { %v1242_v30 = vpop.f32.mrf.mxu2 }
 0x31f   : > { %v1243_v45 = vadd.f32 %v1242_v30, %v1193_v52  ;;  %v1256_v43 = vpop.f32.mrf.mxu3 }
 0x320   : > { %v1257_v50 = vadd.f32 %v1256_v43, %v1193_v52 }
 0x321   : > { %v1882_v20 = vpop.eup %1881  ;;  %v1265_v58 = vmul.f32 0.5, %v1243_v45 }
 0x322   : > { %v1884_v26 = vpop.eup %1883  ;;  %v1277_v59 = vmul.f32 0.5, %v1882_v20  ;;  %v1266_v22 = vmul.f32 0.5, %v1257_v50 }
 0x323   : > { %v1278_v60 = vmul.f32 0.5, %v1884_v26  ;;  %1885 = vtanh.f32 %v1265_v58 }
 0x324   : > { %v1285_v57 = vadd.f32 0.5, %v1277_v59  ;;  %1887 = vtanh.f32 %v1266_v22 }
 0x325   : > { %v1286_v61 = vadd.f32 0.5, %v1278_v60  ;;  %1889 = vtanh.f32 %v1260_v32 }
 0x326   : > { %1355 = vxpose.xlu1.b32.start [1/2] (short) %v1285_v57, 128  ;;  %1891 = vtanh.f32 %v1264_v34 }
 0x327   : > { %1387 = vxpose.xlu0.b32.start [1/2] (short) %v1286_v61, 128 }
 0x329   : > { %v1886_v47 = vpop.eup %1885 }
 0x32a   : > { %v1888_v4 = vpop.eup %1887  ;;  %v1281_v62 = vmul.f32 0.5, %v1886_v47 }
 0x32b   : > { %v1282_v2 = vmul.f32 0.5, %v1888_v4  ;;  %v1890_v6 = vpop.eup %1889 }
 0x32c   : > { %v1289_v16 = vadd.f32 0.5, %v1281_v62  ;;  %v1276_v10 = vmul.f32 0.5, %v1890_v6  ;;  %v1892_v11 = vpop.eup %1891 }
 0x32d   : > { %v1290_v42 = vadd.f32 0.5, %v1282_v2  ;;  %v1280_v41 = vmul.f32 0.5, %v1892_v11 }
 0x32e   : > { %1356 = vxpose.xlu1.b32.end [2/2] (short) %v1289_v16, 128  ;;  %v1284_v39 = vadd.f32 0.5, %v1276_v10 }
 0x32f   : > { %1388 = vxpose.xlu0.b32.end [2/2] (short) %v1290_v42, 128  ;;  %v1288_v23 = vadd.f32 0.5, %v1280_v41 }
 0x395   : > { %1323 = vxpose.xlu2.b32.start [1/2] (short) %v1284_v39, 128 }
 0x39d   : > { %1324 = vxpose.xlu2.b32.end [2/2] (short) %v1288_v23, 128 }
 0x3ae   : > { %v1307_v44 = vpop.trf.xlu2 }
 0x3af   : > { %1420 = vst.msk [vmem:[%s2329_s25] sm:$0xff] %vm1419_vm2, %v1307_v44 }
 0x3b6   : > { %v1308_v48 = vpop.trf.xlu2 }
 0x3b7   : > { %1421 = vst.msk [vmem:[%s2329_s25 + $0x8] sm:$0xff] %vm1419_vm2, %v1308_v48 }
 0x3be   : > { %v1309_v0 = vpop.trf.xlu2 }
 0x3bf   : > { %1422 = vst.msk [vmem:[%s2329_s25 + $0x10] sm:$0xff] %vm1419_vm2, %v1309_v0 }
 0x3c6   : > { %v1310_v49 = vpop.trf.xlu2 }
 0x3c7   : > { %1423 = vst.msk [vmem:[%s2329_s25 + $0x18] sm:$0xff] %vm1419_vm2, %v1310_v49 }
 0x3ca   : > { %v1371_v9 = vpop.trf.xlu1 }
 0x3cb   : > { %v1403_v27 = vpop.trf.xlu0  ;;  %1452 = vst.msk [vmem:[%s2329_s25 + $0x100] sm:$0xff] %vm1419_vm2, %v1371_v9 }
 0x3cc   : > { %1468 = vst.msk [vmem:[%s2329_s25 + $0x180] sm:$0xff] %vm1419_vm2, %v1403_v27 }
 0x3ce   : > { %v1311_v37 = vpop.trf.xlu2 }
 0x3cf   : > { %1424 = vst.msk [vmem:[%s2329_s25 + $0x20] sm:$0xff] %vm1419_vm2, %v1311_v37 }
 0x3d2   : > { %v1372_v28 = vpop.trf.xlu1 }
 0x3d3   : > { %v1404_v53 = vpop.trf.xlu0  ;;  %1453 = vst.msk [vmem:[%s2329_s25 + $0x108] sm:$0xff] %vm1419_vm2, %v1372_v28 }
 0x3d4   : > { %1469 = vst.msk [vmem:[%s2329_s25 + $0x188] sm:$0xff] %vm1419_vm2, %v1404_v53 }
 0x3d6   : > { %v1312_v18 = vpop.trf.xlu2 }
 0x3d7   : > { %1425 = vst.msk [vmem:[%s2329_s25 + $0x28] sm:$0xff] %vm1419_vm2, %v1312_v18 }
 0x3da   : > { %v1373_v15 = vpop.trf.xlu1 }
 0x3db   : > { %v1405_v52 = vpop.trf.xlu0  ;;  %1454 = vst.msk [vmem:[%s2329_s25 + $0x110] sm:$0xff] %vm1419_vm2, %v1373_v15 }
 0x3dc   : > { %1470 = vst.msk [vmem:[%s2329_s25 + $0x190] sm:$0xff] %vm1419_vm2, %v1405_v52 }
 0x3de   : > { %v1313_v1 = vpop.trf.xlu2 }
 0x3df   : > { %1426 = vst.msk [vmem:[%s2329_s25 + $0x30] sm:$0xff] %vm1419_vm2, %v1313_v1 }
 0x3e2   : > { %v1374_v12 = vpop.trf.xlu1 }
 0x3e3   : > { %v1406_v24 = vpop.trf.xlu0  ;;  %1455 = vst.msk [vmem:[%s2329_s25 + $0x118] sm:$0xff] %vm1419_vm2, %v1374_v12 }
 0x3e4   : > { %1471 = vst.msk [vmem:[%s2329_s25 + $0x198] sm:$0xff] %vm1419_vm2, %v1406_v24 }
 0x3e6   : > { %v1314_v46 = vpop.trf.xlu2 }
 0x3e7   : > { %1427 = vst.msk [vmem:[%s2329_s25 + $0x38] sm:$0xff] %vm1419_vm2, %v1314_v46 }
 0x3ea   : > { %v1375_v55 = vpop.trf.xlu1 }
 0x3eb   : > { %v1407_v38 = vpop.trf.xlu0  ;;  %1456 = vst.msk [vmem:[%s2329_s25 + $0x120] sm:$0xff] %vm1419_vm2, %v1375_v55 }
 0x3ec   : > { %1472 = vst.msk [vmem:[%s2329_s25 + $0x1a0] sm:$0xff] %vm1419_vm2, %v1407_v38 }
 0x3ee   : > { %v1315_v51 = vpop.trf.xlu2 }
 0x3ef   : > { %1428 = vst.msk [vmem:[%s2329_s25 + $0x40] sm:$0xff] %vm1419_vm2, %v1315_v51 }
 0x3f2   : > { %v1376_v63 = vpop.trf.xlu1 }
 0x3f3   : > { %v1408_v3 = vpop.trf.xlu0  ;;  %1457 = vst.msk [vmem:[%s2329_s25 + $0x128] sm:$0xff] %vm1419_vm2, %v1376_v63 }
 0x3f4   : > { %1473 = vst.msk [vmem:[%s2329_s25 + $0x1a8] sm:$0xff] %vm1419_vm2, %v1408_v3 }
 0x3f6   : > { %v1316_v8 = vpop.trf.xlu2 }
 0x3f7   : > { %1429 = vst.msk [vmem:[%s2329_s25 + $0x48] sm:$0xff] %vm1419_vm2, %v1316_v8 }
 0x3fa   : > { %v1377_v13 = vpop.trf.xlu1 }
 0x3fb   : > { %v1409_v40 = vpop.trf.xlu0  ;;  %1458 = vst.msk [vmem:[%s2329_s25 + $0x130] sm:$0xff] %vm1419_vm2, %v1377_v13 }
 0x3fc   : > { %1474 = vst.msk [vmem:[%s2329_s25 + $0x1b0] sm:$0xff] %vm1419_vm2, %v1409_v40 }
 0x3fe   : > { %v1317_v19 = vpop.trf.xlu2 }
 0x3ff   : > { %1430 = vst.msk [vmem:[%s2329_s25 + $0x50] sm:$0xff] %vm1419_vm2, %v1317_v19 }
 0x402   : > { %v1378_v30 = vpop.trf.xlu1 }
 0x403   : > { %v1410_v14 = vpop.trf.xlu0  ;;  %1459 = vst.msk [vmem:[%s2329_s25 + $0x138] sm:$0xff] %vm1419_vm2, %v1378_v30 }
 0x404   : > { %1475 = vst.msk [vmem:[%s2329_s25 + $0x1b8] sm:$0xff] %vm1419_vm2, %v1410_v14 }
 0x406   : > { %v1318_v29 = vpop.trf.xlu2 }
 0x407   : > { %1431 = vst.msk [vmem:[%s2329_s25 + $0x58] sm:$0xff] %vm1419_vm2, %v1318_v29 }
 0x40a   : > { %v1379_v50 = vpop.trf.xlu1 }
 0x40b   : > { %v1411_v43 = vpop.trf.xlu0  ;;  %1460 = vst.msk [vmem:[%s2329_s25 + $0x140] sm:$0xff] %vm1419_vm2, %v1379_v50 }
 0x40c   : > { %1476 = vst.msk [vmem:[%s2329_s25 + $0x1c0] sm:$0xff] %vm1419_vm2, %v1411_v43 }
 0x40e   : > { %v1319_v21 = vpop.trf.xlu2 }
 0x40f   : > { %1432 = vst.msk [vmem:[%s2329_s25 + $0x60] sm:$0xff] %vm1419_vm2, %v1319_v21 }
 0x412   : > { %v1380_v26 = vpop.trf.xlu1 }
 0x413   : > { %v1412_v58 = vpop.trf.xlu0  ;;  %1461 = vst.msk [vmem:[%s2329_s25 + $0x148] sm:$0xff] %vm1419_vm2, %v1380_v26 }
 0x414   : > { %1477 = vst.msk [vmem:[%s2329_s25 + $0x1c8] sm:$0xff] %vm1419_vm2, %v1412_v58 }
 0x416   : > { %v1320_v33 = vpop.trf.xlu2 }
 0x417   : > { %1433 = vst.msk [vmem:[%s2329_s25 + $0x68] sm:$0xff] %vm1419_vm2, %v1320_v33 }
 0x41a   : > { %v1381_v60 = vpop.trf.xlu1 }
 0x41b   : > { %v1413_v22 = vpop.trf.xlu0  ;;  %1462 = vst.msk [vmem:[%s2329_s25 + $0x150] sm:$0xff] %vm1419_vm2, %v1381_v60 }
 0x41c   : > { %1478 = vst.msk [vmem:[%s2329_s25 + $0x1d0] sm:$0xff] %vm1419_vm2, %v1413_v22 }
 0x41e   : > { %v1321_v35 = vpop.trf.xlu2 }
 0x41f   : > { %1434 = vst.msk [vmem:[%s2329_s25 + $0x70] sm:$0xff] %vm1419_vm2, %v1321_v35 }
 0x422   : > { %v1382_v47 = vpop.trf.xlu1 }
 0x423   : > { %v1414_v61 = vpop.trf.xlu0  ;;  %1463 = vst.msk [vmem:[%s2329_s25 + $0x158] sm:$0xff] %vm1419_vm2, %v1382_v47 }
 0x424   : > { %1479 = vst.msk [vmem:[%s2329_s25 + $0x1d8] sm:$0xff] %vm1419_vm2, %v1414_v61 }
 0x426   : > { %v1322_v36 = vpop.trf.xlu2 }
 0x427   : > { %1435 = vst.msk [vmem:[%s2329_s25 + $0x78] sm:$0xff] %vm1419_vm2, %v1322_v36 }
 0x42a   : > { %v1383_v2 = vpop.trf.xlu1 }
 0x42b   : > { %v1415_v62 = vpop.trf.xlu0  ;;  %1464 = vst.msk [vmem:[%s2329_s25 + $0x160] sm:$0xff] %vm1419_vm2, %v1383_v2 }
 0x42c   : > { %1480 = vst.msk [vmem:[%s2329_s25 + $0x1e0] sm:$0xff] %vm1419_vm2, %v1415_v62 }
 0x42e   : > { %v1339_v5 = vpop.trf.xlu2 }
 0x42f   : > { %1436 = vst.msk [vmem:[%s2329_s25 + $0x80] sm:$0xff] %vm1419_vm2, %v1339_v5 }
 0x432   : > { %v1384_v17 = vpop.trf.xlu1 }
 0x433   : > { %v1416_v42 = vpop.trf.xlu0  ;;  %1465 = vst.msk [vmem:[%s2329_s25 + $0x168] sm:$0xff] %vm1419_vm2, %v1384_v17 }
 0x434   : > { %1481 = vst.msk [vmem:[%s2329_s25 + $0x1e8] sm:$0xff] %vm1419_vm2, %v1416_v42 }
 0x436   : > { %v1340_v56 = vpop.trf.xlu2 }
 0x437   : > { %1437 = vst.msk [vmem:[%s2329_s25 + $0x88] sm:$0xff] %vm1419_vm2, %v1340_v56 }
 0x43a   : > { %v1385_v31 = vpop.trf.xlu1 }
 0x43b   : > { %v1417_v32 = vpop.trf.xlu0  ;;  %1466 = vst.msk [vmem:[%s2329_s25 + $0x170] sm:$0xff] %vm1419_vm2, %v1385_v31 }
 0x43c   : > { %1482 = vst.msk [vmem:[%s2329_s25 + $0x1f0] sm:$0xff] %vm1419_vm2, %v1417_v32 }
 0x43e   : > { %v1341_v54 = vpop.trf.xlu2 }
 0x43f   : > { %1438 = vst.msk [vmem:[%s2329_s25 + $0x90] sm:$0xff] %vm1419_vm2, %v1341_v54 }
 0x442   : > { %v1386_v6 = vpop.trf.xlu1 }
 0x443   : > { %v1418_v34 = vpop.trf.xlu0  ;;  %1467 = vst.msk [vmem:[%s2329_s25 + $0x178] sm:$0xff] %vm1419_vm2, %v1386_v6 }
 0x444   : > { %1483 = vst.msk [vmem:[%s2329_s25 + $0x1f8] sm:$0xff] %vm1419_vm2, %v1418_v34 }
 0x446   : > { %v1342_v45 = vpop.trf.xlu2 }
 0x447   : > { %1439 = vst.msk [vmem:[%s2329_s25 + $0x98] sm:$0xff] %vm1419_vm2, %v1342_v45 }
 0x44e   : > { %v1343_v20 = vpop.trf.xlu2 }
 0x44f   : > { %1440 = vst.msk [vmem:[%s2329_s25 + $0xa0] sm:$0xff] %vm1419_vm2, %v1343_v20 }
 0x456   : > { %v1344_v59 = vpop.trf.xlu2 }
 0x457   : > { %1441 = vst.msk [vmem:[%s2329_s25 + $0xa8] sm:$0xff] %vm1419_vm2, %v1344_v59 }
 0x45e   : > { %v1345_v57 = vpop.trf.xlu2 }
 0x45f   : > { %1442 = vst.msk [vmem:[%s2329_s25 + $0xb0] sm:$0xff] %vm1419_vm2, %v1345_v57 }
 0x466   : > { %v1346_v4 = vpop.trf.xlu2 }
 0x467   : > { %1443 = vst.msk [vmem:[%s2329_s25 + $0xb8] sm:$0xff] %vm1419_vm2, %v1346_v4 }
 0x46e   : > { %v1347_v16 = vpop.trf.xlu2 }
 0x46f   : > { %1444 = vst.msk [vmem:[%s2329_s25 + $0xc0] sm:$0xff] %vm1419_vm2, %v1347_v16 }
 0x476   : > { %v1348_v25 = vpop.trf.xlu2 }
 0x477   : > { %1445 = vst.msk [vmem:[%s2329_s25 + $0xc8] sm:$0xff] %vm1419_vm2, %v1348_v25 }
 0x47e   : > { %v1349_v7 = vpop.trf.xlu2 }
 0x47f   : > { %1446 = vst.msk [vmem:[%s2329_s25 + $0xd0] sm:$0xff] %vm1419_vm2, %v1349_v7 }
 0x486   : > { %v1350_v10 = vpop.trf.xlu2 }
 0x487   : > { %1447 = vst.msk [vmem:[%s2329_s25 + $0xd8] sm:$0xff] %vm1419_vm2, %v1350_v10 }
 0x48e   : > { %v1351_v39 = vpop.trf.xlu2 }
 0x48f   : > { %1448 = vst.msk [vmem:[%s2329_s25 + $0xe0] sm:$0xff] %vm1419_vm2, %v1351_v39 }
 0x496   : > { %v1352_v11 = vpop.trf.xlu2 }
 0x497   : > { %1449 = vst.msk [vmem:[%s2329_s25 + $0xe8] sm:$0xff] %vm1419_vm2, %v1352_v11 }
 0x49e   : > { %v1353_v41 = vpop.trf.xlu2 }
 0x49f   : > { %1450 = vst.msk [vmem:[%s2329_s25 + $0xf0] sm:$0xff] %vm1419_vm2, %v1353_v41 }
 0x4a6   : > { %v1354_v23 = vpop.trf.xlu2 }
 0x4a7   : > { %1451 = vst.msk [vmem:[%s2329_s25 + $0xf8] sm:$0xff] %vm1419_vm2, %v1354_v23 }
 0x4a8 PF: > { %s17_s24 = sadd.s32 1, %s1899_s24  }
 0x4a9   : > { %p14_p4 = scmp.ge.s32.totalorder %s17_s24, 4  }
 0x4ab   :  { %16 = sbr.rel (!%p14_p4) target bundleno = 1 (0x1), region = 78 }

</bundles_post_ra>
